<compile_context>
chip_gen: v6e
topology: v6e:2x2x1
jax: 0.10.0
libtpu: 0.0.40
codegen_flags: <defaults>
</compile_context>

<pallas_src>
import functools

import jax
import jax.numpy as jnp
from jax.experimental import pallas as pl
from jax.experimental.pallas import tpu as pltpu


# ----------------------------- Pallas kernel --------------------------------

def _lstm_direction(x2d, wih_ref, whh_ref, b_ref, h_out_ref, *, T, B, reverse):
    """One LSTM direction, fully unrolled over time.

    x2d:       (T*B, D) value (already loaded into vregs)
    wih_ref:   (4, D, H) per-gate W_ih^T, gate order (i, f, g, o)
    whh_ref:   (4, H, H) per-gate W_hh^T
    b_ref:     (4, 1, H) per-gate (b_ih + b_hh)
    h_out_ref: (T*B, H)  VMEM scratch, row t*B..t*B+B gets h_t of this direction
    """
    H = whh_ref.shape[2]

    # Hoisted input projection + bias: one batched matmul per gate, outside the
    # serial recurrence.  Each is (T*B, D) @ (D, H) -> (T*B, H).
    xp = [
        jnp.dot(x2d, wih_ref[k], preferred_element_type=jnp.float32) + b_ref[k]
        for k in range(4)
    ]
    # Hoist recurrent weights out of the loop (loaded into vregs once).
    whh = [whh_ref[k] for k in range(4)]

    h = jnp.zeros((B, H), jnp.float32)
    c = jnp.zeros((B, H), jnp.float32)

    for s in range(T):                      # static unroll (T is small & static)
        t = (T - 1 - s) if reverse else s   # in-kernel time reversal
        r0 = t * B                          # static row offset
        # Per-gate recurrent matmuls -> gates land directly as (B, H) tensors,
        # no lane slicing of a (B, 4H) vector.
        gi = xp[0][r0:r0 + B] + jnp.dot(h, whh[0], preferred_element_type=jnp.float32)
        gf = xp[1][r0:r0 + B] + jnp.dot(h, whh[1], preferred_element_type=jnp.float32)
        gg = xp[2][r0:r0 + B] + jnp.dot(h, whh[2], preferred_element_type=jnp.float32)
        go = xp[3][r0:r0 + B] + jnp.dot(h, whh[3], preferred_element_type=jnp.float32)
        c = jax.nn.sigmoid(gf) * c + jax.nn.sigmoid(gi) * jnp.tanh(gg)
        h = jax.nn.sigmoid(go) * jnp.tanh(c)
        h_out_ref[pl.ds(r0, B), :] = h      # static store into VMEM scratch


def decoder_kernel(x_ref,                          # (T*B, D)
                   wih_f_ref, whh_f_ref, b_f_ref,  # forward LSTM params
                   wih_b_ref, whh_b_ref, b_b_ref,  # backward LSTM params
                   fc_wf_ref, fc_wb_ref, fc_b_ref,  # (H,C), (H,C), (1,C)
                   out_ref,                        # (T*B, C) log-probs
                   hf_ref, hb_ref,                 # VMEM scratch (T*B, H) each
                   *, T, B):
    x2d = x_ref[...]

    # Forward direction
    _lstm_direction(x2d, wih_f_ref, whh_f_ref, b_f_ref, hf_ref,
                    T=T, B=B, reverse=False)
    # Backward direction (time reversed via indexing, no data reversal)
    _lstm_direction(x2d, wih_b_ref, whh_b_ref, b_b_ref, hb_ref,
                    T=T, B=B, reverse=True)

    # Fused Linear on [h_fwd | h_bwd] expressed as two dots (no concat),
    # followed by LogSoftmax over the class axis.
    logits = (jnp.dot(hf_ref[...], fc_wf_ref[...], preferred_element_type=jnp.float32)
              + jnp.dot(hb_ref[...], fc_wb_ref[...], preferred_element_type=jnp.float32)
              + fc_b_ref[...])
    m = jnp.max(logits, axis=-1, keepdims=True)
    shifted = logits - m
    lse = jnp.log(jnp.sum(jnp.exp(shifted), axis=-1, keepdims=True))
    out_ref[...] = shifted - lse


# ------------------------------ JAX wrapper ----------------------------------

_VMEM_SPEC = pl.BlockSpec(memory_space=pltpu.MemorySpace.VMEM)


@jax.jit
def seq2seq_decoder_forward(x, params):
    """x: (T, B, D) -> (T, B, classes) log-probs. Single fused pallas_call."""
    T, B, D = x.shape
    H = params["whh_f"].shape[2]
    C = params["fc_w_f"].shape[1]

    x2d = x.reshape(T * B, D)  # free row-major reshape

    kernel = functools.partial(decoder_kernel, T=T, B=B)
    out2d = pl.pallas_call(
        kernel,
        out_shape=jax.ShapeDtypeStruct((T * B, C), jnp.float32),
        in_specs=[_VMEM_SPEC] * 10,
        out_specs=_VMEM_SPEC,
        scratch_shapes=[pltpu.VMEM((T * B, H), jnp.float32),
                        pltpu.VMEM((T * B, H), jnp.float32)],
    )(x2d,
      params["wih_f"], params["whh_f"], params["b_f"],
      params["wih_b"], params["whh_b"], params["b_b"],
      params["fc_w_f"], params["fc_w_b"], params["fc_b"])

    return out2d.reshape(T, B, C)


def init_params(key, input_dims, hidden, classes):
    """Deterministic synthetic parameters (PyTorch shapes, re-laid out for TPU)."""
    ks = jax.random.split(key, 10)
    s = 0.1

    def n(k, shape):
        return (s * jax.random.normal(k, shape)).astype(jnp.float32)

    # PyTorch nn.LSTM: weight_ih (4H, D), weight_hh (4H, H), biases (4H,),
    # gate order (i, f, g, o); bidirectional adds *_reverse copies.
    wih_f = n(ks[0], (4 * hidden, input_dims))
    whh_f = n(ks[1], (4 * hidden, hidden))
    b_f = n(ks[2], (4 * hidden,)) + n(ks[3], (4 * hidden,))   # b_ih + b_hh
    wih_b = n(ks[4], (4 * hidden, input_dims))
    whh_b = n(ks[5], (4 * hidden, hidden))
    b_b = n(ks[6], (4 * hidden,)) + n(ks[7], (4 * hidden,))
    # fc1: weight (classes, 2H), bias (classes,)
    fc_w = n(ks[8], (classes, 2 * hidden))
    fc_b = n(ks[9], (classes,))

    def split_gates(w):  # (4H, X) -> (4, X, H): per-gate transposed slabs
        return jnp.stack([w[k * hidden:(k + 1) * hidden, :].T for k in range(4)],
                         axis=0)

    def split_bias(b):   # (4H,) -> (4, 1, H)
        return jnp.stack([b[k * hidden:(k + 1) * hidden].reshape(1, hidden)
                          for k in range(4)], axis=0)

    return {
        "wih_f": split_gates(wih_f), "whh_f": split_gates(whh_f), "b_f": split_bias(b_f),
        "wih_b": split_gates(wih_b), "whh_b": split_gates(whh_b), "b_b": split_bias(b_b),
        "fc_w_f": fc_w[:, :hidden].T,   # (H, C): multiplies forward hidden
        "fc_w_b": fc_w[:, hidden:].T,   # (H, C): multiplies backward hidden
        "fc_b": fc_b.reshape(1, -1),
    }


# ----------------------------------- main ------------------------------------

if __name__ == "__main__":
    # paramsDecoder: inputDims=32, hiddenDimensions=32, classes=16
    T, B, D, H, C = 8, 2, 32, 32, 16

    key = jax.random.PRNGKey(0)
    k_x, k_p = jax.random.split(key)
    x = jax.random.normal(k_x, (T, B, D), dtype=jnp.float32)
    params = init_params(k_p, D, H, C)

    out = seq2seq_decoder_forward(x, params)
    out = jax.block_until_ready(out)

    assert out.shape == (T, B, C), out.shape
    # log-softmax sanity: probabilities sum to 1 over the class axis
    prob_sums = jnp.exp(out).sum(axis=2)
    assert bool(jnp.all(jnp.abs(prob_sums - 1.0) < 1e-4)), "log-softmax check failed"
    assert bool(jnp.all(jnp.isfinite(out))), "non-finite output"

    print("KERNEL_OK")
</pallas_src>

<mosaic_0001>
module attributes {stable_mosaic.version = 11 : i64} {
  func.func @decoder_kernel(%arg0: memref<16x32xf32, #tpu.memory_space<vmem>>, %arg1: memref<4x32x32xf32, #tpu.memory_space<vmem>>, %arg2: memref<4x32x32xf32, #tpu.memory_space<vmem>>, %arg3: memref<4x1x32xf32, #tpu.memory_space<vmem>>, %arg4: memref<4x32x32xf32, #tpu.memory_space<vmem>>, %arg5: memref<4x32x32xf32, #tpu.memory_space<vmem>>, %arg6: memref<4x1x32xf32, #tpu.memory_space<vmem>>, %arg7: memref<32x16xf32, #tpu.memory_space<vmem>>, %arg8: memref<32x16xf32, #tpu.memory_space<vmem>>, %arg9: memref<1x16xf32, #tpu.memory_space<vmem>>, %arg10: memref<16x16xf32, #tpu.memory_space<vmem>>, %arg11: memref<16x32xf32, #tpu.memory_space<vmem>>, %arg12: memref<16x32xf32, #tpu.memory_space<vmem>>) attributes {dimension_semantics = [], scalar_prefetch = 0 : i64, scratch_operands = 2 : i64, tpu.core_type = #tpu.core_type<tc>} {
    %c0 = arith.constant 0 : index
    %c0_0 = arith.constant 0 : index
    %0 = vector.load %arg0[%c0, %c0_0] : memref<16x32xf32, #tpu.memory_space<vmem>>, vector<16x32xf32>
    %c0_1 = arith.constant 0 : index
    %c0_2 = arith.constant 0 : index
    %c0_3 = arith.constant 0 : index
    %1 = vector.load %arg1[%c0_1, %c0_2, %c0_3] : memref<4x32x32xf32, #tpu.memory_space<vmem>>, vector<1x32x32xf32>
    %2 = vector.shape_cast %1 : vector<1x32x32xf32> to vector<32x32xf32>
    %cst = arith.constant dense<0.000000e+00> : vector<16x32xf32>
    %3 = tpu.matmul %0, %2, %cst {dimension_numbers = #tpu.dot_dimension_numbers<[1], [0], [0], [1], [0, 0, 1, 1], [], []>} : vector<16x32xf32>, vector<32x32xf32>, vector<16x32xf32> -> vector<16x32xf32>
    %c0_4 = arith.constant 0 : index
    %c0_5 = arith.constant 0 : index
    %c0_6 = arith.constant 0 : index
    %4 = vector.load %arg3[%c0_4, %c0_5, %c0_6] : memref<4x1x32xf32, #tpu.memory_space<vmem>>, vector<1x1x32xf32>
    %5 = vector.shape_cast %4 : vector<1x1x32xf32> to vector<1x32xf32>
    %6 = vector.broadcast %5 : vector<1x32xf32> to vector<16x32xf32>
    %7 = arith.addf %3, %6 : vector<16x32xf32>
    %c1 = arith.constant 1 : index
    %c0_7 = arith.constant 0 : index
    %c0_8 = arith.constant 0 : index
    %8 = vector.load %arg1[%c1, %c0_7, %c0_8] : memref<4x32x32xf32, #tpu.memory_space<vmem>>, vector<1x32x32xf32>
    %9 = vector.shape_cast %8 : vector<1x32x32xf32> to vector<32x32xf32>
    %cst_9 = arith.constant dense<0.000000e+00> : vector<16x32xf32>
    %10 = tpu.matmul %0, %9, %cst_9 {dimension_numbers = #tpu.dot_dimension_numbers<[1], [0], [0], [1], [0, 0, 1, 1], [], []>} : vector<16x32xf32>, vector<32x32xf32>, vector<16x32xf32> -> vector<16x32xf32>
    %c1_10 = arith.constant 1 : index
    %c0_11 = arith.constant 0 : index
    %c0_12 = arith.constant 0 : index
    %11 = vector.load %arg3[%c1_10, %c0_11, %c0_12] : memref<4x1x32xf32, #tpu.memory_space<vmem>>, vector<1x1x32xf32>
    %12 = vector.shape_cast %11 : vector<1x1x32xf32> to vector<1x32xf32>
    %13 = vector.broadcast %12 : vector<1x32xf32> to vector<16x32xf32>
    %14 = arith.addf %10, %13 : vector<16x32xf32>
    %c2 = arith.constant 2 : index
    %c0_13 = arith.constant 0 : index
    %c0_14 = arith.constant 0 : index
    %15 = vector.load %arg1[%c2, %c0_13, %c0_14] : memref<4x32x32xf32, #tpu.memory_space<vmem>>, vector<1x32x32xf32>
    %16 = vector.shape_cast %15 : vector<1x32x32xf32> to vector<32x32xf32>
    %cst_15 = arith.constant dense<0.000000e+00> : vector<16x32xf32>
    %17 = tpu.matmul %0, %16, %cst_15 {dimension_numbers = #tpu.dot_dimension_numbers<[1], [0], [0], [1], [0, 0, 1, 1], [], []>} : vector<16x32xf32>, vector<32x32xf32>, vector<16x32xf32> -> vector<16x32xf32>
    %c2_16 = arith.constant 2 : index
    %c0_17 = arith.constant 0 : index
    %c0_18 = arith.constant 0 : index
    %18 = vector.load %arg3[%c2_16, %c0_17, %c0_18] : memref<4x1x32xf32, #tpu.memory_space<vmem>>, vector<1x1x32xf32>
    %19 = vector.shape_cast %18 : vector<1x1x32xf32> to vector<1x32xf32>
    %20 = vector.broadcast %19 : vector<1x32xf32> to vector<16x32xf32>
    %21 = arith.addf %17, %20 : vector<16x32xf32>
    %c3 = arith.constant 3 : index
    %c0_19 = arith.constant 0 : index
    %c0_20 = arith.constant 0 : index
    %22 = vector.load %arg1[%c3, %c0_19, %c0_20] : memref<4x32x32xf32, #tpu.memory_space<vmem>>, vector<1x32x32xf32>
    %23 = vector.shape_cast %22 : vector<1x32x32xf32> to vector<32x32xf32>
    %cst_21 = arith.constant dense<0.000000e+00> : vector<16x32xf32>
    %24 = tpu.matmul %0, %23, %cst_21 {dimension_numbers = #tpu.dot_dimension_numbers<[1], [0], [0], [1], [0, 0, 1, 1], [], []>} : vector<16x32xf32>, vector<32x32xf32>, vector<16x32xf32> -> vector<16x32xf32>
    %c3_22 = arith.constant 3 : index
    %c0_23 = arith.constant 0 : index
    %c0_24 = arith.constant 0 : index
    %25 = vector.load %arg3[%c3_22, %c0_23, %c0_24] : memref<4x1x32xf32, #tpu.memory_space<vmem>>, vector<1x1x32xf32>
    %26 = vector.shape_cast %25 : vector<1x1x32xf32> to vector<1x32xf32>
    %27 = vector.broadcast %26 : vector<1x32xf32> to vector<16x32xf32>
    %28 = arith.addf %24, %27 : vector<16x32xf32>
    %c0_25 = arith.constant 0 : index
    %c0_26 = arith.constant 0 : index
    %c0_27 = arith.constant 0 : index
    %29 = vector.load %arg2[%c0_25, %c0_26, %c0_27] : memref<4x32x32xf32, #tpu.memory_space<vmem>>, vector<1x32x32xf32>
    %30 = vector.shape_cast %29 : vector<1x32x32xf32> to vector<32x32xf32>
    %c1_28 = arith.constant 1 : index
    %c0_29 = arith.constant 0 : index
    %c0_30 = arith.constant 0 : index
    %31 = vector.load %arg2[%c1_28, %c0_29, %c0_30] : memref<4x32x32xf32, #tpu.memory_space<vmem>>, vector<1x32x32xf32>
    %32 = vector.shape_cast %31 : vector<1x32x32xf32> to vector<32x32xf32>
    %c2_31 = arith.constant 2 : index
    %c0_32 = arith.constant 0 : index
    %c0_33 = arith.constant 0 : index
    %33 = vector.load %arg2[%c2_31, %c0_32, %c0_33] : memref<4x32x32xf32, #tpu.memory_space<vmem>>, vector<1x32x32xf32>
    %34 = vector.shape_cast %33 : vector<1x32x32xf32> to vector<32x32xf32>
    %c3_34 = arith.constant 3 : index
    %c0_35 = arith.constant 0 : index
    %c0_36 = arith.constant 0 : index
    %35 = vector.load %arg2[%c3_34, %c0_35, %c0_36] : memref<4x32x32xf32, #tpu.memory_space<vmem>>, vector<1x32x32xf32>
    %36 = vector.shape_cast %35 : vector<1x32x32xf32> to vector<32x32xf32>
    %cst_37 = arith.constant 0.000000e+00 : f32
    %37 = vector.broadcast %cst_37 : f32 to vector<2x32xf32>
    %cst_38 = arith.constant 0.000000e+00 : f32
    %38 = vector.broadcast %cst_38 : f32 to vector<2x32xf32>
    %39 = vector.extract_strided_slice %7 {offsets = [0, 0], sizes = [2, 32], strides = [1, 1]} : vector<16x32xf32> to vector<2x32xf32>
    %cst_39 = arith.constant dense<0.000000e+00> : vector<2x32xf32>
    %40 = tpu.matmul %37, %30, %cst_39 {dimension_numbers = #tpu.dot_dimension_numbers<[1], [0], [0], [1], [0, 0, 1, 1], [], []>} : vector<2x32xf32>, vector<32x32xf32>, vector<2x32xf32> -> vector<2x32xf32>
    %41 = arith.addf %39, %40 : vector<2x32xf32>
    %42 = vector.extract_strided_slice %14 {offsets = [0, 0], sizes = [2, 32], strides = [1, 1]} : vector<16x32xf32> to vector<2x32xf32>
    %cst_40 = arith.constant dense<0.000000e+00> : vector<2x32xf32>
    %43 = tpu.matmul %37, %32, %cst_40 {dimension_numbers = #tpu.dot_dimension_numbers<[1], [0], [0], [1], [0, 0, 1, 1], [], []>} : vector<2x32xf32>, vector<32x32xf32>, vector<2x32xf32> -> vector<2x32xf32>
    %44 = arith.addf %42, %43 : vector<2x32xf32>
    %45 = vector.extract_strided_slice %21 {offsets = [0, 0], sizes = [2, 32], strides = [1, 1]} : vector<16x32xf32> to vector<2x32xf32>
    %cst_41 = arith.constant dense<0.000000e+00> : vector<2x32xf32>
    %46 = tpu.matmul %37, %34, %cst_41 {dimension_numbers = #tpu.dot_dimension_numbers<[1], [0], [0], [1], [0, 0, 1, 1], [], []>} : vector<2x32xf32>, vector<32x32xf32>, vector<2x32xf32> -> vector<2x32xf32>
    %47 = arith.addf %45, %46 : vector<2x32xf32>
    %48 = vector.extract_strided_slice %28 {offsets = [0, 0], sizes = [2, 32], strides = [1, 1]} : vector<16x32xf32> to vector<2x32xf32>
    %cst_42 = arith.constant dense<0.000000e+00> : vector<2x32xf32>
    %49 = tpu.matmul %37, %36, %cst_42 {dimension_numbers = #tpu.dot_dimension_numbers<[1], [0], [0], [1], [0, 0, 1, 1], [], []>} : vector<2x32xf32>, vector<32x32xf32>, vector<2x32xf32> -> vector<2x32xf32>
    %50 = arith.addf %48, %49 : vector<2x32xf32>
    %51 = arith.negf %44 : vector<2x32xf32>
    %52 = math.exp %51 : vector<2x32xf32>
    %cst_43 = arith.constant 1.000000e+00 : f32
    %53 = vector.broadcast %cst_43 : f32 to vector<2x32xf32>
    %54 = arith.addf %53, %52 : vector<2x32xf32>
    %55 = arith.divf %53, %54 : vector<2x32xf32>
    %56 = arith.mulf %55, %38 : vector<2x32xf32>
    %57 = arith.negf %41 : vector<2x32xf32>
    %58 = math.exp %57 : vector<2x32xf32>
    %cst_44 = arith.constant 1.000000e+00 : f32
    %59 = vector.broadcast %cst_44 : f32 to vector<2x32xf32>
    %60 = arith.addf %59, %58 : vector<2x32xf32>
    %61 = arith.divf %59, %60 : vector<2x32xf32>
    %62 = math.tanh %47 : vector<2x32xf32>
    %63 = arith.mulf %61, %62 : vector<2x32xf32>
    %64 = arith.addf %56, %63 : vector<2x32xf32>
    %65 = arith.negf %50 : vector<2x32xf32>
    %66 = math.exp %65 : vector<2x32xf32>
    %cst_45 = arith.constant 1.000000e+00 : f32
    %67 = vector.broadcast %cst_45 : f32 to vector<2x32xf32>
    %68 = arith.addf %67, %66 : vector<2x32xf32>
    %69 = arith.divf %67, %68 : vector<2x32xf32>
    %70 = math.tanh %64 : vector<2x32xf32>
    %71 = arith.mulf %69, %70 : vector<2x32xf32>
    %c0_46 = arith.constant 0 : index
    %c0_47 = arith.constant 0 : index
    %72 = vector.load %arg11[%c0_46, %c0_47] : memref<16x32xf32, #tpu.memory_space<vmem>>, vector<2x32xf32>
    tpu.vector_store %arg11[%c0_46, %c0_47], %71 {strides = array<i32>} : memref<16x32xf32, #tpu.memory_space<vmem>>, vector<2x32xf32>,
    %73 = vector.extract_strided_slice %7 {offsets = [2, 0], sizes = [2, 32], strides = [1, 1]} : vector<16x32xf32> to vector<2x32xf32>
    %cst_48 = arith.constant dense<0.000000e+00> : vector<2x32xf32>
    %74 = tpu.matmul %71, %30, %cst_48 {dimension_numbers = #tpu.dot_dimension_numbers<[1], [0], [0], [1], [0, 0, 1, 1], [], []>} : vector<2x32xf32>, vector<32x32xf32>, vector<2x32xf32> -> vector<2x32xf32>
    %75 = arith.addf %73, %74 : vector<2x32xf32>
    %76 = vector.extract_strided_slice %14 {offsets = [2, 0], sizes = [2, 32], strides = [1, 1]} : vector<16x32xf32> to vector<2x32xf32>
    %cst_49 = arith.constant dense<0.000000e+00> : vector<2x32xf32>
    %77 = tpu.matmul %71, %32, %cst_49 {dimension_numbers = #tpu.dot_dimension_numbers<[1], [0], [0], [1], [0, 0, 1, 1], [], []>} : vector<2x32xf32>, vector<32x32xf32>, vector<2x32xf32> -> vector<2x32xf32>
    %78 = arith.addf %76, %77 : vector<2x32xf32>
    %79 = vector.extract_strided_slice %21 {offsets = [2, 0], sizes = [2, 32], strides = [1, 1]} : vector<16x32xf32> to vector<2x32xf32>
    %cst_50 = arith.constant dense<0.000000e+00> : vector<2x32xf32>
    %80 = tpu.matmul %71, %34, %cst_50 {dimension_numbers = #tpu.dot_dimension_numbers<[1], [0], [0], [1], [0, 0, 1, 1], [], []>} : vector<2x32xf32>, vector<32x32xf32>, vector<2x32xf32> -> vector<2x32xf32>
    %81 = arith.addf %79, %80 : vector<2x32xf32>
    %82 = vector.extract_strided_slice %28 {offsets = [2, 0], sizes = [2, 32], strides = [1, 1]} : vector<16x32xf32> to vector<2x32xf32>
    %cst_51 = arith.constant dense<0.000000e+00> : vector<2x32xf32>
    %83 = tpu.matmul %71, %36, %cst_51 {dimension_numbers = #tpu.dot_dimension_numbers<[1], [0], [0], [1], [0, 0, 1, 1], [], []>} : vector<2x32xf32>, vector<32x32xf32>, vector<2x32xf32> -> vector<2x32xf32>
    %84 = arith.addf %82, %83 : vector<2x32xf32>
    %85 = arith.negf %78 : vector<2x32xf32>
    %86 = math.exp %85 : vector<2x32xf32>
    %cst_52 = arith.constant 1.000000e+00 : f32
    %87 = vector.broadcast %cst_52 : f32 to vector<2x32xf32>
    %88 = arith.addf %87, %86 : vector<2x32xf32>
    %89 = arith.divf %87, %88 : vector<2x32xf32>
    %90 = arith.mulf %89, %64 : vector<2x32xf32>
    %91 = arith.negf %75 : vector<2x32xf32>
    %92 = math.exp %91 : vector<2x32xf32>
    %cst_53 = arith.constant 1.000000e+00 : f32
    %93 = vector.broadcast %cst_53 : f32 to vector<2x32xf32>
    %94 = arith.addf %93, %92 : vector<2x32xf32>
    %95 = arith.divf %93, %94 : vector<2x32xf32>
    %96 = math.tanh %81 : vector<2x32xf32>
    %97 = arith.mulf %95, %96 : vector<2x32xf32>
    %98 = arith.addf %90, %97 : vector<2x32xf32>
    %99 = arith.negf %84 : vector<2x32xf32>
    %100 = math.exp %99 : vector<2x32xf32>
    %cst_54 = arith.constant 1.000000e+00 : f32
    %101 = vector.broadcast %cst_54 : f32 to vector<2x32xf32>
    %102 = arith.addf %101, %100 : vector<2x32xf32>
    %103 = arith.divf %101, %102 : vector<2x32xf32>
    %104 = math.tanh %98 : vector<2x32xf32>
    %105 = arith.mulf %103, %104 : vector<2x32xf32>
    %c2_55 = arith.constant 2 : index
    %c0_56 = arith.constant 0 : index
    %106 = vector.load %arg11[%c2_55, %c0_56] : memref<16x32xf32, #tpu.memory_space<vmem>>, vector<2x32xf32>
    tpu.vector_store %arg11[%c2_55, %c0_56], %105 {strides = array<i32>} : memref<16x32xf32, #tpu.memory_space<vmem>>, vector<2x32xf32>,
    %107 = vector.extract_strided_slice %7 {offsets = [4, 0], sizes = [2, 32], strides = [1, 1]} : vector<16x32xf32> to vector<2x32xf32>
    %cst_57 = arith.constant dense<0.000000e+00> : vector<2x32xf32>
    %108 = tpu.matmul %105, %30, %cst_57 {dimension_numbers = #tpu.dot_dimension_numbers<[1], [0], [0], [1], [0, 0, 1, 1], [], []>} : vector<2x32xf32>, vector<32x32xf32>, vector<2x32xf32> -> vector<2x32xf32>
    %109 = arith.addf %107, %108 : vector<2x32xf32>
    %110 = vector.extract_strided_slice %14 {offsets = [4, 0], sizes = [2, 32], strides = [1, 1]} : vector<16x32xf32> to vector<2x32xf32>
    %cst_58 = arith.constant dense<0.000000e+00> : vector<2x32xf32>
    %111 = tpu.matmul %105, %32, %cst_58 {dimension_numbers = #tpu.dot_dimension_numbers<[1], [0], [0], [1], [0, 0, 1, 1], [], []>} : vector<2x32xf32>, vector<32x32xf32>, vector<2x32xf32> -> vector<2x32xf32>
    %112 = arith.addf %110, %111 : vector<2x32xf32>
    %113 = vector.extract_strided_slice %21 {offsets = [4, 0], sizes = [2, 32], strides = [1, 1]} : vector<16x32xf32> to vector<2x32xf32>
    %cst_59 = arith.constant dense<0.000000e+00> : vector<2x32xf32>
    %114 = tpu.matmul %105, %34, %cst_59 {dimension_numbers = #tpu.dot_dimension_numbers<[1], [0], [0], [1], [0, 0, 1, 1], [], []>} : vector<2x32xf32>, vector<32x32xf32>, vector<2x32xf32> -> vector<2x32xf32>
    %115 = arith.addf %113, %114 : vector<2x32xf32>
    %116 = vector.extract_strided_slice %28 {offsets = [4, 0], sizes = [2, 32], strides = [1, 1]} : vector<16x32xf32> to vector<2x32xf32>
    %cst_60 = arith.constant dense<0.000000e+00> : vector<2x32xf32>
    %117 = tpu.matmul %105, %36, %cst_60 {dimension_numbers = #tpu.dot_dimension_numbers<[1], [0], [0], [1], [0, 0, 1, 1], [], []>} : vector<2x32xf32>, vector<32x32xf32>, vector<2x32xf32> -> vector<2x32xf32>
    %118 = arith.addf %116, %117 : vector<2x32xf32>
    %119 = arith.negf %112 : vector<2x32xf32>
    %120 = math.exp %119 : vector<2x32xf32>
    %cst_61 = arith.constant 1.000000e+00 : f32
    %121 = vector.broadcast %cst_61 : f32 to vector<2x32xf32>
    %122 = arith.addf %121, %120 : vector<2x32xf32>
    %123 = arith.divf %121, %122 : vector<2x32xf32>
    %124 = arith.mulf %123, %98 : vector<2x32xf32>
    %125 = arith.negf %109 : vector<2x32xf32>
    %126 = math.exp %125 : vector<2x32xf32>
    %cst_62 = arith.constant 1.000000e+00 : f32
    %127 = vector.broadcast %cst_62 : f32 to vector<2x32xf32>
    %128 = arith.addf %127, %126 : vector<2x32xf32>
    %129 = arith.divf %127, %128 : vector<2x32xf32>
    %130 = math.tanh %115 : vector<2x32xf32>
    %131 = arith.mulf %129, %130 : vector<2x32xf32>
    %132 = arith.addf %124, %131 : vector<2x32xf32>
    %133 = arith.negf %118 : vector<2x32xf32>
    %134 = math.exp %133 : vector<2x32xf32>
    %cst_63 = arith.constant 1.000000e+00 : f32
    %135 = vector.broadcast %cst_63 : f32 to vector<2x32xf32>
    %136 = arith.addf %135, %134 : vector<2x32xf32>
    %137 = arith.divf %135, %136 : vector<2x32xf32>
    %138 = math.tanh %132 : vector<2x32xf32>
    %139 = arith.mulf %137, %138 : vector<2x32xf32>
    %c4 = arith.constant 4 : index
    %c0_64 = arith.constant 0 : index
    %140 = vector.load %arg11[%c4, %c0_64] : memref<16x32xf32, #tpu.memory_space<vmem>>, vector<2x32xf32>
    tpu.vector_store %arg11[%c4, %c0_64], %139 {strides = array<i32>} : memref<16x32xf32, #tpu.memory_space<vmem>>, vector<2x32xf32>,
    %141 = vector.extract_strided_slice %7 {offsets = [6, 0], sizes = [2, 32], strides = [1, 1]} : vector<16x32xf32> to vector<2x32xf32>
    %cst_65 = arith.constant dense<0.000000e+00> : vector<2x32xf32>
    %142 = tpu.matmul %139, %30, %cst_65 {dimension_numbers = #tpu.dot_dimension_numbers<[1], [0], [0], [1], [0, 0, 1, 1], [], []>} : vector<2x32xf32>, vector<32x32xf32>, vector<2x32xf32> -> vector<2x32xf32>
    %143 = arith.addf %141, %142 : vector<2x32xf32>
    %144 = vector.extract_strided_slice %14 {offsets = [6, 0], sizes = [2, 32], strides = [1, 1]} : vector<16x32xf32> to vector<2x32xf32>
    %cst_66 = arith.constant dense<0.000000e+00> : vector<2x32xf32>
    %145 = tpu.matmul %139, %32, %cst_66 {dimension_numbers = #tpu.dot_dimension_numbers<[1], [0], [0], [1], [0, 0, 1, 1], [], []>} : vector<2x32xf32>, vector<32x32xf32>, vector<2x32xf32> -> vector<2x32xf32>
    %146 = arith.addf %144, %145 : vector<2x32xf32>
    %147 = vector.extract_strided_slice %21 {offsets = [6, 0], sizes = [2, 32], strides = [1, 1]} : vector<16x32xf32> to vector<2x32xf32>
    %cst_67 = arith.constant dense<0.000000e+00> : vector<2x32xf32>
    %148 = tpu.matmul %139, %34, %cst_67 {dimension_numbers = #tpu.dot_dimension_numbers<[1], [0], [0], [1], [0, 0, 1, 1], [], []>} : vector<2x32xf32>, vector<32x32xf32>, vector<2x32xf32> -> vector<2x32xf32>
    %149 = arith.addf %147, %148 : vector<2x32xf32>
    %150 = vector.extract_strided_slice %28 {offsets = [6, 0], sizes = [2, 32], strides = [1, 1]} : vector<16x32xf32> to vector<2x32xf32>
    %cst_68 = arith.constant dense<0.000000e+00> : vector<2x32xf32>
    %151 = tpu.matmul %139, %36, %cst_68 {dimension_numbers = #tpu.dot_dimension_numbers<[1], [0], [0], [1], [0, 0, 1, 1], [], []>} : vector<2x32xf32>, vector<32x32xf32>, vector<2x32xf32> -> vector<2x32xf32>
    %152 = arith.addf %150, %151 : vector<2x32xf32>
    %153 = arith.negf %146 : vector<2x32xf32>
    %154 = math.exp %153 : vector<2x32xf32>
    %cst_69 = arith.constant 1.000000e+00 : f32
    %155 = vector.broadcast %cst_69 : f32 to vector<2x32xf32>
    %156 = arith.addf %155, %154 : vector<2x32xf32>
    %157 = arith.divf %155, %156 : vector<2x32xf32>
    %158 = arith.mulf %157, %132 : vector<2x32xf32>
    %159 = arith.negf %143 : vector<2x32xf32>
    %160 = math.exp %159 : vector<2x32xf32>
    %cst_70 = arith.constant 1.000000e+00 : f32
    %161 = vector.broadcast %cst_70 : f32 to vector<2x32xf32>
    %162 = arith.addf %161, %160 : vector<2x32xf32>
    %163 = arith.divf %161, %162 : vector<2x32xf32>
    %164 = math.tanh %149 : vector<2x32xf32>
    %165 = arith.mulf %163, %164 : vector<2x32xf32>
    %166 = arith.addf %158, %165 : vector<2x32xf32>
    %167 = arith.negf %152 : vector<2x32xf32>
    %168 = math.exp %167 : vector<2x32xf32>
    %cst_71 = arith.constant 1.000000e+00 : f32
    %169 = vector.broadcast %cst_71 : f32 to vector<2x32xf32>
    %170 = arith.addf %169, %168 : vector<2x32xf32>
    %171 = arith.divf %169, %170 : vector<2x32xf32>
    %172 = math.tanh %166 : vector<2x32xf32>
    %173 = arith.mulf %171, %172 : vector<2x32xf32>
    %c6 = arith.constant 6 : index
    %c0_72 = arith.constant 0 : index
    %174 = vector.load %arg11[%c6, %c0_72] : memref<16x32xf32, #tpu.memory_space<vmem>>, vector<2x32xf32>
    tpu.vector_store %arg11[%c6, %c0_72], %173 {strides = array<i32>} : memref<16x32xf32, #tpu.memory_space<vmem>>, vector<2x32xf32>,
    %175 = vector.extract_strided_slice %7 {offsets = [8, 0], sizes = [2, 32], strides = [1, 1]} : vector<16x32xf32> to vector<2x32xf32>
    %cst_73 = arith.constant dense<0.000000e+00> : vector<2x32xf32>
    %176 = tpu.matmul %173, %30, %cst_73 {dimension_numbers = #tpu.dot_dimension_numbers<[1], [0], [0], [1], [0, 0, 1, 1], [], []>} : vector<2x32xf32>, vector<32x32xf32>, vector<2x32xf32> -> vector<2x32xf32>
    %177 = arith.addf %175, %176 : vector<2x32xf32>
    %178 = vector.extract_strided_slice %14 {offsets = [8, 0], sizes = [2, 32], strides = [1, 1]} : vector<16x32xf32> to vector<2x32xf32>
    %cst_74 = arith.constant dense<0.000000e+00> : vector<2x32xf32>
    %179 = tpu.matmul %173, %32, %cst_74 {dimension_numbers = #tpu.dot_dimension_numbers<[1], [0], [0], [1], [0, 0, 1, 1], [], []>} : vector<2x32xf32>, vector<32x32xf32>, vector<2x32xf32> -> vector<2x32xf32>
    %180 = arith.addf %178, %179 : vector<2x32xf32>
    %181 = vector.extract_strided_slice %21 {offsets = [8, 0], sizes = [2, 32], strides = [1, 1]} : vector<16x32xf32> to vector<2x32xf32>
    %cst_75 = arith.constant dense<0.000000e+00> : vector<2x32xf32>
    %182 = tpu.matmul %173, %34, %cst_75 {dimension_numbers = #tpu.dot_dimension_numbers<[1], [0], [0], [1], [0, 0, 1, 1], [], []>} : vector<2x32xf32>, vector<32x32xf32>, vector<2x32xf32> -> vector<2x32xf32>
    %183 = arith.addf %181, %182 : vector<2x32xf32>
    %184 = vector.extract_strided_slice %28 {offsets = [8, 0], sizes = [2, 32], strides = [1, 1]} : vector<16x32xf32> to vector<2x32xf32>
    %cst_76 = arith.constant dense<0.000000e+00> : vector<2x32xf32>
    %185 = tpu.matmul %173, %36, %cst_76 {dimension_numbers = #tpu.dot_dimension_numbers<[1], [0], [0], [1], [0, 0, 1, 1], [], []>} : vector<2x32xf32>, vector<32x32xf32>, vector<2x32xf32> -> vector<2x32xf32>
    %186 = arith.addf %184, %185 : vector<2x32xf32>
    %187 = arith.negf %180 : vector<2x32xf32>
    %188 = math.exp %187 : vector<2x32xf32>
    %cst_77 = arith.constant 1.000000e+00 : f32
    %189 = vector.broadcast %cst_77 : f32 to vector<2x32xf32>
    %190 = arith.addf %189, %188 : vector<2x32xf32>
    %191 = arith.divf %189, %190 : vector<2x32xf32>
    %192 = arith.mulf %191, %166 : vector<2x32xf32>
    %193 = arith.negf %177 : vector<2x32xf32>
    %194 = math.exp %193 : vector<2x32xf32>
    %cst_78 = arith.constant 1.000000e+00 : f32
    %195 = vector.broadcast %cst_78 : f32 to vector<2x32xf32>
    %196 = arith.addf %195, %194 : vector<2x32xf32>
    %197 = arith.divf %195, %196 : vector<2x32xf32>
    %198 = math.tanh %183 : vector<2x32xf32>
    %199 = arith.mulf %197, %198 : vector<2x32xf32>
    %200 = arith.addf %192, %199 : vector<2x32xf32>
    %201 = arith.negf %186 : vector<2x32xf32>
    %202 = math.exp %201 : vector<2x32xf32>
    %cst_79 = arith.constant 1.000000e+00 : f32
    %203 = vector.broadcast %cst_79 : f32 to vector<2x32xf32>
    %204 = arith.addf %203, %202 : vector<2x32xf32>
    %205 = arith.divf %203, %204 : vector<2x32xf32>
    %206 = math.tanh %200 : vector<2x32xf32>
    %207 = arith.mulf %205, %206 : vector<2x32xf32>
    %c8 = arith.constant 8 : index
    %c0_80 = arith.constant 0 : index
    %208 = vector.load %arg11[%c8, %c0_80] : memref<16x32xf32, #tpu.memory_space<vmem>>, vector<2x32xf32>
    tpu.vector_store %arg11[%c8, %c0_80], %207 {strides = array<i32>} : memref<16x32xf32, #tpu.memory_space<vmem>>, vector<2x32xf32>,
    %209 = vector.extract_strided_slice %7 {offsets = [10, 0], sizes = [2, 32], strides = [1, 1]} : vector<16x32xf32> to vector<2x32xf32>
    %cst_81 = arith.constant dense<0.000000e+00> : vector<2x32xf32>
    %210 = tpu.matmul %207, %30, %cst_81 {dimension_numbers = #tpu.dot_dimension_numbers<[1], [0], [0], [1], [0, 0, 1, 1], [], []>} : vector<2x32xf32>, vector<32x32xf32>, vector<2x32xf32> -> vector<2x32xf32>
    %211 = arith.addf %209, %210 : vector<2x32xf32>
    %212 = vector.extract_strided_slice %14 {offsets = [10, 0], sizes = [2, 32], strides = [1, 1]} : vector<16x32xf32> to vector<2x32xf32>
    %cst_82 = arith.constant dense<0.000000e+00> : vector<2x32xf32>
    %213 = tpu.matmul %207, %32, %cst_82 {dimension_numbers = #tpu.dot_dimension_numbers<[1], [0], [0], [1], [0, 0, 1, 1], [], []>} : vector<2x32xf32>, vector<32x32xf32>, vector<2x32xf32> -> vector<2x32xf32>
    %214 = arith.addf %212, %213 : vector<2x32xf32>
    %215 = vector.extract_strided_slice %21 {offsets = [10, 0], sizes = [2, 32], strides = [1, 1]} : vector<16x32xf32> to vector<2x32xf32>
    %cst_83 = arith.constant dense<0.000000e+00> : vector<2x32xf32>
    %216 = tpu.matmul %207, %34, %cst_83 {dimension_numbers = #tpu.dot_dimension_numbers<[1], [0], [0], [1], [0, 0, 1, 1], [], []>} : vector<2x32xf32>, vector<32x32xf32>, vector<2x32xf32> -> vector<2x32xf32>
    %217 = arith.addf %215, %216 : vector<2x32xf32>
    %218 = vector.extract_strided_slice %28 {offsets = [10, 0], sizes = [2, 32], strides = [1, 1]} : vector<16x32xf32> to vector<2x32xf32>
    %cst_84 = arith.constant dense<0.000000e+00> : vector<2x32xf32>
    %219 = tpu.matmul %207, %36, %cst_84 {dimension_numbers = #tpu.dot_dimension_numbers<[1], [0], [0], [1], [0, 0, 1, 1], [], []>} : vector<2x32xf32>, vector<32x32xf32>, vector<2x32xf32> -> vector<2x32xf32>
    %220 = arith.addf %218, %219 : vector<2x32xf32>
    %221 = arith.negf %214 : vector<2x32xf32>
    %222 = math.exp %221 : vector<2x32xf32>
    %cst_85 = arith.constant 1.000000e+00 : f32
    %223 = vector.broadcast %cst_85 : f32 to vector<2x32xf32>
    %224 = arith.addf %223, %222 : vector<2x32xf32>
    %225 = arith.divf %223, %224 : vector<2x32xf32>
    %226 = arith.mulf %225, %200 : vector<2x32xf32>
    %227 = arith.negf %211 : vector<2x32xf32>
    %228 = math.exp %227 : vector<2x32xf32>
    %cst_86 = arith.constant 1.000000e+00 : f32
    %229 = vector.broadcast %cst_86 : f32 to vector<2x32xf32>
    %230 = arith.addf %229, %228 : vector<2x32xf32>
    %231 = arith.divf %229, %230 : vector<2x32xf32>
    %232 = math.tanh %217 : vector<2x32xf32>
    %233 = arith.mulf %231, %232 : vector<2x32xf32>
    %234 = arith.addf %226, %233 : vector<2x32xf32>
    %235 = arith.negf %220 : vector<2x32xf32>
    %236 = math.exp %235 : vector<2x32xf32>
    %cst_87 = arith.constant 1.000000e+00 : f32
    %237 = vector.broadcast %cst_87 : f32 to vector<2x32xf32>
    %238 = arith.addf %237, %236 : vector<2x32xf32>
    %239 = arith.divf %237, %238 : vector<2x32xf32>
    %240 = math.tanh %234 : vector<2x32xf32>
    %241 = arith.mulf %239, %240 : vector<2x32xf32>
    %c10 = arith.constant 10 : index
    %c0_88 = arith.constant 0 : index
    %242 = vector.load %arg11[%c10, %c0_88] : memref<16x32xf32, #tpu.memory_space<vmem>>, vector<2x32xf32>
    tpu.vector_store %arg11[%c10, %c0_88], %241 {strides = array<i32>} : memref<16x32xf32, #tpu.memory_space<vmem>>, vector<2x32xf32>,
    %243 = vector.extract_strided_slice %7 {offsets = [12, 0], sizes = [2, 32], strides = [1, 1]} : vector<16x32xf32> to vector<2x32xf32>
    %cst_89 = arith.constant dense<0.000000e+00> : vector<2x32xf32>
    %244 = tpu.matmul %241, %30, %cst_89 {dimension_numbers = #tpu.dot_dimension_numbers<[1], [0], [0], [1], [0, 0, 1, 1], [], []>} : vector<2x32xf32>, vector<32x32xf32>, vector<2x32xf32> -> vector<2x32xf32>
    %245 = arith.addf %243, %244 : vector<2x32xf32>
    %246 = vector.extract_strided_slice %14 {offsets = [12, 0], sizes = [2, 32], strides = [1, 1]} : vector<16x32xf32> to vector<2x32xf32>
    %cst_90 = arith.constant dense<0.000000e+00> : vector<2x32xf32>
    %247 = tpu.matmul %241, %32, %cst_90 {dimension_numbers = #tpu.dot_dimension_numbers<[1], [0], [0], [1], [0, 0, 1, 1], [], []>} : vector<2x32xf32>, vector<32x32xf32>, vector<2x32xf32> -> vector<2x32xf32>
    %248 = arith.addf %246, %247 : vector<2x32xf32>
    %249 = vector.extract_strided_slice %21 {offsets = [12, 0], sizes = [2, 32], strides = [1, 1]} : vector<16x32xf32> to vector<2x32xf32>
    %cst_91 = arith.constant dense<0.000000e+00> : vector<2x32xf32>
    %250 = tpu.matmul %241, %34, %cst_91 {dimension_numbers = #tpu.dot_dimension_numbers<[1], [0], [0], [1], [0, 0, 1, 1], [], []>} : vector<2x32xf32>, vector<32x32xf32>, vector<2x32xf32> -> vector<2x32xf32>
    %251 = arith.addf %249, %250 : vector<2x32xf32>
    %252 = vector.extract_strided_slice %28 {offsets = [12, 0], sizes = [2, 32], strides = [1, 1]} : vector<16x32xf32> to vector<2x32xf32>
    %cst_92 = arith.constant dense<0.000000e+00> : vector<2x32xf32>
    %253 = tpu.matmul %241, %36, %cst_92 {dimension_numbers = #tpu.dot_dimension_numbers<[1], [0], [0], [1], [0, 0, 1, 1], [], []>} : vector<2x32xf32>, vector<32x32xf32>, vector<2x32xf32> -> vector<2x32xf32>
    %254 = arith.addf %252, %253 : vector<2x32xf32>
    %255 = arith.negf %248 : vector<2x32xf32>
    %256 = math.exp %255 : vector<2x32xf32>
    %cst_93 = arith.constant 1.000000e+00 : f32
    %257 = vector.broadcast %cst_93 : f32 to vector<2x32xf32>
    %258 = arith.addf %257, %256 : vector<2x32xf32>
    %259 = arith.divf %257, %258 : vector<2x32xf32>
    %260 = arith.mulf %259, %234 : vector<2x32xf32>
    %261 = arith.negf %245 : vector<2x32xf32>
    %262 = math.exp %261 : vector<2x32xf32>
    %cst_94 = arith.constant 1.000000e+00 : f32
    %263 = vector.broadcast %cst_94 : f32 to vector<2x32xf32>
    %264 = arith.addf %263, %262 : vector<2x32xf32>
    %265 = arith.divf %263, %264 : vector<2x32xf32>
    %266 = math.tanh %251 : vector<2x32xf32>
    %267 = arith.mulf %265, %266 : vector<2x32xf32>
    %268 = arith.addf %260, %267 : vector<2x32xf32>
    %269 = arith.negf %254 : vector<2x32xf32>
    %270 = math.exp %269 : vector<2x32xf32>
    %cst_95 = arith.constant 1.000000e+00 : f32
    %271 = vector.broadcast %cst_95 : f32 to vector<2x32xf32>
    %272 = arith.addf %271, %270 : vector<2x32xf32>
    %273 = arith.divf %271, %272 : vector<2x32xf32>
    %274 = math.tanh %268 : vector<2x32xf32>
    %275 = arith.mulf %273, %274 : vector<2x32xf32>
    %c12 = arith.constant 12 : index
    %c0_96 = arith.constant 0 : index
    %276 = vector.load %arg11[%c12, %c0_96] : memref<16x32xf32, #tpu.memory_space<vmem>>, vector<2x32xf32>
    tpu.vector_store %arg11[%c12, %c0_96], %275 {strides = array<i32>} : memref<16x32xf32, #tpu.memory_space<vmem>>, vector<2x32xf32>,
    %277 = vector.extract_strided_slice %7 {offsets = [14, 0], sizes = [2, 32], strides = [1, 1]} : vector<16x32xf32> to vector<2x32xf32>
    %cst_97 = arith.constant dense<0.000000e+00> : vector<2x32xf32>
    %278 = tpu.matmul %275, %30, %cst_97 {dimension_numbers = #tpu.dot_dimension_numbers<[1], [0], [0], [1], [0, 0, 1, 1], [], []>} : vector<2x32xf32>, vector<32x32xf32>, vector<2x32xf32> -> vector<2x32xf32>
    %279 = arith.addf %277, %278 : vector<2x32xf32>
    %280 = vector.extract_strided_slice %14 {offsets = [14, 0], sizes = [2, 32], strides = [1, 1]} : vector<16x32xf32> to vector<2x32xf32>
    %cst_98 = arith.constant dense<0.000000e+00> : vector<2x32xf32>
    %281 = tpu.matmul %275, %32, %cst_98 {dimension_numbers = #tpu.dot_dimension_numbers<[1], [0], [0], [1], [0, 0, 1, 1], [], []>} : vector<2x32xf32>, vector<32x32xf32>, vector<2x32xf32> -> vector<2x32xf32>
    %282 = arith.addf %280, %281 : vector<2x32xf32>
    %283 = vector.extract_strided_slice %21 {offsets = [14, 0], sizes = [2, 32], strides = [1, 1]} : vector<16x32xf32> to vector<2x32xf32>
    %cst_99 = arith.constant dense<0.000000e+00> : vector<2x32xf32>
    %284 = tpu.matmul %275, %34, %cst_99 {dimension_numbers = #tpu.dot_dimension_numbers<[1], [0], [0], [1], [0, 0, 1, 1], [], []>} : vector<2x32xf32>, vector<32x32xf32>, vector<2x32xf32> -> vector<2x32xf32>
    %285 = arith.addf %283, %284 : vector<2x32xf32>
    %286 = vector.extract_strided_slice %28 {offsets = [14, 0], sizes = [2, 32], strides = [1, 1]} : vector<16x32xf32> to vector<2x32xf32>
    %cst_100 = arith.constant dense<0.000000e+00> : vector<2x32xf32>
    %287 = tpu.matmul %275, %36, %cst_100 {dimension_numbers = #tpu.dot_dimension_numbers<[1], [0], [0], [1], [0, 0, 1, 1], [], []>} : vector<2x32xf32>, vector<32x32xf32>, vector<2x32xf32> -> vector<2x32xf32>
    %288 = arith.addf %286, %287 : vector<2x32xf32>
    %289 = arith.negf %282 : vector<2x32xf32>
    %290 = math.exp %289 : vector<2x32xf32>
    %cst_101 = arith.constant 1.000000e+00 : f32
    %291 = vector.broadcast %cst_101 : f32 to vector<2x32xf32>
    %292 = arith.addf %291, %290 : vector<2x32xf32>
    %293 = arith.divf %291, %292 : vector<2x32xf32>
    %294 = arith.mulf %293, %268 : vector<2x32xf32>
    %295 = arith.negf %279 : vector<2x32xf32>
    %296 = math.exp %295 : vector<2x32xf32>
    %cst_102 = arith.constant 1.000000e+00 : f32
    %297 = vector.broadcast %cst_102 : f32 to vector<2x32xf32>
    %298 = arith.addf %297, %296 : vector<2x32xf32>
    %299 = arith.divf %297, %298 : vector<2x32xf32>
    %300 = math.tanh %285 : vector<2x32xf32>
    %301 = arith.mulf %299, %300 : vector<2x32xf32>
    %302 = arith.addf %294, %301 : vector<2x32xf32>
    %303 = arith.negf %288 : vector<2x32xf32>
    %304 = math.exp %303 : vector<2x32xf32>
    %cst_103 = arith.constant 1.000000e+00 : f32
    %305 = vector.broadcast %cst_103 : f32 to vector<2x32xf32>
    %306 = arith.addf %305, %304 : vector<2x32xf32>
    %307 = arith.divf %305, %306 : vector<2x32xf32>
    %308 = math.tanh %302 : vector<2x32xf32>
    %309 = arith.mulf %307, %308 : vector<2x32xf32>
    %c14 = arith.constant 14 : index
    %c0_104 = arith.constant 0 : index
    %310 = vector.load %arg11[%c14, %c0_104] : memref<16x32xf32, #tpu.memory_space<vmem>>, vector<2x32xf32>
    tpu.vector_store %arg11[%c14, %c0_104], %309 {strides = array<i32>} : memref<16x32xf32, #tpu.memory_space<vmem>>, vector<2x32xf32>,
    %c0_105 = arith.constant 0 : index
    %c0_106 = arith.constant 0 : index
    %c0_107 = arith.constant 0 : index
    %311 = vector.load %arg4[%c0_105, %c0_106, %c0_107] : memref<4x32x32xf32, #tpu.memory_space<vmem>>, vector<1x32x32xf32>
    %312 = vector.shape_cast %311 : vector<1x32x32xf32> to vector<32x32xf32>
    %cst_108 = arith.constant dense<0.000000e+00> : vector<16x32xf32>
    %313 = tpu.matmul %0, %312, %cst_108 {dimension_numbers = #tpu.dot_dimension_numbers<[1], [0], [0], [1], [0, 0, 1, 1], [], []>} : vector<16x32xf32>, vector<32x32xf32>, vector<16x32xf32> -> vector<16x32xf32>
    %c0_109 = arith.constant 0 : index
    %c0_110 = arith.constant 0 : index
    %c0_111 = arith.constant 0 : index
    %314 = vector.load %arg6[%c0_109, %c0_110, %c0_111] : memref<4x1x32xf32, #tpu.memory_space<vmem>>, vector<1x1x32xf32>
    %315 = vector.shape_cast %314 : vector<1x1x32xf32> to vector<1x32xf32>
    %316 = vector.broadcast %315 : vector<1x32xf32> to vector<16x32xf32>
    %317 = arith.addf %313, %316 : vector<16x32xf32>
    %c1_112 = arith.constant 1 : index
    %c0_113 = arith.constant 0 : index
    %c0_114 = arith.constant 0 : index
    %318 = vector.load %arg4[%c1_112, %c0_113, %c0_114] : memref<4x32x32xf32, #tpu.memory_space<vmem>>, vector<1x32x32xf32>
    %319 = vector.shape_cast %318 : vector<1x32x32xf32> to vector<32x32xf32>
    %cst_115 = arith.constant dense<0.000000e+00> : vector<16x32xf32>
    %320 = tpu.matmul %0, %319, %cst_115 {dimension_numbers = #tpu.dot_dimension_numbers<[1], [0], [0], [1], [0, 0, 1, 1], [], []>} : vector<16x32xf32>, vector<32x32xf32>, vector<16x32xf32> -> vector<16x32xf32>
    %c1_116 = arith.constant 1 : index
    %c0_117 = arith.constant 0 : index
    %c0_118 = arith.constant 0 : index
    %321 = vector.load %arg6[%c1_116, %c0_117, %c0_118] : memref<4x1x32xf32, #tpu.memory_space<vmem>>, vector<1x1x32xf32>
    %322 = vector.shape_cast %321 : vector<1x1x32xf32> to vector<1x32xf32>
    %323 = vector.broadcast %322 : vector<1x32xf32> to vector<16x32xf32>
    %324 = arith.addf %320, %323 : vector<16x32xf32>
    %c2_119 = arith.constant 2 : index
    %c0_120 = arith.constant 0 : index
    %c0_121 = arith.constant 0 : index
    %325 = vector.load %arg4[%c2_119, %c0_120, %c0_121] : memref<4x32x32xf32, #tpu.memory_space<vmem>>, vector<1x32x32xf32>
    %326 = vector.shape_cast %325 : vector<1x32x32xf32> to vector<32x32xf32>
    %cst_122 = arith.constant dense<0.000000e+00> : vector<16x32xf32>
    %327 = tpu.matmul %0, %326, %cst_122 {dimension_numbers = #tpu.dot_dimension_numbers<[1], [0], [0], [1], [0, 0, 1, 1], [], []>} : vector<16x32xf32>, vector<32x32xf32>, vector<16x32xf32> -> vector<16x32xf32>
    %c2_123 = arith.constant 2 : index
    %c0_124 = arith.constant 0 : index
    %c0_125 = arith.constant 0 : index
    %328 = vector.load %arg6[%c2_123, %c0_124, %c0_125] : memref<4x1x32xf32, #tpu.memory_space<vmem>>, vector<1x1x32xf32>
    %329 = vector.shape_cast %328 : vector<1x1x32xf32> to vector<1x32xf32>
    %330 = vector.broadcast %329 : vector<1x32xf32> to vector<16x32xf32>
    %331 = arith.addf %327, %330 : vector<16x32xf32>
    %c3_126 = arith.constant 3 : index
    %c0_127 = arith.constant 0 : index
    %c0_128 = arith.constant 0 : index
    %332 = vector.load %arg4[%c3_126, %c0_127, %c0_128] : memref<4x32x32xf32, #tpu.memory_space<vmem>>, vector<1x32x32xf32>
    %333 = vector.shape_cast %332 : vector<1x32x32xf32> to vector<32x32xf32>
    %cst_129 = arith.constant dense<0.000000e+00> : vector<16x32xf32>
    %334 = tpu.matmul %0, %333, %cst_129 {dimension_numbers = #tpu.dot_dimension_numbers<[1], [0], [0], [1], [0, 0, 1, 1], [], []>} : vector<16x32xf32>, vector<32x32xf32>, vector<16x32xf32> -> vector<16x32xf32>
    %c3_130 = arith.constant 3 : index
    %c0_131 = arith.constant 0 : index
    %c0_132 = arith.constant 0 : index
    %335 = vector.load %arg6[%c3_130, %c0_131, %c0_132] : memref<4x1x32xf32, #tpu.memory_space<vmem>>, vector<1x1x32xf32>
    %336 = vector.shape_cast %335 : vector<1x1x32xf32> to vector<1x32xf32>
    %337 = vector.broadcast %336 : vector<1x32xf32> to vector<16x32xf32>
    %338 = arith.addf %334, %337 : vector<16x32xf32>
    %c0_133 = arith.constant 0 : index
    %c0_134 = arith.constant 0 : index
    %c0_135 = arith.constant 0 : index
    %339 = vector.load %arg5[%c0_133, %c0_134, %c0_135] : memref<4x32x32xf32, #tpu.memory_space<vmem>>, vector<1x32x32xf32>
    %340 = vector.shape_cast %339 : vector<1x32x32xf32> to vector<32x32xf32>
    %c1_136 = arith.constant 1 : index
    %c0_137 = arith.constant 0 : index
    %c0_138 = arith.constant 0 : index
    %341 = vector.load %arg5[%c1_136, %c0_137, %c0_138] : memref<4x32x32xf32, #tpu.memory_space<vmem>>, vector<1x32x32xf32>
    %342 = vector.shape_cast %341 : vector<1x32x32xf32> to vector<32x32xf32>
    %c2_139 = arith.constant 2 : index
    %c0_140 = arith.constant 0 : index
    %c0_141 = arith.constant 0 : index
    %343 = vector.load %arg5[%c2_139, %c0_140, %c0_141] : memref<4x32x32xf32, #tpu.memory_space<vmem>>, vector<1x32x32xf32>
    %344 = vector.shape_cast %343 : vector<1x32x32xf32> to vector<32x32xf32>
    %c3_142 = arith.constant 3 : index
    %c0_143 = arith.constant 0 : index
    %c0_144 = arith.constant 0 : index
    %345 = vector.load %arg5[%c3_142, %c0_143, %c0_144] : memref<4x32x32xf32, #tpu.memory_space<vmem>>, vector<1x32x32xf32>
    %346 = vector.shape_cast %345 : vector<1x32x32xf32> to vector<32x32xf32>
    %cst_145 = arith.constant 0.000000e+00 : f32
    %347 = vector.broadcast %cst_145 : f32 to vector<2x32xf32>
    %cst_146 = arith.constant 0.000000e+00 : f32
    %348 = vector.broadcast %cst_146 : f32 to vector<2x32xf32>
    %349 = vector.extract_strided_slice %317 {offsets = [14, 0], sizes = [2, 32], strides = [1, 1]} : vector<16x32xf32> to vector<2x32xf32>
    %cst_147 = arith.constant dense<0.000000e+00> : vector<2x32xf32>
    %350 = tpu.matmul %347, %340, %cst_147 {dimension_numbers = #tpu.dot_dimension_numbers<[1], [0], [0], [1], [0, 0, 1, 1], [], []>} : vector<2x32xf32>, vector<32x32xf32>, vector<2x32xf32> -> vector<2x32xf32>
    %351 = arith.addf %349, %350 : vector<2x32xf32>
    %352 = vector.extract_strided_slice %324 {offsets = [14, 0], sizes = [2, 32], strides = [1, 1]} : vector<16x32xf32> to vector<2x32xf32>
    %cst_148 = arith.constant dense<0.000000e+00> : vector<2x32xf32>
    %353 = tpu.matmul %347, %342, %cst_148 {dimension_numbers = #tpu.dot_dimension_numbers<[1], [0], [0], [1], [0, 0, 1, 1], [], []>} : vector<2x32xf32>, vector<32x32xf32>, vector<2x32xf32> -> vector<2x32xf32>
    %354 = arith.addf %352, %353 : vector<2x32xf32>
    %355 = vector.extract_strided_slice %331 {offsets = [14, 0], sizes = [2, 32], strides = [1, 1]} : vector<16x32xf32> to vector<2x32xf32>
    %cst_149 = arith.constant dense<0.000000e+00> : vector<2x32xf32>
    %356 = tpu.matmul %347, %344, %cst_149 {dimension_numbers = #tpu.dot_dimension_numbers<[1], [0], [0], [1], [0, 0, 1, 1], [], []>} : vector<2x32xf32>, vector<32x32xf32>, vector<2x32xf32> -> vector<2x32xf32>
    %357 = arith.addf %355, %356 : vector<2x32xf32>
    %358 = vector.extract_strided_slice %338 {offsets = [14, 0], sizes = [2, 32], strides = [1, 1]} : vector<16x32xf32> to vector<2x32xf32>
    %cst_150 = arith.constant dense<0.000000e+00> : vector<2x32xf32>
    %359 = tpu.matmul %347, %346, %cst_150 {dimension_numbers = #tpu.dot_dimension_numbers<[1], [0], [0], [1], [0, 0, 1, 1], [], []>} : vector<2x32xf32>, vector<32x32xf32>, vector<2x32xf32> -> vector<2x32xf32>
    %360 = arith.addf %358, %359 : vector<2x32xf32>
    %361 = arith.negf %354 : vector<2x32xf32>
    %362 = math.exp %361 : vector<2x32xf32>
    %cst_151 = arith.constant 1.000000e+00 : f32
    %363 = vector.broadcast %cst_151 : f32 to vector<2x32xf32>
    %364 = arith.addf %363, %362 : vector<2x32xf32>
    %365 = arith.divf %363, %364 : vector<2x32xf32>
    %366 = arith.mulf %365, %348 : vector<2x32xf32>
    %367 = arith.negf %351 : vector<2x32xf32>
    %368 = math.exp %367 : vector<2x32xf32>
    %cst_152 = arith.constant 1.000000e+00 : f32
    %369 = vector.broadcast %cst_152 : f32 to vector<2x32xf32>
    %370 = arith.addf %369, %368 : vector<2x32xf32>
    %371 = arith.divf %369, %370 : vector<2x32xf32>
    %372 = math.tanh %357 : vector<2x32xf32>
    %373 = arith.mulf %371, %372 : vector<2x32xf32>
    %374 = arith.addf %366, %373 : vector<2x32xf32>
    %375 = arith.negf %360 : vector<2x32xf32>
    %376 = math.exp %375 : vector<2x32xf32>
    %cst_153 = arith.constant 1.000000e+00 : f32
    %377 = vector.broadcast %cst_153 : f32 to vector<2x32xf32>
    %378 = arith.addf %377, %376 : vector<2x32xf32>
    %379 = arith.divf %377, %378 : vector<2x32xf32>
    %380 = math.tanh %374 : vector<2x32xf32>
    %381 = arith.mulf %379, %380 : vector<2x32xf32>
    %c14_154 = arith.constant 14 : index
    %c0_155 = arith.constant 0 : index
    %382 = vector.load %arg12[%c14_154, %c0_155] : memref<16x32xf32, #tpu.memory_space<vmem>>, vector<2x32xf32>
    tpu.vector_store %arg12[%c14_154, %c0_155], %381 {strides = array<i32>} : memref<16x32xf32, #tpu.memory_space<vmem>>, vector<2x32xf32>,
    %383 = vector.extract_strided_slice %317 {offsets = [12, 0], sizes = [2, 32], strides = [1, 1]} : vector<16x32xf32> to vector<2x32xf32>
    %cst_156 = arith.constant dense<0.000000e+00> : vector<2x32xf32>
    %384 = tpu.matmul %381, %340, %cst_156 {dimension_numbers = #tpu.dot_dimension_numbers<[1], [0], [0], [1], [0, 0, 1, 1], [], []>} : vector<2x32xf32>, vector<32x32xf32>, vector<2x32xf32> -> vector<2x32xf32>
    %385 = arith.addf %383, %384 : vector<2x32xf32>
    %386 = vector.extract_strided_slice %324 {offsets = [12, 0], sizes = [2, 32], strides = [1, 1]} : vector<16x32xf32> to vector<2x32xf32>
    %cst_157 = arith.constant dense<0.000000e+00> : vector<2x32xf32>
    %387 = tpu.matmul %381, %342, %cst_157 {dimension_numbers = #tpu.dot_dimension_numbers<[1], [0], [0], [1], [0, 0, 1, 1], [], []>} : vector<2x32xf32>, vector<32x32xf32>, vector<2x32xf32> -> vector<2x32xf32>
    %388 = arith.addf %386, %387 : vector<2x32xf32>
    %389 = vector.extract_strided_slice %331 {offsets = [12, 0], sizes = [2, 32], strides = [1, 1]} : vector<16x32xf32> to vector<2x32xf32>
    %cst_158 = arith.constant dense<0.000000e+00> : vector<2x32xf32>
    %390 = tpu.matmul %381, %344, %cst_158 {dimension_numbers = #tpu.dot_dimension_numbers<[1], [0], [0], [1], [0, 0, 1, 1], [], []>} : vector<2x32xf32>, vector<32x32xf32>, vector<2x32xf32> -> vector<2x32xf32>
    %391 = arith.addf %389, %390 : vector<2x32xf32>
    %392 = vector.extract_strided_slice %338 {offsets = [12, 0], sizes = [2, 32], strides = [1, 1]} : vector<16x32xf32> to vector<2x32xf32>
    %cst_159 = arith.constant dense<0.000000e+00> : vector<2x32xf32>
    %393 = tpu.matmul %381, %346, %cst_159 {dimension_numbers = #tpu.dot_dimension_numbers<[1], [0], [0], [1], [0, 0, 1, 1], [], []>} : vector<2x32xf32>, vector<32x32xf32>, vector<2x32xf32> -> vector<2x32xf32>
    %394 = arith.addf %392, %393 : vector<2x32xf32>
    %395 = arith.negf %388 : vector<2x32xf32>
    %396 = math.exp %395 : vector<2x32xf32>
    %cst_160 = arith.constant 1.000000e+00 : f32
    %397 = vector.broadcast %cst_160 : f32 to vector<2x32xf32>
    %398 = arith.addf %397, %396 : vector<2x32xf32>
    %399 = arith.divf %397, %398 : vector<2x32xf32>
    %400 = arith.mulf %399, %374 : vector<2x32xf32>
    %401 = arith.negf %385 : vector<2x32xf32>
    %402 = math.exp %401 : vector<2x32xf32>
    %cst_161 = arith.constant 1.000000e+00 : f32
    %403 = vector.broadcast %cst_161 : f32 to vector<2x32xf32>
    %404 = arith.addf %403, %402 : vector<2x32xf32>
    %405 = arith.divf %403, %404 : vector<2x32xf32>
    %406 = math.tanh %391 : vector<2x32xf32>
    %407 = arith.mulf %405, %406 : vector<2x32xf32>
    %408 = arith.addf %400, %407 : vector<2x32xf32>
    %409 = arith.negf %394 : vector<2x32xf32>
    %410 = math.exp %409 : vector<2x32xf32>
    %cst_162 = arith.constant 1.000000e+00 : f32
    %411 = vector.broadcast %cst_162 : f32 to vector<2x32xf32>
    %412 = arith.addf %411, %410 : vector<2x32xf32>
    %413 = arith.divf %411, %412 : vector<2x32xf32>
    %414 = math.tanh %408 : vector<2x32xf32>
    %415 = arith.mulf %413, %414 : vector<2x32xf32>
    %c12_163 = arith.constant 12 : index
    %c0_164 = arith.constant 0 : index
    %416 = vector.load %arg12[%c12_163, %c0_164] : memref<16x32xf32, #tpu.memory_space<vmem>>, vector<2x32xf32>
    tpu.vector_store %arg12[%c12_163, %c0_164], %415 {strides = array<i32>} : memref<16x32xf32, #tpu.memory_space<vmem>>, vector<2x32xf32>,
    %417 = vector.extract_strided_slice %317 {offsets = [10, 0], sizes = [2, 32], strides = [1, 1]} : vector<16x32xf32> to vector<2x32xf32>
    %cst_165 = arith.constant dense<0.000000e+00> : vector<2x32xf32>
    %418 = tpu.matmul %415, %340, %cst_165 {dimension_numbers = #tpu.dot_dimension_numbers<[1], [0], [0], [1], [0, 0, 1, 1], [], []>} : vector<2x32xf32>, vector<32x32xf32>, vector<2x32xf32> -> vector<2x32xf32>
    %419 = arith.addf %417, %418 : vector<2x32xf32>
    %420 = vector.extract_strided_slice %324 {offsets = [10, 0], sizes = [2, 32], strides = [1, 1]} : vector<16x32xf32> to vector<2x32xf32>
    %cst_166 = arith.constant dense<0.000000e+00> : vector<2x32xf32>
    %421 = tpu.matmul %415, %342, %cst_166 {dimension_numbers = #tpu.dot_dimension_numbers<[1], [0], [0], [1], [0, 0, 1, 1], [], []>} : vector<2x32xf32>, vector<32x32xf32>, vector<2x32xf32> -> vector<2x32xf32>
    %422 = arith.addf %420, %421 : vector<2x32xf32>
    %423 = vector.extract_strided_slice %331 {offsets = [10, 0], sizes = [2, 32], strides = [1, 1]} : vector<16x32xf32> to vector<2x32xf32>
    %cst_167 = arith.constant dense<0.000000e+00> : vector<2x32xf32>
    %424 = tpu.matmul %415, %344, %cst_167 {dimension_numbers = #tpu.dot_dimension_numbers<[1], [0], [0], [1], [0, 0, 1, 1], [], []>} : vector<2x32xf32>, vector<32x32xf32>, vector<2x32xf32> -> vector<2x32xf32>
    %425 = arith.addf %423, %424 : vector<2x32xf32>
    %426 = vector.extract_strided_slice %338 {offsets = [10, 0], sizes = [2, 32], strides = [1, 1]} : vector<16x32xf32> to vector<2x32xf32>
    %cst_168 = arith.constant dense<0.000000e+00> : vector<2x32xf32>
    %427 = tpu.matmul %415, %346, %cst_168 {dimension_numbers = #tpu.dot_dimension_numbers<[1], [0], [0], [1], [0, 0, 1, 1], [], []>} : vector<2x32xf32>, vector<32x32xf32>, vector<2x32xf32> -> vector<2x32xf32>
    %428 = arith.addf %426, %427 : vector<2x32xf32>
    %429 = arith.negf %422 : vector<2x32xf32>
    %430 = math.exp %429 : vector<2x32xf32>
    %cst_169 = arith.constant 1.000000e+00 : f32
    %431 = vector.broadcast %cst_169 : f32 to vector<2x32xf32>
    %432 = arith.addf %431, %430 : vector<2x32xf32>
    %433 = arith.divf %431, %432 : vector<2x32xf32>
    %434 = arith.mulf %433, %408 : vector<2x32xf32>
    %435 = arith.negf %419 : vector<2x32xf32>
    %436 = math.exp %435 : vector<2x32xf32>
    %cst_170 = arith.constant 1.000000e+00 : f32
    %437 = vector.broadcast %cst_170 : f32 to vector<2x32xf32>
    %438 = arith.addf %437, %436 : vector<2x32xf32>
    %439 = arith.divf %437, %438 : vector<2x32xf32>
    %440 = math.tanh %425 : vector<2x32xf32>
    %441 = arith.mulf %439, %440 : vector<2x32xf32>
    %442 = arith.addf %434, %441 : vector<2x32xf32>
    %443 = arith.negf %428 : vector<2x32xf32>
    %444 = math.exp %443 : vector<2x32xf32>
    %cst_171 = arith.constant 1.000000e+00 : f32
    %445 = vector.broadcast %cst_171 : f32 to vector<2x32xf32>
    %446 = arith.addf %445, %444 : vector<2x32xf32>
    %447 = arith.divf %445, %446 : vector<2x32xf32>
    %448 = math.tanh %442 : vector<2x32xf32>
    %449 = arith.mulf %447, %448 : vector<2x32xf32>
    %c10_172 = arith.constant 10 : index
    %c0_173 = arith.constant 0 : index
    %450 = vector.load %arg12[%c10_172, %c0_173] : memref<16x32xf32, #tpu.memory_space<vmem>>, vector<2x32xf32>
    tpu.vector_store %arg12[%c10_172, %c0_173], %449 {strides = array<i32>} : memref<16x32xf32, #tpu.memory_space<vmem>>, vector<2x32xf32>,
    %451 = vector.extract_strided_slice %317 {offsets = [8, 0], sizes = [2, 32], strides = [1, 1]} : vector<16x32xf32> to vector<2x32xf32>
    %cst_174 = arith.constant dense<0.000000e+00> : vector<2x32xf32>
    %452 = tpu.matmul %449, %340, %cst_174 {dimension_numbers = #tpu.dot_dimension_numbers<[1], [0], [0], [1], [0, 0, 1, 1], [], []>} : vector<2x32xf32>, vector<32x32xf32>, vector<2x32xf32> -> vector<2x32xf32>
    %453 = arith.addf %451, %452 : vector<2x32xf32>
    %454 = vector.extract_strided_slice %324 {offsets = [8, 0], sizes = [2, 32], strides = [1, 1]} : vector<16x32xf32> to vector<2x32xf32>
    %cst_175 = arith.constant dense<0.000000e+00> : vector<2x32xf32>
    %455 = tpu.matmul %449, %342, %cst_175 {dimension_numbers = #tpu.dot_dimension_numbers<[1], [0], [0], [1], [0, 0, 1, 1], [], []>} : vector<2x32xf32>, vector<32x32xf32>, vector<2x32xf32> -> vector<2x32xf32>
    %456 = arith.addf %454, %455 : vector<2x32xf32>
    %457 = vector.extract_strided_slice %331 {offsets = [8, 0], sizes = [2, 32], strides = [1, 1]} : vector<16x32xf32> to vector<2x32xf32>
    %cst_176 = arith.constant dense<0.000000e+00> : vector<2x32xf32>
    %458 = tpu.matmul %449, %344, %cst_176 {dimension_numbers = #tpu.dot_dimension_numbers<[1], [0], [0], [1], [0, 0, 1, 1], [], []>} : vector<2x32xf32>, vector<32x32xf32>, vector<2x32xf32> -> vector<2x32xf32>
    %459 = arith.addf %457, %458 : vector<2x32xf32>
    %460 = vector.extract_strided_slice %338 {offsets = [8, 0], sizes = [2, 32], strides = [1, 1]} : vector<16x32xf32> to vector<2x32xf32>
    %cst_177 = arith.constant dense<0.000000e+00> : vector<2x32xf32>
    %461 = tpu.matmul %449, %346, %cst_177 {dimension_numbers = #tpu.dot_dimension_numbers<[1], [0], [0], [1], [0, 0, 1, 1], [], []>} : vector<2x32xf32>, vector<32x32xf32>, vector<2x32xf32> -> vector<2x32xf32>
    %462 = arith.addf %460, %461 : vector<2x32xf32>
    %463 = arith.negf %456 : vector<2x32xf32>
    %464 = math.exp %463 : vector<2x32xf32>
    %cst_178 = arith.constant 1.000000e+00 : f32
    %465 = vector.broadcast %cst_178 : f32 to vector<2x32xf32>
    %466 = arith.addf %465, %464 : vector<2x32xf32>
    %467 = arith.divf %465, %466 : vector<2x32xf32>
    %468 = arith.mulf %467, %442 : vector<2x32xf32>
    %469 = arith.negf %453 : vector<2x32xf32>
    %470 = math.exp %469 : vector<2x32xf32>
    %cst_179 = arith.constant 1.000000e+00 : f32
    %471 = vector.broadcast %cst_179 : f32 to vector<2x32xf32>
    %472 = arith.addf %471, %470 : vector<2x32xf32>
    %473 = arith.divf %471, %472 : vector<2x32xf32>
    %474 = math.tanh %459 : vector<2x32xf32>
    %475 = arith.mulf %473, %474 : vector<2x32xf32>
    %476 = arith.addf %468, %475 : vector<2x32xf32>
    %477 = arith.negf %462 : vector<2x32xf32>
    %478 = math.exp %477 : vector<2x32xf32>
    %cst_180 = arith.constant 1.000000e+00 : f32
    %479 = vector.broadcast %cst_180 : f32 to vector<2x32xf32>
    %480 = arith.addf %479, %478 : vector<2x32xf32>
    %481 = arith.divf %479, %480 : vector<2x32xf32>
    %482 = math.tanh %476 : vector<2x32xf32>
    %483 = arith.mulf %481, %482 : vector<2x32xf32>
    %c8_181 = arith.constant 8 : index
    %c0_182 = arith.constant 0 : index
    %484 = vector.load %arg12[%c8_181, %c0_182] : memref<16x32xf32, #tpu.memory_space<vmem>>, vector<2x32xf32>
    tpu.vector_store %arg12[%c8_181, %c0_182], %483 {strides = array<i32>} : memref<16x32xf32, #tpu.memory_space<vmem>>, vector<2x32xf32>,
    %485 = vector.extract_strided_slice %317 {offsets = [6, 0], sizes = [2, 32], strides = [1, 1]} : vector<16x32xf32> to vector<2x32xf32>
    %cst_183 = arith.constant dense<0.000000e+00> : vector<2x32xf32>
    %486 = tpu.matmul %483, %340, %cst_183 {dimension_numbers = #tpu.dot_dimension_numbers<[1], [0], [0], [1], [0, 0, 1, 1], [], []>} : vector<2x32xf32>, vector<32x32xf32>, vector<2x32xf32> -> vector<2x32xf32>
    %487 = arith.addf %485, %486 : vector<2x32xf32>
    %488 = vector.extract_strided_slice %324 {offsets = [6, 0], sizes = [2, 32], strides = [1, 1]} : vector<16x32xf32> to vector<2x32xf32>
    %cst_184 = arith.constant dense<0.000000e+00> : vector<2x32xf32>
    %489 = tpu.matmul %483, %342, %cst_184 {dimension_numbers = #tpu.dot_dimension_numbers<[1], [0], [0], [1], [0, 0, 1, 1], [], []>} : vector<2x32xf32>, vector<32x32xf32>, vector<2x32xf32> -> vector<2x32xf32>
    %490 = arith.addf %488, %489 : vector<2x32xf32>
    %491 = vector.extract_strided_slice %331 {offsets = [6, 0], sizes = [2, 32], strides = [1, 1]} : vector<16x32xf32> to vector<2x32xf32>
    %cst_185 = arith.constant dense<0.000000e+00> : vector<2x32xf32>
    %492 = tpu.matmul %483, %344, %cst_185 {dimension_numbers = #tpu.dot_dimension_numbers<[1], [0], [0], [1], [0, 0, 1, 1], [], []>} : vector<2x32xf32>, vector<32x32xf32>, vector<2x32xf32> -> vector<2x32xf32>
    %493 = arith.addf %491, %492 : vector<2x32xf32>
    %494 = vector.extract_strided_slice %338 {offsets = [6, 0], sizes = [2, 32], strides = [1, 1]} : vector<16x32xf32> to vector<2x32xf32>
    %cst_186 = arith.constant dense<0.000000e+00> : vector<2x32xf32>
    %495 = tpu.matmul %483, %346, %cst_186 {dimension_numbers = #tpu.dot_dimension_numbers<[1], [0], [0], [1], [0, 0, 1, 1], [], []>} : vector<2x32xf32>, vector<32x32xf32>, vector<2x32xf32> -> vector<2x32xf32>
    %496 = arith.addf %494, %495 : vector<2x32xf32>
    %497 = arith.negf %490 : vector<2x32xf32>
    %498 = math.exp %497 : vector<2x32xf32>
    %cst_187 = arith.constant 1.000000e+00 : f32
    %499 = vector.broadcast %cst_187 : f32 to vector<2x32xf32>
    %500 = arith.addf %499, %498 : vector<2x32xf32>
    %501 = arith.divf %499, %500 : vector<2x32xf32>
    %502 = arith.mulf %501, %476 : vector<2x32xf32>
    %503 = arith.negf %487 : vector<2x32xf32>
    %504 = math.exp %503 : vector<2x32xf32>
    %cst_188 = arith.constant 1.000000e+00 : f32
    %505 = vector.broadcast %cst_188 : f32 to vector<2x32xf32>
    %506 = arith.addf %505, %504 : vector<2x32xf32>
    %507 = arith.divf %505, %506 : vector<2x32xf32>
    %508 = math.tanh %493 : vector<2x32xf32>
    %509 = arith.mulf %507, %508 : vector<2x32xf32>
    %510 = arith.addf %502, %509 : vector<2x32xf32>
    %511 = arith.negf %496 : vector<2x32xf32>
    %512 = math.exp %511 : vector<2x32xf32>
    %cst_189 = arith.constant 1.000000e+00 : f32
    %513 = vector.broadcast %cst_189 : f32 to vector<2x32xf32>
    %514 = arith.addf %513, %512 : vector<2x32xf32>
    %515 = arith.divf %513, %514 : vector<2x32xf32>
    %516 = math.tanh %510 : vector<2x32xf32>
    %517 = arith.mulf %515, %516 : vector<2x32xf32>
    %c6_190 = arith.constant 6 : index
    %c0_191 = arith.constant 0 : index
    %518 = vector.load %arg12[%c6_190, %c0_191] : memref<16x32xf32, #tpu.memory_space<vmem>>, vector<2x32xf32>
    tpu.vector_store %arg12[%c6_190, %c0_191], %517 {strides = array<i32>} : memref<16x32xf32, #tpu.memory_space<vmem>>, vector<2x32xf32>,
    %519 = vector.extract_strided_slice %317 {offsets = [4, 0], sizes = [2, 32], strides = [1, 1]} : vector<16x32xf32> to vector<2x32xf32>
    %cst_192 = arith.constant dense<0.000000e+00> : vector<2x32xf32>
    %520 = tpu.matmul %517, %340, %cst_192 {dimension_numbers = #tpu.dot_dimension_numbers<[1], [0], [0], [1], [0, 0, 1, 1], [], []>} : vector<2x32xf32>, vector<32x32xf32>, vector<2x32xf32> -> vector<2x32xf32>
    %521 = arith.addf %519, %520 : vector<2x32xf32>
    %522 = vector.extract_strided_slice %324 {offsets = [4, 0], sizes = [2, 32], strides = [1, 1]} : vector<16x32xf32> to vector<2x32xf32>
    %cst_193 = arith.constant dense<0.000000e+00> : vector<2x32xf32>
    %523 = tpu.matmul %517, %342, %cst_193 {dimension_numbers = #tpu.dot_dimension_numbers<[1], [0], [0], [1], [0, 0, 1, 1], [], []>} : vector<2x32xf32>, vector<32x32xf32>, vector<2x32xf32> -> vector<2x32xf32>
    %524 = arith.addf %522, %523 : vector<2x32xf32>
    %525 = vector.extract_strided_slice %331 {offsets = [4, 0], sizes = [2, 32], strides = [1, 1]} : vector<16x32xf32> to vector<2x32xf32>
    %cst_194 = arith.constant dense<0.000000e+00> : vector<2x32xf32>
    %526 = tpu.matmul %517, %344, %cst_194 {dimension_numbers = #tpu.dot_dimension_numbers<[1], [0], [0], [1], [0, 0, 1, 1], [], []>} : vector<2x32xf32>, vector<32x32xf32>, vector<2x32xf32> -> vector<2x32xf32>
    %527 = arith.addf %525, %526 : vector<2x32xf32>
    %528 = vector.extract_strided_slice %338 {offsets = [4, 0], sizes = [2, 32], strides = [1, 1]} : vector<16x32xf32> to vector<2x32xf32>
    %cst_195 = arith.constant dense<0.000000e+00> : vector<2x32xf32>
    %529 = tpu.matmul %517, %346, %cst_195 {dimension_numbers = #tpu.dot_dimension_numbers<[1], [0], [0], [1], [0, 0, 1, 1], [], []>} : vector<2x32xf32>, vector<32x32xf32>, vector<2x32xf32> -> vector<2x32xf32>
    %530 = arith.addf %528, %529 : vector<2x32xf32>
    %531 = arith.negf %524 : vector<2x32xf32>
    %532 = math.exp %531 : vector<2x32xf32>
    %cst_196 = arith.constant 1.000000e+00 : f32
    %533 = vector.broadcast %cst_196 : f32 to vector<2x32xf32>
    %534 = arith.addf %533, %532 : vector<2x32xf32>
    %535 = arith.divf %533, %534 : vector<2x32xf32>
    %536 = arith.mulf %535, %510 : vector<2x32xf32>
    %537 = arith.negf %521 : vector<2x32xf32>
    %538 = math.exp %537 : vector<2x32xf32>
    %cst_197 = arith.constant 1.000000e+00 : f32
    %539 = vector.broadcast %cst_197 : f32 to vector<2x32xf32>
    %540 = arith.addf %539, %538 : vector<2x32xf32>
    %541 = arith.divf %539, %540 : vector<2x32xf32>
    %542 = math.tanh %527 : vector<2x32xf32>
    %543 = arith.mulf %541, %542 : vector<2x32xf32>
    %544 = arith.addf %536, %543 : vector<2x32xf32>
    %545 = arith.negf %530 : vector<2x32xf32>
    %546 = math.exp %545 : vector<2x32xf32>
    %cst_198 = arith.constant 1.000000e+00 : f32
    %547 = vector.broadcast %cst_198 : f32 to vector<2x32xf32>
    %548 = arith.addf %547, %546 : vector<2x32xf32>
    %549 = arith.divf %547, %548 : vector<2x32xf32>
    %550 = math.tanh %544 : vector<2x32xf32>
    %551 = arith.mulf %549, %550 : vector<2x32xf32>
    %c4_199 = arith.constant 4 : index
    %c0_200 = arith.constant 0 : index
    %552 = vector.load %arg12[%c4_199, %c0_200] : memref<16x32xf32, #tpu.memory_space<vmem>>, vector<2x32xf32>
    tpu.vector_store %arg12[%c4_199, %c0_200], %551 {strides = array<i32>} : memref<16x32xf32, #tpu.memory_space<vmem>>, vector<2x32xf32>,
    %553 = vector.extract_strided_slice %317 {offsets = [2, 0], sizes = [2, 32], strides = [1, 1]} : vector<16x32xf32> to vector<2x32xf32>
    %cst_201 = arith.constant dense<0.000000e+00> : vector<2x32xf32>
    %554 = tpu.matmul %551, %340, %cst_201 {dimension_numbers = #tpu.dot_dimension_numbers<[1], [0], [0], [1], [0, 0, 1, 1], [], []>} : vector<2x32xf32>, vector<32x32xf32>, vector<2x32xf32> -> vector<2x32xf32>
    %555 = arith.addf %553, %554 : vector<2x32xf32>
    %556 = vector.extract_strided_slice %324 {offsets = [2, 0], sizes = [2, 32], strides = [1, 1]} : vector<16x32xf32> to vector<2x32xf32>
    %cst_202 = arith.constant dense<0.000000e+00> : vector<2x32xf32>
    %557 = tpu.matmul %551, %342, %cst_202 {dimension_numbers = #tpu.dot_dimension_numbers<[1], [0], [0], [1], [0, 0, 1, 1], [], []>} : vector<2x32xf32>, vector<32x32xf32>, vector<2x32xf32> -> vector<2x32xf32>
    %558 = arith.addf %556, %557 : vector<2x32xf32>
    %559 = vector.extract_strided_slice %331 {offsets = [2, 0], sizes = [2, 32], strides = [1, 1]} : vector<16x32xf32> to vector<2x32xf32>
    %cst_203 = arith.constant dense<0.000000e+00> : vector<2x32xf32>
    %560 = tpu.matmul %551, %344, %cst_203 {dimension_numbers = #tpu.dot_dimension_numbers<[1], [0], [0], [1], [0, 0, 1, 1], [], []>} : vector<2x32xf32>, vector<32x32xf32>, vector<2x32xf32> -> vector<2x32xf32>
    %561 = arith.addf %559, %560 : vector<2x32xf32>
    %562 = vector.extract_strided_slice %338 {offsets = [2, 0], sizes = [2, 32], strides = [1, 1]} : vector<16x32xf32> to vector<2x32xf32>
    %cst_204 = arith.constant dense<0.000000e+00> : vector<2x32xf32>
    %563 = tpu.matmul %551, %346, %cst_204 {dimension_numbers = #tpu.dot_dimension_numbers<[1], [0], [0], [1], [0, 0, 1, 1], [], []>} : vector<2x32xf32>, vector<32x32xf32>, vector<2x32xf32> -> vector<2x32xf32>
    %564 = arith.addf %562, %563 : vector<2x32xf32>
    %565 = arith.negf %558 : vector<2x32xf32>
    %566 = math.exp %565 : vector<2x32xf32>
    %cst_205 = arith.constant 1.000000e+00 : f32
    %567 = vector.broadcast %cst_205 : f32 to vector<2x32xf32>
    %568 = arith.addf %567, %566 : vector<2x32xf32>
    %569 = arith.divf %567, %568 : vector<2x32xf32>
    %570 = arith.mulf %569, %544 : vector<2x32xf32>
    %571 = arith.negf %555 : vector<2x32xf32>
    %572 = math.exp %571 : vector<2x32xf32>
    %cst_206 = arith.constant 1.000000e+00 : f32
    %573 = vector.broadcast %cst_206 : f32 to vector<2x32xf32>
    %574 = arith.addf %573, %572 : vector<2x32xf32>
    %575 = arith.divf %573, %574 : vector<2x32xf32>
    %576 = math.tanh %561 : vector<2x32xf32>
    %577 = arith.mulf %575, %576 : vector<2x32xf32>
    %578 = arith.addf %570, %577 : vector<2x32xf32>
    %579 = arith.negf %564 : vector<2x32xf32>
    %580 = math.exp %579 : vector<2x32xf32>
    %cst_207 = arith.constant 1.000000e+00 : f32
    %581 = vector.broadcast %cst_207 : f32 to vector<2x32xf32>
    %582 = arith.addf %581, %580 : vector<2x32xf32>
    %583 = arith.divf %581, %582 : vector<2x32xf32>
    %584 = math.tanh %578 : vector<2x32xf32>
    %585 = arith.mulf %583, %584 : vector<2x32xf32>
    %c2_208 = arith.constant 2 : index
    %c0_209 = arith.constant 0 : index
    %586 = vector.load %arg12[%c2_208, %c0_209] : memref<16x32xf32, #tpu.memory_space<vmem>>, vector<2x32xf32>
    tpu.vector_store %arg12[%c2_208, %c0_209], %585 {strides = array<i32>} : memref<16x32xf32, #tpu.memory_space<vmem>>, vector<2x32xf32>,
    %587 = vector.extract_strided_slice %317 {offsets = [0, 0], sizes = [2, 32], strides = [1, 1]} : vector<16x32xf32> to vector<2x32xf32>
    %cst_210 = arith.constant dense<0.000000e+00> : vector<2x32xf32>
    %588 = tpu.matmul %585, %340, %cst_210 {dimension_numbers = #tpu.dot_dimension_numbers<[1], [0], [0], [1], [0, 0, 1, 1], [], []>} : vector<2x32xf32>, vector<32x32xf32>, vector<2x32xf32> -> vector<2x32xf32>
    %589 = arith.addf %587, %588 : vector<2x32xf32>
    %590 = vector.extract_strided_slice %324 {offsets = [0, 0], sizes = [2, 32], strides = [1, 1]} : vector<16x32xf32> to vector<2x32xf32>
    %cst_211 = arith.constant dense<0.000000e+00> : vector<2x32xf32>
    %591 = tpu.matmul %585, %342, %cst_211 {dimension_numbers = #tpu.dot_dimension_numbers<[1], [0], [0], [1], [0, 0, 1, 1], [], []>} : vector<2x32xf32>, vector<32x32xf32>, vector<2x32xf32> -> vector<2x32xf32>
    %592 = arith.addf %590, %591 : vector<2x32xf32>
    %593 = vector.extract_strided_slice %331 {offsets = [0, 0], sizes = [2, 32], strides = [1, 1]} : vector<16x32xf32> to vector<2x32xf32>
    %cst_212 = arith.constant dense<0.000000e+00> : vector<2x32xf32>
    %594 = tpu.matmul %585, %344, %cst_212 {dimension_numbers = #tpu.dot_dimension_numbers<[1], [0], [0], [1], [0, 0, 1, 1], [], []>} : vector<2x32xf32>, vector<32x32xf32>, vector<2x32xf32> -> vector<2x32xf32>
    %595 = arith.addf %593, %594 : vector<2x32xf32>
    %596 = vector.extract_strided_slice %338 {offsets = [0, 0], sizes = [2, 32], strides = [1, 1]} : vector<16x32xf32> to vector<2x32xf32>
    %cst_213 = arith.constant dense<0.000000e+00> : vector<2x32xf32>
    %597 = tpu.matmul %585, %346, %cst_213 {dimension_numbers = #tpu.dot_dimension_numbers<[1], [0], [0], [1], [0, 0, 1, 1], [], []>} : vector<2x32xf32>, vector<32x32xf32>, vector<2x32xf32> -> vector<2x32xf32>
    %598 = arith.addf %596, %597 : vector<2x32xf32>
    %599 = arith.negf %592 : vector<2x32xf32>
    %600 = math.exp %599 : vector<2x32xf32>
    %cst_214 = arith.constant 1.000000e+00 : f32
    %601 = vector.broadcast %cst_214 : f32 to vector<2x32xf32>
    %602 = arith.addf %601, %600 : vector<2x32xf32>
    %603 = arith.divf %601, %602 : vector<2x32xf32>
    %604 = arith.mulf %603, %578 : vector<2x32xf32>
    %605 = arith.negf %589 : vector<2x32xf32>
    %606 = math.exp %605 : vector<2x32xf32>
    %cst_215 = arith.constant 1.000000e+00 : f32
    %607 = vector.broadcast %cst_215 : f32 to vector<2x32xf32>
    %608 = arith.addf %607, %606 : vector<2x32xf32>
    %609 = arith.divf %607, %608 : vector<2x32xf32>
    %610 = math.tanh %595 : vector<2x32xf32>
    %611 = arith.mulf %609, %610 : vector<2x32xf32>
    %612 = arith.addf %604, %611 : vector<2x32xf32>
    %613 = arith.negf %598 : vector<2x32xf32>
    %614 = math.exp %613 : vector<2x32xf32>
    %cst_216 = arith.constant 1.000000e+00 : f32
    %615 = vector.broadcast %cst_216 : f32 to vector<2x32xf32>
    %616 = arith.addf %615, %614 : vector<2x32xf32>
    %617 = arith.divf %615, %616 : vector<2x32xf32>
    %618 = math.tanh %612 : vector<2x32xf32>
    %619 = arith.mulf %617, %618 : vector<2x32xf32>
    %c0_217 = arith.constant 0 : index
    %c0_218 = arith.constant 0 : index
    %620 = vector.load %arg12[%c0_217, %c0_218] : memref<16x32xf32, #tpu.memory_space<vmem>>, vector<2x32xf32>
    tpu.vector_store %arg12[%c0_217, %c0_218], %619 {strides = array<i32>} : memref<16x32xf32, #tpu.memory_space<vmem>>, vector<2x32xf32>,
    %c0_219 = arith.constant 0 : index
    %c0_220 = arith.constant 0 : index
    %621 = vector.load %arg11[%c0_219, %c0_220] : memref<16x32xf32, #tpu.memory_space<vmem>>, vector<16x32xf32>
    %c0_221 = arith.constant 0 : index
    %c0_222 = arith.constant 0 : index
    %622 = vector.load %arg7[%c0_221, %c0_222] : memref<32x16xf32, #tpu.memory_space<vmem>>, vector<32x16xf32>
    %cst_223 = arith.constant dense<0.000000e+00> : vector<16x16xf32>
    %623 = tpu.matmul %621, %622, %cst_223 {dimension_numbers = #tpu.dot_dimension_numbers<[1], [0], [0], [1], [0, 0, 1, 1], [], []>} : vector<16x32xf32>, vector<32x16xf32>, vector<16x16xf32> -> vector<16x16xf32>
    %c0_224 = arith.constant 0 : index
    %c0_225 = arith.constant 0 : index
    %624 = vector.load %arg12[%c0_224, %c0_225] : memref<16x32xf32, #tpu.memory_space<vmem>>, vector<16x32xf32>
    %c0_226 = arith.constant 0 : index
    %c0_227 = arith.constant 0 : index
    %625 = vector.load %arg8[%c0_226, %c0_227] : memref<32x16xf32, #tpu.memory_space<vmem>>, vector<32x16xf32>
    %cst_228 = arith.constant dense<0.000000e+00> : vector<16x16xf32>
    %626 = tpu.matmul %624, %625, %cst_228 {dimension_numbers = #tpu.dot_dimension_numbers<[1], [0], [0], [1], [0, 0, 1, 1], [], []>} : vector<16x32xf32>, vector<32x16xf32>, vector<16x16xf32> -> vector<16x16xf32>
    %627 = arith.addf %623, %626 : vector<16x16xf32>
    %c0_229 = arith.constant 0 : index
    %c0_230 = arith.constant 0 : index
    %628 = vector.load %arg9[%c0_229, %c0_230] : memref<1x16xf32, #tpu.memory_space<vmem>>, vector<1x16xf32>
    %629 = vector.broadcast %628 : vector<1x16xf32> to vector<16x16xf32>
    %630 = arith.addf %627, %629 : vector<16x16xf32>
    %cst_231 = arith.constant dense<0xFF800000> : vector<16xf32>
    %631 = vector.multi_reduction <maximumf>, %630, %cst_231 [1] : vector<16x16xf32> to vector<16xf32>
    %632 = vector.shape_cast %631 : vector<16xf32> to vector<16x1xf32>
    %633 = vector.broadcast %632 : vector<16x1xf32> to vector<16x16xf32>
    %634 = arith.subf %630, %633 : vector<16x16xf32>
    %635 = math.exp %634 : vector<16x16xf32>
    %cst_232 = arith.constant dense<0.000000e+00> : vector<16xf32>
    %636 = vector.multi_reduction <add>, %635, %cst_232 [1] : vector<16x16xf32> to vector<16xf32>
    %637 = vector.shape_cast %636 : vector<16xf32> to vector<16x1xf32>
    %638 = math.log %637 : vector<16x1xf32>
    %639 = vector.broadcast %638 : vector<16x1xf32> to vector<16x16xf32>
    %640 = arith.subf %634, %639 : vector<16x16xf32>
    %c0_233 = arith.constant 0 : index
    %c0_234 = arith.constant 0 : index
    %641 = vector.load %arg10[%c0_233, %c0_234] : memref<16x16xf32, #tpu.memory_space<vmem>>, vector<16x16xf32>
    tpu.vector_store %arg10[%c0_233, %c0_234], %640 {strides = array<i32>} : memref<16x16xf32, #tpu.memory_space<vmem>>, vector<16x16xf32>,
    return
  }
}

</mosaic_0001>

<bundles_post_ra>
// kernel: seq2seq_decoder_forward.1
= control target key start
LH: loop header
LB: loop body
LE: loop exit
PB: predicated region body
PF: predicated region fallthrough
CT: control target
= control target key end

     0   :  { %15 = vsyncpa [#allocation5], 0  ;;  %s9164_s0 = inlined_call_operand.vmem [shape: f32[16,32], index: 0, kind: input, shape index: {}]   ;;  %s9165_s1 = inlined_call_operand.hbm [shape: f32[4,32,32], index: 1, kind: input, shape index: {}]   ;;  %s9166_s2 = inlined_call_operand.hbm [shape: f32[4,32,32], index: 2, kind: input, shape index: {}]   ;;  %s9167_s3 = inlined_call_operand.vmem [shape: f32[4,1,32], index: 3, kind: input, shape index: {}]   ;;  %s9168_s4 = inlined_call_operand.hbm [shape: f32[4,32,32], index: 4, kind: input, shape index: {}]   ;;  %s9169_s5 = inlined_call_operand.hbm [shape: f32[4,32,32], index: 5, kind: input, shape index: {}]   ;;  %s9170_s6 = inlined_call_operand.vmem [shape: f32[4,1,32], index: 6, kind: input, shape index: {}]   ;;  %s9171_s7 = inlined_call_operand.vmem [shape: f32[32,16], index: 7, kind: input, shape index: {}]   ;;  %s9172_s8 = inlined_call_operand.vmem [shape: f32[32,16], index: 8, kind: input, shape index: {}]   ;;  %s9173_s9 = inlined_call_operand.vmem [shape: f32[1,16], index: 9, kind: input, shape index: {}]   ;;  %s9174_s10 = inlined_call_operand.hbm [shape: f32[16,16], index: 10, kind: output, shape index: {}]  }
   0x1   :  { %16 = vsyncpa [#allocation8], 0 }
   0x2   :  { %17 = vsyncpa [#allocation11], 0 }
   0x3   :  { %18 = vsyncpa [#allocation6], 0  ;;  %s8005_s13 = smov [#allocation7]   ;;  %s8006_s15 = smov [#allocation4]  }
   0x4   :  { %s38_s14 = sshll.u32 %s8005_s13, 4  ;;  %s26_s16 = sshll.u32 %s8006_s15, 4  ;;  %s39_s14 = int_to_ptr.vmem [resolvable:$true] %s38_s14  ;;  %s27_s16 = int_to_ptr.vmem [resolvable:$true] %s26_s16 }
   0x5   :  { %s7905_s17 = scalar_lea.vmem %s39_s14, 2048  ;;  %p7910_p1 = scmp.lt.s32.totalorder %s39_s14, %s39_s14 }
   0x6   :  { %p7906_p0 = scmp.ne.s32.totalorder %s39_s14, %s7905_s17  ;;  %p7911_p2 = scmp.lt.s32.totalorder %s7905_s17, %s7905_s17 }
   0x8   :  { %p7912_p3 = por %p7911_p2, %p7910_p1 }
   0xa   :  { %p7913_p4 = pnand %p7912_p3, %p7906_p0 }
   0xc   :  { %7916 = shalt.err (!%p7913_p4)
}
   0xd   :  { %s8007_s18 = smov 128   ;;  %s8008_s19 = smov 8  }
   0xe   :  { %44 = dma.hbm_to_vmem [thread:$0]  %s9166_s2, 2048, %s39_s14, [#allocation8], %s8007_s18, %s8007_s18, %s8008_s19  }
   0xf   :  { %s7925_s22 = scalar_lea.vmem %s27_s16, 2048  ;;  %p7930_p6 = scmp.lt.s32.totalorder %s27_s16, %s27_s16 }
  0x10   :  { %p7926_p5 = scmp.ne.s32.totalorder %s27_s16, %s7925_s22  ;;  %p7931_p7 = scmp.lt.s32.totalorder %s7925_s22, %s7925_s22 }
  0x12   :  { %p7932_p8 = por %p7931_p7, %p7930_p6 }
  0x14   :  { %p7933_p9 = pnand %p7932_p8, %p7926_p5 }
  0x16   :  { %7936 = shalt.err (!%p7933_p9)
}
  0x17   :  { %32 = dma.hbm_to_vmem [thread:$0]  %s9165_s1, 2048, %s27_s16, [#allocation5], %s8007_s18, %s8007_s18, %s8008_s19  }
  0x18   :  { %s8009_s25 = smov [#allocation9]   ;;  %s8010_s27 = smov [#allocation10]  }
  0x19   :  { %s52_s26 = sshll.u32 %s8009_s25, 4  ;;  %s64_s28 = sshll.u32 %s8010_s27, 4  ;;  %s53_s26 = int_to_ptr.vmem [resolvable:$true] %s52_s26  ;;  %s65_s28 = int_to_ptr.vmem [resolvable:$true] %s64_s28 }
  0x1a   :  { %s7945_s2 = scalar_lea.vmem %s53_s26, 2048  ;;  %p7950_p11 = scmp.lt.s32.totalorder %s53_s26, %s53_s26 }
  0x1b   :  { %p7946_p10 = scmp.ne.s32.totalorder %s53_s26, %s7945_s2  ;;  %p7951_p12 = scmp.lt.s32.totalorder %s7945_s2, %s7945_s2 }
  0x1d   :  { %p7952_p13 = por %p7951_p12, %p7950_p11 }
  0x1f   :  { %p7953_p0 = pnand %p7952_p13, %p7946_p10 }
  0x21   :  { %7956 = shalt.err (!%p7953_p0)
}
  0x22   :  { %58 = dma.hbm_to_vmem [thread:$0]  %s9168_s4, 2048, %s53_s26, [#allocation8], %s8007_s18, %s8007_s18, %s8008_s19  }
  0x23   :  { %s7965_s1 = scalar_lea.vmem %s65_s28, 2048  ;;  %p7970_p2 = scmp.lt.s32.totalorder %s65_s28, %s65_s28 }
  0x24   :  { %p7966_p1 = scmp.ne.s32.totalorder %s65_s28, %s7965_s1  ;;  %p7971_p3 = scmp.lt.s32.totalorder %s7965_s1, %s7965_s1 }
  0x26   :  { %p7972_p4 = por %p7971_p3, %p7970_p2 }
  0x28   :  { %p7973_p5 = pnand %p7972_p4, %p7966_p1 }
  0x2a   :  { %7976 = shalt.err (!%p7973_p5)
}
  0x2b   :  { %70 = dma.hbm_to_vmem [thread:$0]  %s9169_s5, 2048, %s65_s28, [#allocation11], %s8007_s18, %s8007_s18, %s8008_s19  }
  0x2c   :  { %7997 = dma.done.wait [#allocation5], 2048  }
  0x2d   :  { %7998 = vsyncadd [#allocation5], 4294965248 }
  0x2e   :  { %7999 = dma.done.wait [#allocation8], 4096  }
  0x2f   :  { %8000 = vsyncadd [#allocation8], 4294963200 }
  0x30   :  { %8001 = dma.done.wait [#allocation11], 2048  }
  0x31   :  { %8002 = vsyncadd [#allocation11], 4294965248  ;;  %v96_v0 = vld [vmem:[#allocation4 + $0x18] sm:$0xff]  ;;  %v95_v2 = vld [vmem:[#allocation4 + $0x10] sm:$0xff]  ;;  %vm104_vm0 = vcmask 261120   ;;  %v8011_v20 = vmov 0.0  }
  0x32   :  { %v190_v1 = vld [vmem:[#allocation4 + $0x38] sm:$0xff]  ;;  %6776 = vmatprep.subr.mxu0 %v96_v0  ;;  %v189_v3 = vld [vmem:[#allocation4 + $0x30] sm:$0xff]  ;;  %v94_v4 = vld [vmem:[#allocation4 + $0x8] sm:$0xff]  ;;  %vm8012_vm1 = vmmov 0   ;;  %vm780_vm2 = vcmask 254976   ;;  %vm1108_vm3 = vcmask 257026  }
  0x33   :  { %6787 = vmatprep.subr.mxu1 %v190_v1  ;;  %6777 = vmatpush3.msra.mxu0 %v96_v0  ;;  %v188_v5 = vld [vmem:[#allocation4 + $0x28] sm:$0xff]  ;;  %v93_v6 = vld [vmem:[#allocation4] sm:$0xff]  ;;  %v278_v10 = vld [vmem:[#allocation4 + $0x58] sm:$0xff]  ;;  %vm1437_vm4 = vcmask 259076   ;;  %vm1766_vm5 = vcmask 261126   ;;  %vm6211_vm6 = vcmask 130048  }
  0x34   :  { %6788 = vmatpush3.msra.mxu1 %v190_v1  ;;  %6778 = vmatprep.subr.mxu0 %v95_v2  ;;  %v187_v7 = vld [vmem:[#allocation4 + $0x20] sm:$0xff]  ;;  %v92_v9 = vld [vmem:[%s9164_s0 + $0x8] sm:$0xff]  ;;  %v366_v11 = vld [vmem:[#allocation4 + $0x78] sm:$0xff] }
  0x35   :  { %6789 = vmatprep.subr.mxu1 %v189_v3  ;;  %6779 = vmatpush3.msra.mxu0 %v95_v2  ;;  %v91_v8 = vld [vmem:[%s9164_s0] sm:$0xff]  ;;  %v277_v12 = vld [vmem:[#allocation4 + $0x50] sm:$0xff]  ;;  %v276_v14 = vld [vmem:[#allocation4 + $0x48] sm:$0xff] }
  0x36   :  { %6790 = vmatpush3.msra.mxu1 %v189_v3  ;;  %6780 = vmatprep.subr.mxu0 %v94_v4  ;;  %v365_v13 = vld [vmem:[#allocation4 + $0x70] sm:$0xff]  ;;  %v364_v15 = vld [vmem:[#allocation4 + $0x68] sm:$0xff]  ;;  %v275_v16 = vld [vmem:[#allocation4 + $0x40] sm:$0xff] }
  0x37   :  { %6791 = vmatprep.subr.mxu1 %v188_v5  ;;  %6781 = vmatpush3.msra.mxu0 %v94_v4  ;;  %v363_v17 = vld [vmem:[#allocation4 + $0x60] sm:$0xff]  ;;  %v8105_v18 = vld [vmem:[#allocation7 + $0x18] sm:$0xff]  ;;  %v8113_v21 = vld [vmem:[#allocation7 + $0x10] sm:$0xff] }
  0x38   :  { %6792 = vmatpush3.msra.mxu1 %v188_v5  ;;  %6782 = vmatprep.subr.mxu0 %v93_v6  ;;  %v8107_v19 = vld [vmem:[#allocation7 + $0x38] sm:$0xff]  ;;  %v8115_v22 = vld [vmem:[#allocation7 + $0x30] sm:$0xff]  ;;  %v8121_v23 = vld [vmem:[#allocation7 + $0x8] sm:$0xff] }
  0x39   :  { %6793 = vmatprep.subr.mxu1 %v187_v7  ;;  %6783 = vmatpush3.msra.mxu0 %v93_v6  ;;  %v8123_v24 = vld [vmem:[#allocation7 + $0x28] sm:$0xff]  ;;  %v8129_v25 = vld [vmem:[#allocation7] sm:$0xff]  ;;  %v8143_v27 = vld [vmem:[#allocation7 + $0x58] sm:$0xff] }
  0x3a   :  { %6784 = vmatprep.mubr.msk.f32.mxu0 %vm104_vm0, %v91_v8  ;;  %6794 = vmatpush3.msra.mxu1 %v187_v7  ;;  %v8133_v26 = vld [vmem:[#allocation7 + $0x20] sm:$0xff]  ;;  %v8145_v28 = vld [vmem:[#allocation7 + $0x78] sm:$0xff]  ;;  %v8151_v29 = vld [vmem:[#allocation7 + $0x50] sm:$0xff] }
  0x3b   :  { %6795 = vmatprep.mubr.msk.f32.mxu1 %vm104_vm0, %v91_v8  ;;  %6785 = vmatmul.mubr.msk.f32.vlgmr.msra.gmra.mxu0 %vm104_vm0, %v92_v9  ;;  %v8153_v30 = vld [vmem:[#allocation7 + $0x70] sm:$0xff]  ;;  %v8159_v31 = vld [vmem:[#allocation7 + $0x48] sm:$0xff]  ;;  %v8167_v33 = vld [vmem:[#allocation7 + $0x40] sm:$0xff] }
  0x3c   :  { %6796 = vmatmul.mubr.msk.f32.vlgmr.msra.gmra.mxu1 %vm104_vm0, %v92_v9  ;;  %6798 = vmatprep.subr.mxu0 %v278_v10  ;;  %v8161_v32 = vld [vmem:[#allocation7 + $0x68] sm:$0xff]  ;;  %v8171_v34 = vld [vmem:[#allocation7 + $0x60] sm:$0xff] }
  0x3d   :  { %6809 = vmatprep.subr.mxu1 %v366_v11  ;;  %6799 = vmatpush3.msra.mxu0 %v278_v10  ;;  %v6257_v35 = vld [vmem:[%s9167_s3] ss:$0 sm:$0xff]  ;;  %v6261_v36 = vld [vmem:[%s9167_s3 + $0x1] ss:$0 sm:$0xff]  ;;  %v6265_v43 = vld [vmem:[%s9167_s3 + $0x2] ss:$0 sm:$0xff] }
  0x3e   :  { %6810 = vmatpush3.msra.mxu1 %v366_v11  ;;  %6800 = vmatprep.subr.mxu0 %v277_v12  ;;  %v6269_v44 = vld [vmem:[%s9167_s3 + $0x3] ss:$0 sm:$0xff] }
  0x3f   :  { %6811 = vmatprep.subr.mxu1 %v365_v13  ;;  %6801 = vmatpush3.msra.mxu0 %v277_v12 }
  0x40   :  { %6812 = vmatpush3.msra.mxu1 %v365_v13  ;;  %6802 = vmatprep.subr.mxu0 %v276_v14 }
  0x41   :  { %6813 = vmatprep.subr.mxu1 %v364_v15  ;;  %6803 = vmatpush3.msra.mxu0 %v276_v14 }
  0x42   :  { %6814 = vmatpush3.msra.mxu1 %v364_v15  ;;  %6804 = vmatprep.subr.mxu0 %v275_v16 }
  0x43   :  { %6815 = vmatprep.subr.mxu1 %v363_v17  ;;  %6805 = vmatpush3.msra.mxu0 %v275_v16 }
  0x44   :  { %6806 = vmatprep.mubr.msk.f32.mxu0 %vm104_vm0, %v91_v8  ;;  %6816 = vmatpush3.msra.mxu1 %v363_v17 }
  0x45   :  { %6817 = vmatprep.mubr.msk.f32.mxu1 %vm104_vm0, %v91_v8  ;;  %6807 = vmatmul.mubr.msk.f32.vlgmr.msra.gmra.mxu0 %vm104_vm0, %v92_v9 }
  0x46   :  { %6818 = vmatmul.mubr.msk.f32.vlgmr.msra.gmra.mxu1 %vm104_vm0, %v92_v9  ;;  %6820 = vmatprep.subr.mxu0 %v8011_v20 }
  0x47   :  { %6831 = vmatprep.subr.mxu1 %v8011_v20  ;;  %6821 = vmatpush3.msra.mxu0 %v8105_v18 }
  0x48   :  { %6832 = vmatpush3.msra.mxu1 %v8107_v19  ;;  %6822 = vmatprep.subr.mxu0 %v8011_v20 }
  0x49   :  { %6833 = vmatprep.subr.mxu1 %v8011_v20  ;;  %6823 = vmatpush3.msra.mxu0 %v8113_v21 }
  0x4a   :  { %6834 = vmatpush3.msra.mxu1 %v8115_v22  ;;  %6824 = vmatprep.subr.mxu0 %v8011_v20 }
  0x4b   :  { %6835 = vmatprep.subr.mxu1 %v8011_v20  ;;  %6825 = vmatpush3.msra.mxu0 %v8121_v23 }
  0x4c   :  { %6836 = vmatpush3.msra.mxu1 %v8123_v24  ;;  %6826 = vmatprep.subr.mxu0 %v8011_v20 }
  0x4d   :  { %6837 = vmatprep.subr.mxu1 %v8011_v20  ;;  %6827 = vmatpush3.msra.mxu0 %v8129_v25 }
  0x4e   :  { %6828 = vmatprep.mubr.msk.f32.mxu0 %vm8012_vm1, %v8011_v20  ;;  %6838 = vmatpush3.msra.mxu1 %v8133_v26 }
  0x4f   :  { %6839 = vmatprep.mubr.msk.f32.mxu1 %vm8012_vm1, %v8011_v20  ;;  %6829 = vmatmul.mubr.f32.vlgmr.msra.gmra.mxu0 %v8011_v20 }
  0x50   :  { %6840 = vmatmul.mubr.f32.vlgmr.msra.gmra.mxu1 %v8011_v20  ;;  %6842 = vmatprep.subr.mxu0 %v8011_v20 }
  0x51   :  { %6853 = vmatprep.subr.mxu1 %v8011_v20  ;;  %6843 = vmatpush3.msra.mxu0 %v8143_v27 }
  0x52   :  { %6854 = vmatpush3.msra.mxu1 %v8145_v28  ;;  %6844 = vmatprep.subr.mxu0 %v8011_v20 }
  0x53   :  { %6855 = vmatprep.subr.mxu1 %v8011_v20  ;;  %6845 = vmatpush3.msra.mxu0 %v8151_v29 }
  0x54   :  { %6856 = vmatpush3.msra.mxu1 %v8153_v30  ;;  %6846 = vmatprep.subr.mxu0 %v8011_v20 }
  0x55   :  { %6857 = vmatprep.subr.mxu1 %v8011_v20  ;;  %6847 = vmatpush3.msra.mxu0 %v8159_v31 }
  0x56   :  { %6858 = vmatpush3.msra.mxu1 %v8161_v32  ;;  %6848 = vmatprep.subr.mxu0 %v8011_v20 }
  0x57   :  { %6859 = vmatprep.subr.mxu1 %v8011_v20  ;;  %6849 = vmatpush3.msra.mxu0 %v8167_v33 }
  0x58   :  { %6850 = vmatprep.mubr.msk.f32.mxu0 %vm8012_vm1, %v8011_v20  ;;  %6860 = vmatpush3.msra.mxu1 %v8171_v34 }
  0x59   :  { %6861 = vmatprep.mubr.msk.f32.mxu1 %vm8012_vm1, %v8011_v20  ;;  %6851 = vmatmul.mubr.f32.vlgmr.msra.gmra.mxu0 %v8011_v20 }
  0x5a   :  { %6862 = vmatmul.mubr.f32.vlgmr.msra.gmra.mxu1 %v8011_v20  ;;  %6864 = vmatprep.subr.mxu0 %v8011_v20 }
  0x5b   :  { %6875 = vmatprep.subr.mxu1 %v8011_v20  ;;  %6865 = vmatpush3.msra.mxu0 %v8105_v18 }
  0x5c   :  { %6876 = vmatpush3.msra.mxu1 %v8107_v19  ;;  %6866 = vmatprep.subr.mxu0 %v8011_v20 }
  0x5d   :  { %6877 = vmatprep.subr.mxu1 %v8011_v20  ;;  %6867 = vmatpush3.msra.mxu0 %v8113_v21 }
  0x5e   :  { %6878 = vmatpush3.msra.mxu1 %v8115_v22  ;;  %6868 = vmatprep.subr.mxu0 %v8011_v20 }
  0x5f   :  { %6879 = vmatprep.subr.mxu1 %v8011_v20  ;;  %6869 = vmatpush3.msra.mxu0 %v8121_v23 }
  0x60   :  { %6880 = vmatpush3.msra.mxu1 %v8123_v24  ;;  %6870 = vmatprep.subr.mxu0 %v8011_v20 }
  0x61   :  { %6881 = vmatprep.subr.mxu1 %v8011_v20  ;;  %6871 = vmatpush3.msra.mxu0 %v8129_v25 }
  0x62   :  { %6882 = vmatpush3.msra.mxu1 %v8133_v26  ;;  %6872 = vmatprep.mubr.msk.f32.mxu0 %vm8012_vm1, %v8011_v20 }
  0x63   :  { %6883 = vmatprep.mubr.msk.f32.mxu1 %vm8012_vm1, %v8011_v20  ;;  %6886 = vmatprep.subr.mxu0 %v8011_v20 }
  0x64   :  { %6897 = vmatprep.subr.mxu1 %v8011_v20 }
  0xfb   :  { %v6786_v37 = vpop.f32.mrf.mxu0 }
  0xfc   :  { %v6797_v38 = vpop.f32.mrf.mxu1  ;;  %v8211_v39 = vadd.f32 %v6786_v37, %v6257_v35 }
  0xfd   :  { %v8213_v40 = vadd.f32 %v6797_v38, %v6261_v36  ;;  %v177_v41 = vpop.f32.mrf.mxu0 }
  0xfe   :  { %v265_v42 = vpop.f32.mrf.mxu1  ;;  %v8225_v51 = vadd.f32 %v6257_v35, %v177_v41 }
  0xff   :  { %v8227_v52 = vadd.f32 %v6261_v36, %v265_v42 }
 0x105   :  { %v6808_v45 = vpop.f32.mrf.mxu0 }
 0x106   :  { %v6819_v46 = vpop.f32.mrf.mxu1  ;;  %v8221_v47 = vadd.f32 %v6808_v45, %v6265_v43 }
 0x107   :  { %v8223_v48 = vadd.f32 %v6819_v46, %v6269_v44  ;;  %v353_v49 = vpop.f32.mrf.mxu0 }
 0x108   :  { %v441_v50 = vpop.f32.mrf.mxu1  ;;  %v8234_v3 = vadd.f32 %v6265_v43, %v353_v49 }
 0x109   :  { %v8231_v61 = vadd.f32 %v6269_v44, %v441_v50 }
 0x10f   :  { %v538_v53 = vpop.f32.mrf.mxu0 }
 0x110   :  { %v609_v54 = vpop.f32.mrf.mxu1  ;;  %v542_v55 = vadd.f32 %v538_v53, %v8225_v51 }
 0x111   :  { %v613_v56 = vadd.f32 %v609_v54, %v8227_v52  ;;  %v6830_v57 = vpop.f32.mrf.mxu0 }
 0x112   :  { %v6841_v58 = vpop.f32.mrf.mxu1  ;;  %v6273_v59 = vmul.f32 -1.442695, %v542_v55 }
 0x113   :  { %v6272_v60 = vmul.f32 -1.442695, %v613_v56 }
 0x114   :  { %7599 = vpow2.f32 %v6273_v59 }
 0x115   :  { %7601 = vpow2.f32 %v6272_v60 }
 0x119   :  { %v680_v62 = vpop.f32.mrf.mxu0 }
 0x11a   :  { %v751_v63 = vpop.f32.mrf.mxu1  ;;  %v684_v5 = vadd.f32 %v680_v62, %v8234_v3 }
 0x11b   :  { %v755_v0 = vadd.f32 %v751_v63, %v8231_v61  ;;  %v6852_v1 = vpop.f32.mrf.mxu0 }
 0x11c   :  { %v6863_v2 = vpop.f32.mrf.mxu1 }
 0x11d   :  { %v6274_v4 = vmul.f32 -1.442695, %v755_v0 }
 0x11f   :  { %7603 = vpow2.f32 %v6274_v4 }
 0x120   :  { %7605 = vtanh.f32 %v684_v5 }
 0x121   :  { %v7600_v6 = vpop.eup %7599 }
 0x122   :  { %v7602_v7 = vpop.eup %7601  ;;  %v766_v8 = vadd.f32 1.0, %v7600_v6 }
 0x123   :  { %v759_v9 = vadd.f32 1.0, %v7602_v7 }
 0x124   :  { %7607 = vrcp.f32 %v766_v8 }
 0x125   :  { %7609 = vrcp.f32 %v759_v9 }
 0x12c   :  { %v7604_v10 = vpop.eup %7603 }
 0x12d   :  { %v7606_v11 = vpop.eup %7605  ;;  %v775_v15 = vadd.f32 1.0, %v7604_v10 }
 0x12f   :  { %7611 = vrcp.f32 %v775_v15 }
 0x131   :  { %v7608_v12 = vpop.eup %7607 }
 0x132   :  { %v7610_v13 = vpop.eup %7609  ;;  %v770_v14 = vmul.f32 %v7608_v12, %v7606_v11 }
 0x133   :  { %v762_v16 = vmul.f32 0.0, %v7610_v13 }
 0x135   :  { %v8237_v17 = vadd.f32 %v770_v14, %v762_v16 }
 0x137   :  { %7613 = vtanh.f32 %v8237_v17  ;;  %v1088_v8 = vrot.slane %v8237_v17, 6 }
 0x13c   :  { %v7612_v35 = vpop.eup %7611 }
 0x144   :  { %v7614_v36 = vpop.eup %7613 }
 0x145   :  { %v779_v37 = vmul.f32 %v7614_v36, %v7612_v35 }
 0x147   :  { %781 = vst.msk [vmem:[#allocation2] sm:$0x3] %vm780_vm2, %v779_v37  ;;  %6873 = vmatmul.mubr.msk.f32.vlgmr.msra.gmra.mxu0 %vm104_vm0, %v779_v37  ;;  %6884 = vmatmul.mubr.msk.f32.vlgmr.msra.gmra.mxu1 %vm104_vm0, %v779_v37 }
 0x148   :  { %6887 = vmatpush3.msra.mxu0 %v8143_v27  ;;  %6898 = vmatpush3.msra.mxu1 %v8145_v28 }
 0x149   :  { %6888 = vmatprep.subr.mxu0 %v8011_v20  ;;  %6899 = vmatprep.subr.mxu1 %v8011_v20 }
 0x14a   :  { %6889 = vmatpush3.msra.mxu0 %v8151_v29  ;;  %6900 = vmatpush3.msra.mxu1 %v8153_v30 }
 0x14b   :  { %6890 = vmatprep.subr.mxu0 %v8011_v20  ;;  %6901 = vmatprep.subr.mxu1 %v8011_v20 }
 0x14c   :  { %6891 = vmatpush3.msra.mxu0 %v8159_v31  ;;  %6902 = vmatpush3.msra.mxu1 %v8161_v32 }
 0x14d   :  { %6892 = vmatprep.subr.mxu0 %v8011_v20  ;;  %6903 = vmatprep.subr.mxu1 %v8011_v20 }
 0x14e   :  { %6893 = vmatpush3.msra.mxu0 %v8167_v33  ;;  %6894 = vmatprep.mubr.msk.f32.mxu0 %vm8012_vm1, %v8011_v20 }
 0x14f   :  { %6904 = vmatpush3.msra.mxu1 %v8171_v34  ;;  %6905 = vmatprep.mubr.msk.f32.mxu1 %vm8012_vm1, %v8011_v20 }
 0x150   :  { %6895 = vmatmul.mubr.msk.f32.vlgmr.msra.gmra.mxu0 %vm104_vm0, %v779_v37  ;;  %6906 = vmatmul.mubr.msk.f32.vlgmr.msra.gmra.mxu1 %vm104_vm0, %v779_v37 }
 0x151   :  { %6908 = vmatprep.subr.mxu0 %v8011_v20  ;;  %6919 = vmatprep.subr.mxu1 %v8011_v20 }
 0x152   :  { %6909 = vmatpush3.msra.mxu0 %v8105_v18  ;;  %6920 = vmatpush3.msra.mxu1 %v8107_v19 }
 0x153   :  { %6910 = vmatprep.subr.mxu0 %v8011_v20  ;;  %6921 = vmatprep.subr.mxu1 %v8011_v20 }
 0x154   :  { %6911 = vmatpush3.msra.mxu0 %v8113_v21  ;;  %6922 = vmatpush3.msra.mxu1 %v8115_v22 }
 0x155   :  { %6912 = vmatprep.subr.mxu0 %v8011_v20  ;;  %6923 = vmatprep.subr.mxu1 %v8011_v20 }
 0x156   :  { %6913 = vmatpush3.msra.mxu0 %v8121_v23  ;;  %6924 = vmatpush3.msra.mxu1 %v8123_v24 }
 0x157   :  { %6914 = vmatprep.subr.mxu0 %v8011_v20  ;;  %6925 = vmatprep.subr.mxu1 %v8011_v20 }
 0x158   :  { %6915 = vmatpush3.msra.mxu0 %v8129_v25  ;;  %6926 = vmatpush3.msra.mxu1 %v8133_v26 }
 0x159   :  { %6916 = vmatprep.mubr.msk.f32.mxu0 %vm8012_vm1, %v8011_v20  ;;  %6927 = vmatprep.mubr.msk.f32.mxu1 %vm8012_vm1, %v8011_v20 }
 0x15a   :  { %6930 = vmatprep.subr.mxu0 %v8011_v20  ;;  %6941 = vmatprep.subr.mxu1 %v8011_v20 }
 0x207   :  { %v851_v38 = vpop.f32.mrf.mxu0  ;;  %v925_v41 = vpop.f32.mrf.mxu1 }
 0x208   :  { %v856_v42 = vrot.slane %v851_v38, 6  ;;  %v930_v43 = vrot.slane %v925_v41, 6 }
 0x209   :  { %v6874_v44 = vpop.f32.mrf.mxu0  ;;  %v6885_v45 = vpop.f32.mrf.mxu1 }
 0x20a   :  { %v858_v46 = vadd.f32 %v856_v42, %v8225_v51  ;;  %v932_v49 = vadd.f32 %v930_v43, %v8227_v52 }
 0x20c   :  { %v6280_v50 = vmul.f32 -1.442695, %v858_v46  ;;  %v6279_v53 = vmul.f32 -1.442695, %v932_v49 }
 0x20e   :  { %7615 = vpow2.f32 %v6280_v50 }
 0x20f   :  { %7617 = vpow2.f32 %v6279_v53 }
 0x210   :  { %v999_v54 = vpop.f32.mrf.mxu0  ;;  %v1073_v55 = vpop.f32.mrf.mxu1 }
 0x211   :  { %v1078_v56 = vrot.slane %v1073_v55, 6  ;;  %v1004_v60 = vrot.slane %v999_v54, 6 }
 0x212   :  { %v6896_v57 = vpop.f32.mrf.mxu0  ;;  %v6907_v58 = vpop.f32.mrf.mxu1 }
 0x213   :  { %v1080_v59 = vadd.f32 %v1078_v56, %v8231_v61  ;;  %v1006_v63 = vadd.f32 %v1004_v60, %v8234_v3 }
 0x215   :  { %v6281_v62 = vmul.f32 -1.442695, %v1080_v59 }
 0x217   :  { %7619 = vpow2.f32 %v6281_v62 }
 0x218   :  { %7621 = vtanh.f32 %v1006_v63 }
 0x21b   :  { %v7616_v0 = vpop.eup %7615 }
 0x21c   :  { %v7618_v1 = vpop.eup %7617  ;;  %v1094_v2 = vadd.f32 1.0, %v7616_v0 }
 0x21d   :  { %v1084_v4 = vadd.f32 1.0, %v7618_v1 }
 0x21e   :  { %7623 = vrcp.f32 %v1094_v2 }
 0x21f   :  { %7625 = vrcp.f32 %v1084_v4 }
 0x224   :  { %v7620_v5 = vpop.eup %7619 }
 0x225   :  { %v7622_v6 = vpop.eup %7621  ;;  %v1103_v11 = vadd.f32 1.0, %v7620_v5 }
 0x227   :  { %7627 = vrcp.f32 %v1103_v11 }
 0x22b   :  { %v7624_v7 = vpop.eup %7623 }
 0x22c   :  { %v7626_v9 = vpop.eup %7625  ;;  %v1098_v10 = vmul.f32 %v7624_v7, %v7622_v6 }
 0x22d   :  { %v1090_v12 = vmul.f32 %v7626_v9, %v1088_v8 }
 0x22f   :  { %v8290_v13 = vadd.f32 %v1098_v10, %v1090_v12 }
 0x231   :  { %7629 = vtanh.f32 %v8290_v13  ;;  %v1417_v5 = vrot.slane %v8290_v13, 6 }
 0x234   :  { %v7628_v14 = vpop.eup %7627 }
 0x23e   :  { %v7630_v15 = vpop.eup %7629 }
 0x23f   :  { %v1107_v16 = vmul.f32 %v7630_v15, %v7628_v14 }
 0x241   :  { %1109 = vst.msk [vmem:[#allocation2] sm:$0xc] %vm1108_vm3, %v1107_v16  ;;  %v1111_v35 = vrot.slane %v1107_v16, 2 }
 0x243   :  { %6917 = vmatmul.mubr.msk.f32.vlgmr.msra.gmra.mxu0 %vm104_vm0, %v1111_v35  ;;  %6928 = vmatmul.mubr.msk.f32.vlgmr.msra.gmra.mxu1 %vm104_vm0, %v1111_v35 }
 0x244   :  { %6931 = vmatpush3.msra.mxu0 %v8143_v27  ;;  %6942 = vmatpush3.msra.mxu1 %v8145_v28 }
 0x245   :  { %6932 = vmatprep.subr.mxu0 %v8011_v20  ;;  %6943 = vmatprep.subr.mxu1 %v8011_v20 }
 0x246   :  { %6933 = vmatpush3.msra.mxu0 %v8151_v29  ;;  %6944 = vmatpush3.msra.mxu1 %v8153_v30 }
 0x247   :  { %6934 = vmatprep.subr.mxu0 %v8011_v20  ;;  %6945 = vmatprep.subr.mxu1 %v8011_v20 }
 0x248   :  { %6935 = vmatpush3.msra.mxu0 %v8159_v31  ;;  %6946 = vmatpush3.msra.mxu1 %v8161_v32 }
 0x249   :  { %6936 = vmatprep.subr.mxu0 %v8011_v20  ;;  %6947 = vmatprep.subr.mxu1 %v8011_v20 }
 0x24a   :  { %6937 = vmatpush3.msra.mxu0 %v8167_v33  ;;  %6938 = vmatprep.mubr.msk.f32.mxu0 %vm8012_vm1, %v8011_v20 }
 0x24b   :  { %6948 = vmatpush3.msra.mxu1 %v8171_v34  ;;  %6949 = vmatprep.mubr.msk.f32.mxu1 %vm8012_vm1, %v8011_v20 }
 0x24c   :  { %6939 = vmatmul.mubr.msk.f32.vlgmr.msra.gmra.mxu0 %vm104_vm0, %v1111_v35  ;;  %6950 = vmatmul.mubr.msk.f32.vlgmr.msra.gmra.mxu1 %vm104_vm0, %v1111_v35 }
 0x24d   :  { %6952 = vmatprep.subr.mxu0 %v8011_v20  ;;  %6963 = vmatprep.subr.mxu1 %v8011_v20 }
 0x24e   :  { %6953 = vmatpush3.msra.mxu0 %v8105_v18  ;;  %6964 = vmatpush3.msra.mxu1 %v8107_v19 }
 0x24f   :  { %6954 = vmatprep.subr.mxu0 %v8011_v20  ;;  %6965 = vmatprep.subr.mxu1 %v8011_v20 }
 0x250   :  { %6955 = vmatpush3.msra.mxu0 %v8113_v21  ;;  %6966 = vmatpush3.msra.mxu1 %v8115_v22 }
 0x251   :  { %6956 = vmatprep.subr.mxu0 %v8011_v20  ;;  %6967 = vmatprep.subr.mxu1 %v8011_v20 }
 0x252   :  { %6957 = vmatpush3.msra.mxu0 %v8121_v23  ;;  %6968 = vmatpush3.msra.mxu1 %v8123_v24 }
 0x253   :  { %6958 = vmatprep.subr.mxu0 %v8011_v20  ;;  %6969 = vmatprep.subr.mxu1 %v8011_v20 }
 0x254   :  { %6959 = vmatpush3.msra.mxu0 %v8129_v25  ;;  %6970 = vmatpush3.msra.mxu1 %v8133_v26 }
 0x255   :  { %6960 = vmatprep.mubr.msk.f32.mxu0 %vm8012_vm1, %v8011_v20  ;;  %6971 = vmatprep.mubr.msk.f32.mxu1 %vm8012_vm1, %v8011_v20 }
 0x256   :  { %6974 = vmatprep.subr.mxu0 %v8011_v20  ;;  %6985 = vmatprep.subr.mxu1 %v8011_v20 }
 0x303   :  { %v1180_v17 = vpop.f32.mrf.mxu0  ;;  %v1254_v36 = vpop.f32.mrf.mxu1 }
 0x304   :  { %v1185_v37 = vrot.slane %v1180_v17, 4  ;;  %v1259_v38 = vrot.slane %v1254_v36, 4 }
 0x305   :  { %v6918_v41 = vpop.f32.mrf.mxu0  ;;  %v6929_v42 = vpop.f32.mrf.mxu1 }
 0x306   :  { %v1187_v43 = vadd.f32 %v1185_v37, %v8225_v51  ;;  %v1261_v44 = vadd.f32 %v1259_v38, %v8227_v52 }
 0x308   :  { %v6287_v45 = vmul.f32 -1.442695, %v1187_v43  ;;  %v6286_v46 = vmul.f32 -1.442695, %v1261_v44 }
 0x30a   :  { %7631 = vpow2.f32 %v6287_v45 }
 0x30b   :  { %7633 = vpow2.f32 %v6286_v46 }
 0x30c   :  { %v1328_v49 = vpop.f32.mrf.mxu0  ;;  %v1402_v50 = vpop.f32.mrf.mxu1 }
 0x30d   :  { %v1407_v53 = vrot.slane %v1402_v50, 4  ;;  %v1333_v57 = vrot.slane %v1328_v49, 4 }
 0x30e   :  { %v6940_v54 = vpop.f32.mrf.mxu0  ;;  %v6951_v55 = vpop.f32.mrf.mxu1 }
 0x30f   :  { %v1409_v56 = vadd.f32 %v1407_v53, %v8231_v61  ;;  %v1335_v59 = vadd.f32 %v1333_v57, %v8234_v3 }
 0x311   :  { %v6288_v58 = vmul.f32 -1.442695, %v1409_v56 }
 0x313   :  { %7635 = vpow2.f32 %v6288_v58 }
 0x314   :  { %7637 = vtanh.f32 %v1335_v59 }
 0x317   :  { %v7632_v60 = vpop.eup %7631 }
 0x318   :  { %v7634_v62 = vpop.eup %7633  ;;  %v1423_v63 = vadd.f32 1.0, %v7632_v60 }
 0x319   :  { %v1413_v0 = vadd.f32 1.0, %v7634_v62 }
 0x31a   :  { %7639 = vrcp.f32 %v1423_v63 }
 0x31b   :  { %7641 = vrcp.f32 %v1413_v0 }
 0x320   :  { %v7636_v1 = vpop.eup %7635 }
 0x321   :  { %v7638_v2 = vpop.eup %7637  ;;  %v1432_v8 = vadd.f32 1.0, %v7636_v1 }
 0x323   :  { %7643 = vrcp.f32 %v1432_v8 }
 0x327   :  { %v7640_v4 = vpop.eup %7639 }
 0x328   :  { %v7642_v6 = vpop.eup %7641  ;;  %v1427_v7 = vmul.f32 %v7640_v4, %v7638_v2 }
 0x329   :  { %v1419_v9 = vmul.f32 %v7642_v6, %v1417_v5 }
 0x32b   :  { %v8343_v10 = vadd.f32 %v1427_v7, %v1419_v9 }
 0x32d   :  { %7645 = vtanh.f32 %v8343_v10  ;;  %v1746_v63 = vrot.slane %v8343_v10, 6 }
 0x330   :  { %v7644_v11 = vpop.eup %7643 }
 0x33a   :  { %v7646_v12 = vpop.eup %7645 }
 0x33b   :  { %v1436_v14 = vmul.f32 %v7646_v12, %v7644_v11 }
 0x33d   :  { %1438 = vst.msk [vmem:[#allocation2] sm:$0x30] %vm1437_vm4, %v1436_v14  ;;  %v1440_v15 = vrot.slane %v1436_v14, 4 }
 0x33f   :  { %6961 = vmatmul.mubr.msk.f32.vlgmr.msra.gmra.mxu0 %vm104_vm0, %v1440_v15  ;;  %6972 = vmatmul.mubr.msk.f32.vlgmr.msra.gmra.mxu1 %vm104_vm0, %v1440_v15 }
 0x340   :  { %6975 = vmatpush3.msra.mxu0 %v8143_v27  ;;  %6986 = vmatpush3.msra.mxu1 %v8145_v28 }
 0x341   :  { %6976 = vmatprep.subr.mxu0 %v8011_v20  ;;  %6987 = vmatprep.subr.mxu1 %v8011_v20 }
 0x342   :  { %6977 = vmatpush3.msra.mxu0 %v8151_v29  ;;  %6988 = vmatpush3.msra.mxu1 %v8153_v30 }
 0x343   :  { %6978 = vmatprep.subr.mxu0 %v8011_v20  ;;  %6989 = vmatprep.subr.mxu1 %v8011_v20 }
 0x344   :  { %6979 = vmatpush3.msra.mxu0 %v8159_v31  ;;  %6990 = vmatpush3.msra.mxu1 %v8161_v32 }
 0x345   :  { %6980 = vmatprep.subr.mxu0 %v8011_v20  ;;  %6991 = vmatprep.subr.mxu1 %v8011_v20 }
 0x346   :  { %6981 = vmatpush3.msra.mxu0 %v8167_v33  ;;  %6982 = vmatprep.mubr.msk.f32.mxu0 %vm8012_vm1, %v8011_v20 }
 0x347   :  { %6992 = vmatpush3.msra.mxu1 %v8171_v34  ;;  %6993 = vmatprep.mubr.msk.f32.mxu1 %vm8012_vm1, %v8011_v20 }
 0x348   :  { %6983 = vmatmul.mubr.msk.f32.vlgmr.msra.gmra.mxu0 %vm104_vm0, %v1440_v15  ;;  %6994 = vmatmul.mubr.msk.f32.vlgmr.msra.gmra.mxu1 %vm104_vm0, %v1440_v15 }
 0x349   :  { %6996 = vmatprep.subr.mxu0 %v8011_v20  ;;  %7007 = vmatprep.subr.mxu1 %v8011_v20 }
 0x34a   :  { %6997 = vmatpush3.msra.mxu0 %v8105_v18  ;;  %7008 = vmatpush3.msra.mxu1 %v8107_v19 }
 0x34b   :  { %6998 = vmatprep.subr.mxu0 %v8011_v20  ;;  %7009 = vmatprep.subr.mxu1 %v8011_v20 }
 0x34c   :  { %6999 = vmatpush3.msra.mxu0 %v8113_v21  ;;  %7010 = vmatpush3.msra.mxu1 %v8115_v22 }
 0x34d   :  { %7000 = vmatprep.subr.mxu0 %v8011_v20  ;;  %7011 = vmatprep.subr.mxu1 %v8011_v20 }
 0x34e   :  { %7001 = vmatpush3.msra.mxu0 %v8121_v23  ;;  %7012 = vmatpush3.msra.mxu1 %v8123_v24 }
 0x34f   :  { %7002 = vmatprep.subr.mxu0 %v8011_v20  ;;  %7013 = vmatprep.subr.mxu1 %v8011_v20 }
 0x350   :  { %7003 = vmatpush3.msra.mxu0 %v8129_v25  ;;  %7014 = vmatpush3.msra.mxu1 %v8133_v26 }
 0x351   :  { %7004 = vmatprep.mubr.msk.f32.mxu0 %vm8012_vm1, %v8011_v20  ;;  %7015 = vmatprep.mubr.msk.f32.mxu1 %vm8012_vm1, %v8011_v20 }
 0x352   :  { %7018 = vmatprep.subr.mxu0 %v8011_v20  ;;  %7029 = vmatprep.subr.mxu1 %v8011_v20 }
 0x3ff   :  { %v1509_v13 = vpop.f32.mrf.mxu0  ;;  %v1583_v16 = vpop.f32.mrf.mxu1 }
 0x400   :  { %v1514_v35 = vrot.slane %v1509_v13, 2  ;;  %v1588_v17 = vrot.slane %v1583_v16, 2 }
 0x401   :  { %v6962_v36 = vpop.f32.mrf.mxu0  ;;  %v6973_v37 = vpop.f32.mrf.mxu1 }
 0x402   :  { %v1516_v38 = vadd.f32 %v1514_v35, %v8225_v51  ;;  %v1590_v41 = vadd.f32 %v1588_v17, %v8227_v52 }
 0x404   :  { %v6294_v42 = vmul.f32 -1.442695, %v1516_v38  ;;  %v6293_v43 = vmul.f32 -1.442695, %v1590_v41 }
 0x406   :  { %7647 = vpow2.f32 %v6294_v42 }
 0x407   :  { %7649 = vpow2.f32 %v6293_v43 }
 0x408   :  { %v1657_v44 = vpop.f32.mrf.mxu0  ;;  %v1731_v45 = vpop.f32.mrf.mxu1 }
 0x409   :  { %v1736_v46 = vrot.slane %v1731_v45, 2  ;;  %v1662_v54 = vrot.slane %v1657_v44, 2 }
 0x40a   :  { %v6984_v49 = vpop.f32.mrf.mxu0  ;;  %v6995_v50 = vpop.f32.mrf.mxu1 }
 0x40b   :  { %v1738_v53 = vadd.f32 %v1736_v46, %v8231_v61  ;;  %v1664_v56 = vadd.f32 %v1662_v54, %v8234_v3 }
 0x40d   :  { %v6295_v55 = vmul.f32 -1.442695, %v1738_v53 }
 0x40f   :  { %7651 = vpow2.f32 %v6295_v55 }
 0x410   :  { %7653 = vtanh.f32 %v1664_v56 }
 0x413   :  { %v7648_v57 = vpop.eup %7647 }
 0x414   :  { %v7650_v58 = vpop.eup %7649  ;;  %v1752_v51 = vadd.f32 1.0, %v7648_v57 }
 0x415   :  { %v1742_v52 = vadd.f32 1.0, %v7650_v58 }
 0x416   :  { %7655 = vrcp.f32 %v1752_v51 }
 0x417   :  { %7657 = vrcp.f32 %v1742_v52 }
 0x41c   :  { %v7652_v59 = vpop.eup %7651 }
 0x41d   :  { %v7654_v60 = vpop.eup %7653  ;;  %v1761_v61 = vadd.f32 1.0, %v7652_v59 }
 0x41f   :  { %7659 = vrcp.f32 %v1761_v61 }
 0x423   :  { %v7656_v62 = vpop.eup %7655 }
 0x424   :  { %v7658_v0 = vpop.eup %7657  ;;  %v1756_v1 = vmul.f32 %v7656_v62, %v7654_v60 }
 0x425   :  { %v1748_v2 = vmul.f32 %v7658_v0, %v1746_v63 }
 0x427   :  { %v8396_v4 = vadd.f32 %v1756_v1, %v1748_v2 }
 0x429   :  { %7661 = vtanh.f32 %v8396_v4  ;;  %v2063_v53 = vrot.slane %v8396_v4, 6 }
 0x42c   :  { %v7660_v3 = vpop.eup %7659 }
 0x436   :  { %v7662_v5 = vpop.eup %7661 }
 0x437   :  { %v1765_v6 = vmul.f32 %v7662_v5, %v7660_v3 }
 0x439   :  { %1767 = vst.msk [vmem:[#allocation2] sm:$0xc0] %vm1766_vm5, %v1765_v6  ;;  %v1769_v7 = vrot.slane %v1765_v6, 6 }
 0x43b   :  { %7005 = vmatmul.mubr.msk.f32.vlgmr.msra.gmra.mxu0 %vm104_vm0, %v1769_v7  ;;  %7016 = vmatmul.mubr.msk.f32.vlgmr.msra.gmra.mxu1 %vm104_vm0, %v1769_v7 }
 0x43c   :  { %7019 = vmatpush3.msra.mxu0 %v8143_v27  ;;  %7030 = vmatpush3.msra.mxu1 %v8145_v28 }
 0x43d   :  { %7020 = vmatprep.subr.mxu0 %v8011_v20  ;;  %7031 = vmatprep.subr.mxu1 %v8011_v20 }
 0x43e   :  { %7021 = vmatpush3.msra.mxu0 %v8151_v29  ;;  %7032 = vmatpush3.msra.mxu1 %v8153_v30 }
 0x43f   :  { %7022 = vmatprep.subr.mxu0 %v8011_v20  ;;  %7033 = vmatprep.subr.mxu1 %v8011_v20 }
 0x440   :  { %7023 = vmatpush3.msra.mxu0 %v8159_v31  ;;  %7034 = vmatpush3.msra.mxu1 %v8161_v32 }
 0x441   :  { %7024 = vmatprep.subr.mxu0 %v8011_v20  ;;  %7035 = vmatprep.subr.mxu1 %v8011_v20 }
 0x442   :  { %7025 = vmatpush3.msra.mxu0 %v8167_v33  ;;  %7026 = vmatprep.mubr.msk.f32.mxu0 %vm8012_vm1, %v8011_v20 }
 0x443   :  { %7036 = vmatpush3.msra.mxu1 %v8171_v34  ;;  %7037 = vmatprep.mubr.msk.f32.mxu1 %vm8012_vm1, %v8011_v20 }
 0x444   :  { %7027 = vmatmul.mubr.msk.f32.vlgmr.msra.gmra.mxu0 %vm104_vm0, %v1769_v7  ;;  %7038 = vmatmul.mubr.msk.f32.vlgmr.msra.gmra.mxu1 %vm104_vm0, %v1769_v7 }
 0x445   :  { %7040 = vmatprep.subr.mxu0 %v8011_v20  ;;  %7051 = vmatprep.subr.mxu1 %v8011_v20 }
 0x446   :  { %7041 = vmatpush3.msra.mxu0 %v8105_v18  ;;  %7052 = vmatpush3.msra.mxu1 %v8107_v19 }
 0x447   :  { %7042 = vmatprep.subr.mxu0 %v8011_v20  ;;  %7053 = vmatprep.subr.mxu1 %v8011_v20 }
 0x448   :  { %7043 = vmatpush3.msra.mxu0 %v8113_v21  ;;  %7054 = vmatpush3.msra.mxu1 %v8115_v22 }
 0x449   :  { %7044 = vmatprep.subr.mxu0 %v8011_v20  ;;  %7055 = vmatprep.subr.mxu1 %v8011_v20 }
 0x44a   :  { %7045 = vmatpush3.msra.mxu0 %v8121_v23  ;;  %7056 = vmatpush3.msra.mxu1 %v8123_v24 }
 0x44b   :  { %7046 = vmatprep.subr.mxu0 %v8011_v20  ;;  %7057 = vmatprep.subr.mxu1 %v8011_v20 }
 0x44c   :  { %7047 = vmatpush3.msra.mxu0 %v8129_v25  ;;  %7058 = vmatpush3.msra.mxu1 %v8133_v26 }
 0x44d   :  { %7048 = vmatprep.mubr.msk.f32.mxu0 %vm8012_vm1, %v8011_v20  ;;  %7059 = vmatprep.mubr.msk.f32.mxu1 %vm8012_vm1, %v8011_v20 }
 0x44e   :  { %7062 = vmatprep.subr.mxu0 %v8011_v20  ;;  %7073 = vmatprep.subr.mxu1 %v8011_v20 }
 0x4fb   :  { %v1838_v8 = vpop.f32.mrf.mxu0  ;;  %v1909_v9 = vpop.f32.mrf.mxu1 }
 0x4fc   :  { %v1842_v10 = vadd.f32 %v1838_v8, %v8211_v39  ;;  %v1913_v11 = vadd.f32 %v1909_v9, %v8213_v40 }
 0x4fd   :  { %v7006_v12 = vpop.f32.mrf.mxu0  ;;  %v7017_v14 = vpop.f32.mrf.mxu1 }
 0x4fe   :  { %v6301_v15 = vmul.f32 -1.442695, %v1842_v10  ;;  %v6300_v13 = vmul.f32 -1.442695, %v1913_v11 }
 0x500   :  { %7663 = vpow2.f32 %v6301_v15 }
 0x501   :  { %7665 = vpow2.f32 %v6300_v13 }
 0x504   :  { %v1980_v16 = vpop.f32.mrf.mxu0  ;;  %v2051_v35 = vpop.f32.mrf.mxu1 }
 0x505   :  { %v2055_v17 = vadd.f32 %v2051_v35, %v8223_v48  ;;  %v1984_v41 = vadd.f32 %v1980_v16, %v8221_v47  ;;  %v8508_v16 = vld [vmem:[#allocation7 + $0x58] sm:$0xff] }
 0x506   :  { %v7028_v36 = vpop.f32.mrf.mxu0  ;;  %v7039_v37 = vpop.f32.mrf.mxu1  ;;  %v8511_v35 = vld [vmem:[#allocation7 + $0x78] sm:$0xff] }
 0x507   :  { %v6302_v38 = vmul.f32 -1.442695, %v2055_v17  ;;  %v8516_v17 = vld [vmem:[#allocation7 + $0x50] sm:$0xff]  ;;  %v8524_v37 = vld [vmem:[#allocation7 + $0x48] sm:$0xff] }
 0x508   :  { %v8519_v36 = vld [vmem:[#allocation7 + $0x70] sm:$0xff] }
 0x509   :  { %7667 = vpow2.f32 %v6302_v38  ;;  %v8527_v38 = vld [vmem:[#allocation7 + $0x68] sm:$0xff] }
 0x50a   :  { %7669 = vtanh.f32 %v1984_v41  ;;  %v8532_v41 = vld [vmem:[#allocation7 + $0x40] sm:$0xff] }
 0x50d   :  { %v7664_v42 = vpop.eup %7663 }
 0x50e   :  { %v7666_v43 = vpop.eup %7665  ;;  %v2069_v44 = vadd.f32 1.0, %v7664_v42  ;;  %v8537_v42 = vld [vmem:[#allocation7 + $0x60] sm:$0xff] }
 0x50f   :  { %v2059_v45 = vadd.f32 1.0, %v7666_v43  ;;  %v7871_v43 = vld [vmem:[#allocation7 + $0x18] sm:$0xff] }
 0x510   :  { %7671 = vrcp.f32 %v2069_v44  ;;  %v7872_v44 = vld [vmem:[#allocation7 + $0x38] sm:$0xff] }
 0x511   :  { %7673 = vrcp.f32 %v2059_v45  ;;  %v7873_v45 = vld [vmem:[#allocation7 + $0x10] sm:$0xff] }
 0x516   :  { %v7668_v46 = vpop.eup %7667 }
 0x517   :  { %v7670_v49 = vpop.eup %7669  ;;  %v2078_v56 = vadd.f32 1.0, %v7668_v46  ;;  %v7874_v46 = vld [vmem:[#allocation7 + $0x30] sm:$0xff] }
 0x519   :  { %7675 = vrcp.f32 %v2078_v56 }
 0x51d   :  { %v7672_v50 = vpop.eup %7671 }
 0x51e   :  { %v7674_v54 = vpop.eup %7673  ;;  %v2073_v55 = vmul.f32 %v7672_v50, %v7670_v49  ;;  %v7875_v49 = vld [vmem:[#allocation7 + $0x8] sm:$0xff] }
 0x51f   :  { %v2065_v57 = vmul.f32 %v7674_v54, %v2063_v53  ;;  %v7876_v50 = vld [vmem:[#allocation7 + $0x28] sm:$0xff]  ;;  %v7877_v53 = vld [vmem:[#allocation7] sm:$0xff] }
 0x520   :  { %v7878_v54 = vld [vmem:[#allocation7 + $0x20] sm:$0xff] }
 0x521   :  { %v8449_v58 = vadd.f32 %v2073_v55, %v2065_v57 }
 0x523   :  { %7677 = vtanh.f32 %v8449_v58  ;;  %v2390_v6 = vrot.slane %v8449_v58, 6 }
 0x526   :  { %v7676_v51 = vpop.eup %7675 }
 0x530   :  { %v7678_v52 = vpop.eup %7677 }
 0x531   :  { %v2082_v59 = vmul.f32 %v7678_v52, %v7676_v51 }
 0x533   :  { %2083 = vst.msk [vmem:[#allocation2 + $0x8] sm:$0x3] %vm780_vm2, %v2082_v59  ;;  %7049 = vmatmul.mubr.msk.f32.vlgmr.msra.gmra.mxu0 %vm104_vm0, %v2082_v59  ;;  %7060 = vmatmul.mubr.msk.f32.vlgmr.msra.gmra.mxu1 %vm104_vm0, %v2082_v59 }
 0x534   :  { %7063 = vmatpush3.msra.mxu0 %v8143_v27  ;;  %7074 = vmatpush3.msra.mxu1 %v8145_v28 }
 0x535   :  { %7064 = vmatprep.subr.mxu0 %v8011_v20  ;;  %7075 = vmatprep.subr.mxu1 %v8011_v20 }
 0x536   :  { %7065 = vmatpush3.msra.mxu0 %v8151_v29  ;;  %7076 = vmatpush3.msra.mxu1 %v8153_v30 }
 0x537   :  { %7066 = vmatprep.subr.mxu0 %v8011_v20  ;;  %7077 = vmatprep.subr.mxu1 %v8011_v20 }
 0x538   :  { %7067 = vmatpush3.msra.mxu0 %v8159_v31  ;;  %7078 = vmatpush3.msra.mxu1 %v8161_v32 }
 0x539   :  { %7068 = vmatprep.subr.mxu0 %v8011_v20  ;;  %7079 = vmatprep.subr.mxu1 %v8011_v20 }
 0x53a   :  { %7069 = vmatpush3.msra.mxu0 %v8167_v33  ;;  %7070 = vmatprep.mubr.msk.f32.mxu0 %vm8012_vm1, %v8011_v20 }
 0x53b   :  { %7080 = vmatpush3.msra.mxu1 %v8171_v34  ;;  %7081 = vmatprep.mubr.msk.f32.mxu1 %vm8012_vm1, %v8011_v20 }
 0x53c   :  { %7071 = vmatmul.mubr.msk.f32.vlgmr.msra.gmra.mxu0 %vm104_vm0, %v2082_v59  ;;  %7082 = vmatmul.mubr.msk.f32.vlgmr.msra.gmra.mxu1 %vm104_vm0, %v2082_v59 }
 0x53d   :  { %7084 = vmatprep.subr.mxu0 %v8011_v20  ;;  %7095 = vmatprep.subr.mxu1 %v8011_v20 }
 0x53e   :  { %7085 = vmatpush3.msra.mxu0 %v8105_v18  ;;  %7096 = vmatpush3.msra.mxu1 %v8107_v19 }
 0x53f   :  { %7086 = vmatprep.subr.mxu0 %v8011_v20  ;;  %7097 = vmatprep.subr.mxu1 %v8011_v20 }
 0x540   :  { %7087 = vmatpush3.msra.mxu0 %v8113_v21  ;;  %7098 = vmatpush3.msra.mxu1 %v8115_v22 }
 0x541   :  { %7088 = vmatprep.subr.mxu0 %v8011_v20  ;;  %7099 = vmatprep.subr.mxu1 %v8011_v20 }
 0x542   :  { %7089 = vmatpush3.msra.mxu0 %v8121_v23  ;;  %7100 = vmatpush3.msra.mxu1 %v8123_v24 }
 0x543   :  { %7090 = vmatprep.subr.mxu0 %v8011_v20  ;;  %7101 = vmatprep.subr.mxu1 %v8011_v20 }
 0x544   :  { %7091 = vmatpush3.msra.mxu0 %v8129_v25  ;;  %7102 = vmatpush3.msra.mxu1 %v8133_v26 }
 0x545   :  { %7092 = vmatprep.mubr.msk.f32.mxu0 %vm8012_vm1, %v8011_v20  ;;  %7103 = vmatprep.mubr.msk.f32.mxu1 %vm8012_vm1, %v8011_v20 }
 0x546   :  { %7106 = vmatprep.subr.mxu0 %v8011_v20  ;;  %7117 = vmatprep.subr.mxu1 %v8011_v20 }
 0x5f3   :  { %v2153_v18 = vpop.f32.mrf.mxu0  ;;  %v2227_v19 = vpop.f32.mrf.mxu1 }
 0x5f4   :  { %v2158_v21 = vrot.slane %v2153_v18, 6  ;;  %v2232_v22 = vrot.slane %v2227_v19, 6 }
 0x5f5   :  { %v7050_v23 = vpop.f32.mrf.mxu0  ;;  %v7061_v24 = vpop.f32.mrf.mxu1 }
 0x5f6   :  { %v2160_v25 = vadd.f32 %v2158_v21, %v8211_v39  ;;  %v2234_v26 = vadd.f32 %v2232_v22, %v8213_v40 }
 0x5f8   :  { %v6308_v27 = vmul.f32 -1.442695, %v2160_v25  ;;  %v6307_v28 = vmul.f32 -1.442695, %v2234_v26 }
 0x5fa   :  { %7679 = vpow2.f32 %v6308_v27 }
 0x5fb   :  { %7681 = vpow2.f32 %v6307_v28 }
 0x5fc   :  { %v2301_v29 = vpop.f32.mrf.mxu0  ;;  %v2375_v30 = vpop.f32.mrf.mxu1 }
 0x5fd   :  { %v2380_v31 = vrot.slane %v2375_v30, 6  ;;  %v2306_v60 = vrot.slane %v2301_v29, 6 }
 0x5fe   :  { %v7072_v32 = vpop.f32.mrf.mxu0  ;;  %v7083_v33 = vpop.f32.mrf.mxu1 }
 0x5ff   :  { %v2382_v34 = vadd.f32 %v2380_v31, %v8223_v48  ;;  %v2308_v63 = vadd.f32 %v2306_v60, %v8221_v47 }
 0x601   :  { %v6309_v62 = vmul.f32 -1.442695, %v2382_v34 }
 0x603   :  { %7683 = vpow2.f32 %v6309_v62 }
 0x604   :  { %7685 = vtanh.f32 %v2308_v63 }
 0x607   :  { %v7680_v0 = vpop.eup %7679 }
 0x608   :  { %v7682_v1 = vpop.eup %7681  ;;  %v2396_v61 = vadd.f32 1.0, %v7680_v0 }
 0x609   :  { %v2386_v2 = vadd.f32 1.0, %v7682_v1 }
 0x60a   :  { %7687 = vrcp.f32 %v2396_v61 }
 0x60b   :  { %7689 = vrcp.f32 %v2386_v2 }
 0x610   :  { %v7684_v4 = vpop.eup %7683 }
 0x611   :  { %v7686_v3 = vpop.eup %7685  ;;  %v2405_v9 = vadd.f32 1.0, %v7684_v4 }
 0x613   :  { %7691 = vrcp.f32 %v2405_v9  ;;  %v3070_v9 = vld [vmem:[#allocation9 + $0x18] sm:$0xff] }
 0x617   :  { %v7688_v5 = vpop.eup %7687 }
 0x618   :  { %v7690_v7 = vpop.eup %7689  ;;  %v2400_v8 = vmul.f32 %v7688_v5, %v7686_v3 }
 0x619   :  { %v2392_v10 = vmul.f32 %v7690_v7, %v2390_v6 }
 0x61b   :  { %v8502_v11 = vadd.f32 %v2400_v8, %v2392_v10  ;;  %v3157_v10 = vld [vmem:[#allocation9 + $0x38] sm:$0xff] }
 0x61d   :  { %7693 = vtanh.f32 %v8502_v11  ;;  %v2718_v0 = vrot.slane %v8502_v11, 6  ;;  %v3069_v11 = vld [vmem:[#allocation9 + $0x10] sm:$0xff] }
 0x620   :  { %v7692_v12 = vpop.eup %7691 }
 0x62a   :  { %v7694_v14 = vpop.eup %7693 }
 0x62b   :  { %v2409_v15 = vmul.f32 %v7694_v14, %v7692_v12  ;;  %v3156_v12 = vld [vmem:[#allocation9 + $0x30] sm:$0xff]  ;;  %v3068_v14 = vld [vmem:[#allocation9 + $0x8] sm:$0xff] }
 0x62d   :  { %2410 = vst.msk [vmem:[#allocation2 + $0x8] sm:$0xc] %vm1108_vm3, %v2409_v15  ;;  %v2412_v13 = vrot.slane %v2409_v15, 2  ;;  %v3155_v15 = vld [vmem:[#allocation9 + $0x28] sm:$0xff] }
 0x62f   :  { %7093 = vmatmul.mubr.msk.f32.vlgmr.msra.gmra.mxu0 %vm104_vm0, %v2412_v13  ;;  %7104 = vmatmul.mubr.msk.f32.vlgmr.msra.gmra.mxu1 %vm104_vm0, %v2412_v13 }
 0x630   :  { %7107 = vmatpush3.msra.mxu0 %v8508_v16  ;;  %7118 = vmatpush3.msra.mxu1 %v8511_v35 }
 0x631   :  { %7108 = vmatprep.subr.mxu0 %v8011_v20  ;;  %7119 = vmatprep.subr.mxu1 %v8011_v20 }
 0x632   :  { %7109 = vmatpush3.msra.mxu0 %v8516_v17  ;;  %7120 = vmatpush3.msra.mxu1 %v8519_v36 }
 0x633   :  { %7110 = vmatprep.subr.mxu0 %v8011_v20  ;;  %7121 = vmatprep.subr.mxu1 %v8011_v20 }
 0x634   :  { %7111 = vmatpush3.msra.mxu0 %v8524_v37  ;;  %7122 = vmatpush3.msra.mxu1 %v8527_v38 }
 0x635   :  { %7112 = vmatprep.subr.mxu0 %v8011_v20  ;;  %7123 = vmatprep.subr.mxu1 %v8011_v20 }
 0x636   :  { %7113 = vmatpush3.msra.mxu0 %v8532_v41  ;;  %7114 = vmatprep.mubr.msk.f32.mxu0 %vm8012_vm1, %v8011_v20 }
 0x637   :  { %7124 = vmatpush3.msra.mxu1 %v8537_v42  ;;  %7125 = vmatprep.mubr.msk.f32.mxu1 %vm8012_vm1, %v8011_v20 }
 0x638   :  { %7115 = vmatmul.mubr.msk.f32.vlgmr.msra.gmra.mxu0 %vm104_vm0, %v2412_v13  ;;  %7126 = vmatmul.mubr.msk.f32.vlgmr.msra.gmra.mxu1 %vm104_vm0, %v2412_v13  ;;  %v3067_v13 = vld [vmem:[#allocation9] sm:$0xff] }
 0x639   :  { %7128 = vmatprep.subr.mxu0 %v8011_v20  ;;  %7139 = vmatprep.subr.mxu1 %v8011_v20 }
 0x63a   :  { %7129 = vmatpush3.msra.mxu0 %v7871_v43  ;;  %7140 = vmatpush3.msra.mxu1 %v7872_v44  ;;  %v3331_v43 = vld [vmem:[#allocation9 + $0x68] sm:$0xff]  ;;  %v3242_v44 = vld [vmem:[#allocation9 + $0x40] sm:$0xff] }
 0x63b   :  { %7130 = vmatprep.subr.mxu0 %v8011_v20  ;;  %7141 = vmatprep.subr.mxu1 %v8011_v20 }
 0x63c   :  { %7131 = vmatpush3.msra.mxu0 %v7873_v45  ;;  %7142 = vmatpush3.msra.mxu1 %v7874_v46  ;;  %v3330_v45 = vld [vmem:[#allocation9 + $0x60] sm:$0xff]  ;;  %v8601_v46 = vld [vmem:[#allocation10 + $0x18] sm:$0xff] }
 0x63d   :  { %7132 = vmatprep.subr.mxu0 %v8011_v20  ;;  %7143 = vmatprep.subr.mxu1 %v8011_v20 }
 0x63e   :  { %7133 = vmatpush3.msra.mxu0 %v7875_v49  ;;  %7144 = vmatpush3.msra.mxu1 %v7876_v50  ;;  %v8603_v49 = vld [vmem:[#allocation10 + $0x38] sm:$0xff]  ;;  %v8609_v50 = vld [vmem:[#allocation10 + $0x10] sm:$0xff] }
 0x63f   :  { %7134 = vmatprep.subr.mxu0 %v8011_v20  ;;  %7145 = vmatprep.subr.mxu1 %v8011_v20 }
 0x640   :  { %7135 = vmatpush3.msra.mxu0 %v7877_v53  ;;  %7146 = vmatpush3.msra.mxu1 %v7878_v54  ;;  %v8611_v53 = vld [vmem:[#allocation10 + $0x30] sm:$0xff]  ;;  %v8617_v54 = vld [vmem:[#allocation10 + $0x8] sm:$0xff] }
 0x641   :  { %7136 = vmatprep.mubr.msk.f32.mxu0 %vm8012_vm1, %v8011_v20  ;;  %7147 = vmatprep.mubr.msk.f32.mxu1 %vm8012_vm1, %v8011_v20 }
 0x642   :  { %7150 = vmatprep.subr.mxu0 %v8011_v20  ;;  %7161 = vmatprep.subr.mxu1 %v8011_v20 }
 0x6ef   :  { %v2481_v55 = vpop.f32.mrf.mxu0  ;;  %v2555_v56 = vpop.f32.mrf.mxu1 }
 0x6f0   :  { %v2486_v57 = vrot.slane %v2481_v55, 4  ;;  %v2560_v58 = vrot.slane %v2555_v56, 4  ;;  %v8619_v55 = vld [vmem:[#allocation10 + $0x28] sm:$0xff]  ;;  %v8625_v56 = vld [vmem:[#allocation10] sm:$0xff] }
 0x6f1   :  { %v7094_v51 = vpop.f32.mrf.mxu0  ;;  %v7105_v52 = vpop.f32.mrf.mxu1 }
 0x6f2   :  { %v2488_v59 = vadd.f32 %v2486_v57, %v8211_v39  ;;  %v2562_v18 = vadd.f32 %v2560_v58, %v8213_v40  ;;  %v8629_v57 = vld [vmem:[#allocation10 + $0x20] sm:$0xff]  ;;  %v8639_v58 = vld [vmem:[#allocation10 + $0x58] sm:$0xff]  ;;  %v8647_v52 = vld [vmem:[#allocation10 + $0x50] sm:$0xff] }
 0x6f3   :  { %v8641_v51 = vld [vmem:[#allocation10 + $0x78] sm:$0xff] }
 0x6f4   :  { %v6315_v19 = vmul.f32 -1.442695, %v2488_v59  ;;  %v6314_v21 = vmul.f32 -1.442695, %v2562_v18  ;;  %v8649_v59 = vld [vmem:[#allocation10 + $0x70] sm:$0xff]  ;;  %v8655_v18 = vld [vmem:[#allocation10 + $0x48] sm:$0xff] }
 0x6f6   :  { %7695 = vpow2.f32 %v6315_v19  ;;  %v8657_v19 = vld [vmem:[#allocation10 + $0x68] sm:$0xff] }
 0x6f7   :  { %7697 = vpow2.f32 %v6314_v21  ;;  %v8663_v21 = vld [vmem:[#allocation10 + $0x40] sm:$0xff] }
 0x6f8   :  { %v2629_v22 = vpop.f32.mrf.mxu0  ;;  %v2703_v23 = vpop.f32.mrf.mxu1 }
 0x6f9   :  { %v2708_v24 = vrot.slane %v2703_v23, 4  ;;  %v2634_v28 = vrot.slane %v2629_v22, 4  ;;  %v8667_v22 = vld [vmem:[#allocation10 + $0x60] sm:$0xff] }
 0x6fa   :  { %v7116_v25 = vpop.f32.mrf.mxu0  ;;  %v7127_v26 = vpop.f32.mrf.mxu1 }
 0x6fb   :  { %v2710_v27 = vadd.f32 %v2708_v24, %v8223_v48  ;;  %v2636_v30 = vadd.f32 %v2634_v28, %v8221_v47 }
 0x6fd   :  { %v6316_v29 = vmul.f32 -1.442695, %v2710_v27 }
 0x6ff   :  { %7699 = vpow2.f32 %v6316_v29 }
 0x700   :  { %7701 = vtanh.f32 %v2636_v30 }
 0x703   :  { %v7696_v31 = vpop.eup %7695 }
 0x704   :  { %v7698_v32 = vpop.eup %7697  ;;  %v2724_v33 = vadd.f32 1.0, %v7696_v31 }
 0x705   :  { %v2714_v34 = vadd.f32 1.0, %v7698_v32 }
 0x706   :  { %7703 = vrcp.f32 %v2724_v33 }
 0x707   :  { %7705 = vrcp.f32 %v2714_v34 }
 0x70c   :  { %v7700_v60 = vpop.eup %7699 }
 0x70d   :  { %v7702_v62 = vpop.eup %7701  ;;  %v2733_v2 = vadd.f32 1.0, %v7700_v60 }
 0x70f   :  { %7707 = vrcp.f32 %v2733_v2 }
 0x713   :  { %v7704_v63 = vpop.eup %7703 }
 0x714   :  { %v7706_v1 = vpop.eup %7705  ;;  %v2728_v61 = vmul.f32 %v7704_v63, %v7702_v62 }
 0x715   :  { %v2720_v4 = vmul.f32 %v7706_v1, %v2718_v0 }
 0x717   :  { %v8563_v3 = vadd.f32 %v2728_v61, %v2720_v4 }
 0x719   :  { %7709 = vtanh.f32 %v8563_v3 }
 0x71c   :  { %v7708_v5 = vpop.eup %7707 }
 0x726   :  { %v7710_v6 = vpop.eup %7709 }
 0x727   :  { %v2737_v7 = vmul.f32 %v7710_v6, %v7708_v5  ;;  %v6328_v5 = vld [vmem:[%s9170_s6 + $0x1] ss:$0 sm:$0xff] }
 0x729   :  { %2738 = vst.msk [vmem:[#allocation2 + $0x8] sm:$0x30] %vm1437_vm4, %v2737_v7  ;;  %v2740_v8 = vrot.slane %v2737_v7, 4 }
 0x72b   :  { %7137 = vmatmul.mubr.msk.f32.vlgmr.msra.gmra.mxu0 %vm104_vm0, %v2740_v8  ;;  %7148 = vmatmul.mubr.msk.f32.vlgmr.msra.gmra.mxu1 %vm104_vm0, %v2740_v8 }
 0x72c   :  { %7151 = vmatpush3.msra.mxu0 %v8508_v16  ;;  %7162 = vmatpush3.msra.mxu1 %v8511_v35  ;;  %v3154_v16 = vld [vmem:[#allocation9 + $0x20] sm:$0xff] }
 0x72d   :  { %7152 = vmatprep.subr.mxu0 %v8011_v20  ;;  %7163 = vmatprep.subr.mxu1 %v8011_v20  ;;  %v7879_v35 = vld [vmem:[%s9164_s0] sm:$0xff] }
 0x72e   :  { %7153 = vmatpush3.msra.mxu0 %v8516_v17  ;;  %7164 = vmatpush3.msra.mxu1 %v8519_v36  ;;  %v3245_v17 = vld [vmem:[#allocation9 + $0x58] sm:$0xff] }
 0x72f   :  { %7154 = vmatprep.subr.mxu0 %v8011_v20  ;;  %7165 = vmatprep.subr.mxu1 %v8011_v20  ;;  %v3333_v36 = vld [vmem:[#allocation9 + $0x78] sm:$0xff] }
 0x730   :  { %7155 = vmatpush3.msra.mxu0 %v8524_v37  ;;  %7166 = vmatpush3.msra.mxu1 %v8527_v38  ;;  %v7880_v37 = vld [vmem:[%s9164_s0 + $0x8] sm:$0xff]  ;;  %v3244_v38 = vld [vmem:[#allocation9 + $0x50] sm:$0xff] }
 0x731   :  { %7156 = vmatprep.subr.mxu0 %v8011_v20  ;;  %7167 = vmatprep.subr.mxu1 %v8011_v20 }
 0x732   :  { %7157 = vmatpush3.msra.mxu0 %v8532_v41  ;;  %7158 = vmatprep.mubr.msk.f32.mxu0 %vm8012_vm1, %v8011_v20  ;;  %v3332_v41 = vld [vmem:[#allocation9 + $0x70] sm:$0xff] }
 0x733   :  { %7168 = vmatpush3.msra.mxu1 %v8537_v42  ;;  %7169 = vmatprep.mubr.msk.f32.mxu1 %vm8012_vm1, %v8011_v20  ;;  %v3243_v42 = vld [vmem:[#allocation9 + $0x48] sm:$0xff] }
 0x734   :  { %7159 = vmatmul.mubr.msk.f32.vlgmr.msra.gmra.mxu0 %vm104_vm0, %v2740_v8  ;;  %7170 = vmatmul.mubr.msk.f32.vlgmr.msra.gmra.mxu1 %vm104_vm0, %v2740_v8 }
 0x735   :  { %7172 = vmatprep.subr.mxu0 %v3070_v9  ;;  %7183 = vmatprep.subr.mxu1 %v3157_v10 }
 0x736   :  { %7173 = vmatpush3.msra.mxu0 %v3070_v9  ;;  %7184 = vmatpush3.msra.mxu1 %v3157_v10 }
 0x737   :  { %7174 = vmatprep.subr.mxu0 %v3069_v11  ;;  %7185 = vmatprep.subr.mxu1 %v3156_v12 }
 0x738   :  { %7175 = vmatpush3.msra.mxu0 %v3069_v11  ;;  %7186 = vmatpush3.msra.mxu1 %v3156_v12 }
 0x739   :  { %7176 = vmatprep.subr.mxu0 %v3068_v14  ;;  %7187 = vmatprep.subr.mxu1 %v3155_v15 }
 0x73a   :  { %7177 = vmatpush3.msra.mxu0 %v3068_v14  ;;  %7188 = vmatpush3.msra.mxu1 %v3155_v15  ;;  %v6332_v14 = vld [vmem:[%s9170_s6 + $0x2] ss:$0 sm:$0xff] }
 0x73b   :  { %7178 = vmatprep.subr.mxu0 %v3067_v13  ;;  %7189 = vmatprep.subr.mxu1 %v3154_v16 }
 0x73c   :  { %7179 = vmatpush3.msra.mxu0 %v3067_v13  ;;  %7180 = vmatprep.mubr.msk.f32.mxu0 %vm104_vm0, %v7879_v35  ;;  %v6336_v13 = vld [vmem:[%s9170_s6 + $0x3] ss:$0 sm:$0xff] }
 0x73d   :  { %7190 = vmatpush3.msra.mxu1 %v3154_v16  ;;  %7191 = vmatprep.mubr.msk.f32.mxu1 %vm104_vm0, %v7879_v35 }
 0x73e   :  { %7181 = vmatmul.mubr.msk.f32.vlgmr.msra.gmra.mxu0 %vm104_vm0, %v7880_v37  ;;  %7192 = vmatmul.mubr.msk.f32.vlgmr.msra.gmra.mxu1 %vm104_vm0, %v7880_v37 }
 0x73f   :  { %7194 = vmatprep.subr.mxu0 %v3245_v17  ;;  %7205 = vmatprep.subr.mxu1 %v3333_v36 }
 0x740   :  { %7195 = vmatpush3.msra.mxu0 %v3245_v17  ;;  %7206 = vmatpush3.msra.mxu1 %v3333_v36 }
 0x741   :  { %7196 = vmatprep.subr.mxu0 %v3244_v38  ;;  %7207 = vmatprep.subr.mxu1 %v3332_v41 }
 0x742   :  { %7197 = vmatpush3.msra.mxu0 %v3244_v38  ;;  %7208 = vmatpush3.msra.mxu1 %v3332_v41 }
 0x743   :  { %7198 = vmatprep.subr.mxu0 %v3243_v42  ;;  %7209 = vmatprep.subr.mxu1 %v3331_v43 }
 0x744   :  { %7199 = vmatpush3.msra.mxu0 %v3243_v42  ;;  %7210 = vmatpush3.msra.mxu1 %v3331_v43  ;;  %v3046_v42 = vrot.slane %v8563_v3, 6 }
 0x745   :  { %7200 = vmatprep.subr.mxu0 %v3242_v44  ;;  %7211 = vmatprep.subr.mxu1 %v3330_v45 }
 0x746   :  { %7201 = vmatpush3.msra.mxu0 %v3242_v44  ;;  %7202 = vmatprep.mubr.msk.f32.mxu0 %vm104_vm0, %v7879_v35 }
 0x747   :  { %7212 = vmatpush3.msra.mxu1 %v3330_v45  ;;  %7213 = vmatprep.mubr.msk.f32.mxu1 %vm104_vm0, %v7879_v35 }
 0x748   :  { %7203 = vmatmul.mubr.msk.f32.vlgmr.msra.gmra.mxu0 %vm104_vm0, %v7880_v37  ;;  %7214 = vmatmul.mubr.msk.f32.vlgmr.msra.gmra.mxu1 %vm104_vm0, %v7880_v37 }
 0x749   :  { %7216 = vmatprep.subr.mxu0 %v8011_v20  ;;  %7227 = vmatprep.subr.mxu1 %v8011_v20 }
 0x74a   :  { %7217 = vmatpush3.msra.mxu0 %v8601_v46  ;;  %7228 = vmatpush3.msra.mxu1 %v8603_v49 }
 0x74b   :  { %7218 = vmatprep.subr.mxu0 %v8011_v20  ;;  %7229 = vmatprep.subr.mxu1 %v8011_v20 }
 0x74c   :  { %7219 = vmatpush3.msra.mxu0 %v8609_v50  ;;  %7230 = vmatpush3.msra.mxu1 %v8611_v53 }
 0x74d   :  { %7220 = vmatprep.subr.mxu0 %v8011_v20  ;;  %7231 = vmatprep.subr.mxu1 %v8011_v20 }
 0x74e   :  { %7221 = vmatpush3.msra.mxu0 %v8617_v54  ;;  %7232 = vmatpush3.msra.mxu1 %v8619_v55 }
 0x74f   :  { %7222 = vmatprep.subr.mxu0 %v8011_v20  ;;  %7233 = vmatprep.subr.mxu1 %v8011_v20 }
 0x750   :  { %7223 = vmatpush3.msra.mxu0 %v8625_v56  ;;  %7224 = vmatprep.mubr.msk.f32.mxu0 %vm8012_vm1, %v8011_v20 }
 0x751   :  { %7234 = vmatpush3.msra.mxu1 %v8629_v57  ;;  %7235 = vmatprep.mubr.msk.f32.mxu1 %vm8012_vm1, %v8011_v20 }
 0x752   :  { %7225 = vmatmul.mubr.f32.vlgmr.msra.gmra.mxu0 %v8011_v20  ;;  %7236 = vmatmul.mubr.f32.vlgmr.msra.gmra.mxu1 %v8011_v20 }
 0x753   :  { %7238 = vmatprep.subr.mxu0 %v8011_v20  ;;  %7249 = vmatprep.subr.mxu1 %v8011_v20 }
 0x754   :  { %7239 = vmatpush3.msra.mxu0 %v8639_v58  ;;  %7250 = vmatpush3.msra.mxu1 %v8641_v51 }
 0x755   :  { %7240 = vmatprep.subr.mxu0 %v8011_v20  ;;  %7251 = vmatprep.subr.mxu1 %v8011_v20 }
 0x756   :  { %7241 = vmatpush3.msra.mxu0 %v8647_v52  ;;  %7252 = vmatpush3.msra.mxu1 %v8649_v59 }
 0x757   :  { %7242 = vmatprep.subr.mxu0 %v8011_v20  ;;  %7253 = vmatprep.subr.mxu1 %v8011_v20 }
 0x758   :  { %7243 = vmatpush3.msra.mxu0 %v8655_v18  ;;  %7254 = vmatpush3.msra.mxu1 %v8657_v19 }
 0x759   :  { %7244 = vmatprep.subr.mxu0 %v8011_v20  ;;  %7255 = vmatprep.subr.mxu1 %v8011_v20 }
 0x75a   :  { %7245 = vmatpush3.msra.mxu0 %v8663_v21  ;;  %7246 = vmatprep.mubr.msk.f32.mxu0 %vm8012_vm1, %v8011_v20 }
 0x75b   :  { %7256 = vmatpush3.msra.mxu1 %v8667_v22  ;;  %7257 = vmatprep.mubr.msk.f32.mxu1 %vm8012_vm1, %v8011_v20 }
 0x75c   :  { %7247 = vmatmul.mubr.f32.vlgmr.msra.gmra.mxu0 %v8011_v20  ;;  %7258 = vmatmul.mubr.f32.vlgmr.msra.gmra.mxu1 %v8011_v20 }
 0x75d   :  { %7260 = vmatprep.subr.mxu0 %v8011_v20  ;;  %7271 = vmatprep.subr.mxu1 %v8011_v20 }
 0x75e   :  { %7261 = vmatpush3.msra.mxu0 %v8601_v46  ;;  %7272 = vmatpush3.msra.mxu1 %v8603_v49 }
 0x75f   :  { %7262 = vmatprep.subr.mxu0 %v8011_v20  ;;  %7273 = vmatprep.subr.mxu1 %v8011_v20 }
 0x760   :  { %7263 = vmatpush3.msra.mxu0 %v8609_v50  ;;  %7274 = vmatpush3.msra.mxu1 %v8611_v53 }
 0x761   :  { %7264 = vmatprep.subr.mxu0 %v8011_v20  ;;  %7275 = vmatprep.subr.mxu1 %v8011_v20 }
 0x762   :  { %7265 = vmatpush3.msra.mxu0 %v8617_v54  ;;  %7276 = vmatpush3.msra.mxu1 %v8619_v55 }
 0x763   :  { %7266 = vmatprep.subr.mxu0 %v8011_v20  ;;  %7277 = vmatprep.subr.mxu1 %v8011_v20 }
 0x764   :  { %7267 = vmatpush3.msra.mxu0 %v8625_v56  ;;  %7278 = vmatpush3.msra.mxu1 %v8629_v57 }
 0x765   :  { %7268 = vmatprep.mubr.msk.f32.mxu0 %vm8012_vm1, %v8011_v20  ;;  %7279 = vmatprep.mubr.msk.f32.mxu1 %vm8012_vm1, %v8011_v20 }
 0x766   :  { %7282 = vmatprep.subr.mxu0 %v8011_v20  ;;  %7293 = vmatprep.subr.mxu1 %v8011_v20 }
 0x7eb   :  { %v2809_v23 = vpop.f32.mrf.mxu0  ;;  %v2883_v24 = vpop.f32.mrf.mxu1 }
 0x7ec   :  { %v2814_v25 = vrot.slane %v2809_v23, 2  ;;  %v2888_v26 = vrot.slane %v2883_v24, 2 }
 0x7ed   :  { %v7138_v27 = vpop.f32.mrf.mxu0  ;;  %v7149_v28 = vpop.f32.mrf.mxu1 }
 0x7ee   :  { %v2816_v29 = vadd.f32 %v2814_v25, %v8211_v39  ;;  %v2890_v30 = vadd.f32 %v2888_v26, %v8213_v40  ;;  %v6324_v39 = vld [vmem:[%s9170_s6] ss:$0 sm:$0xff] }
 0x7f0   :  { %v6322_v31 = vmul.f32 -1.442695, %v2816_v29  ;;  %v6321_v32 = vmul.f32 -1.442695, %v2890_v30 }
 0x7f2   :  { %7711 = vpow2.f32 %v6322_v31 }
 0x7f3   :  { %7713 = vpow2.f32 %v6321_v32 }
 0x7f4   :  { %v2957_v33 = vpop.f32.mrf.mxu0  ;;  %v3031_v34 = vpop.f32.mrf.mxu1 }
 0x7f5   :  { %v3036_v60 = vrot.slane %v3031_v34, 2  ;;  %v2962_v1 = vrot.slane %v2957_v33, 2 }
 0x7f6   :  { %v7160_v62 = vpop.f32.mrf.mxu0  ;;  %v7171_v63 = vpop.f32.mrf.mxu1 }
 0x7f7   :  { %v3038_v0 = vadd.f32 %v3036_v60, %v8223_v48  ;;  %v2964_v2 = vadd.f32 %v2962_v1, %v8221_v47 }
 0x7f9   :  { %v6323_v61 = vmul.f32 -1.442695, %v3038_v0 }
 0x7fb   :  { %7715 = vpow2.f32 %v6323_v61 }
 0x7fc   :  { %7717 = vtanh.f32 %v2964_v2 }
 0x7fe   :  { %v7182_v4 = vpop.f32.mrf.mxu0  ;;  %v7193_v40 = vpop.f32.mrf.mxu1 }
 0x7ff   :  { %v7712_v6 = vpop.eup %7711  ;;  %v8726_v24 = vadd.f32 %v7182_v4, %v6324_v39  ;;  %v8728_v28 = vadd.f32 %v7193_v40, %v6328_v5 }
 0x800   :  { %v7714_v7 = vpop.eup %7713  ;;  %v3052_v8 = vadd.f32 1.0, %v7712_v6  ;;  %v3144_v9 = vpop.f32.mrf.mxu0 }
 0x801   :  { %v3232_v48 = vpop.f32.mrf.mxu1  ;;  %v3042_v10 = vadd.f32 1.0, %v7714_v7  ;;  %v8711_v11 = vadd.f32 %v6324_v39, %v3144_v9 }
 0x802   :  { %v8713_v47 = vadd.f32 %v6328_v5, %v3232_v48  ;;  %7719 = vrcp.f32 %v3052_v8 }
 0x803   :  { %7721 = vrcp.f32 %v3042_v10 }
 0x808   :  { %v7204_v12 = vpop.f32.mrf.mxu0  ;;  %v7215_v15 = vpop.f32.mrf.mxu1 }
 0x809   :  { %v7716_v37 = vpop.eup %7715  ;;  %v8732_v0 = vadd.f32 %v7215_v15, %v6336_v13  ;;  %v8735_v6 = vadd.f32 %v7204_v12, %v6332_v14 }
 0x80a   :  { %v3320_v16 = vpop.f32.mrf.mxu0  ;;  %v3408_v35 = vpop.f32.mrf.mxu1  ;;  %v3061_v45 = vadd.f32 1.0, %v7716_v37 }
 0x80b   :  { %v8721_v17 = vadd.f32 %v6332_v14, %v3320_v16  ;;  %v8723_v36 = vadd.f32 %v6336_v13, %v3408_v35  ;;  %v7718_v38 = vpop.eup %7717 }
 0x80c   :  { %7723 = vrcp.f32 %v3061_v45 }
 0x80f   :  { %v7720_v41 = vpop.eup %7719 }
 0x810   :  { %v7722_v43 = vpop.eup %7721  ;;  %v3056_v44 = vmul.f32 %v7720_v41, %v7718_v38 }
 0x811   :  { %v3048_v23 = vmul.f32 %v7722_v43, %v3046_v42 }
 0x812   :  { %v3502_v25 = vpop.f32.mrf.mxu0  ;;  %v3576_v26 = vpop.f32.mrf.mxu1 }
 0x813   :  { %v3057_v27 = vadd.f32 %v3056_v44, %v3048_v23  ;;  %v3507_v29 = vrot.slane %v3502_v25, 2  ;;  %v3581_v30 = vrot.slane %v3576_v26, 2 }
 0x814   :  { %v7226_v31 = vpop.f32.mrf.mxu0  ;;  %v7237_v32 = vpop.f32.mrf.mxu1 }
 0x815   :  { %7725 = vtanh.f32 %v3057_v27  ;;  %v3509_v33 = vadd.f32 %v3507_v29, %v8726_v24  ;;  %v3583_v3 = vadd.f32 %v3581_v30, %v8728_v28 }
 0x817   :  { %v6340_v34 = vmul.f32 -1.442695, %v3509_v33  ;;  %v6339_v60 = vmul.f32 -1.442695, %v3583_v3 }
 0x819   :  { %7727 = vpow2.f32 %v6340_v34  ;;  %v7724_v40 = vpop.eup %7723 }
 0x81a   :  { %7729 = vpow2.f32 %v6339_v60 }
 0x81c   :  { %v3650_v62 = vpop.f32.mrf.mxu0  ;;  %v3724_v63 = vpop.f32.mrf.mxu1 }
 0x81d   :  { %v3729_v1 = vrot.slane %v3724_v63, 2  ;;  %v3655_v39 = vrot.slane %v3650_v62, 2 }
 0x81e   :  { %v7248_v61 = vpop.f32.mrf.mxu0  ;;  %v7259_v2 = vpop.f32.mrf.mxu1 }
 0x81f   :  { %v3731_v4 = vadd.f32 %v3729_v1, %v8732_v0  ;;  %v3657_v9 = vadd.f32 %v3655_v39, %v8735_v6 }
 0x821   :  { %v6341_v8 = vmul.f32 -1.442695, %v3731_v4 }
 0x822   :  { %v7726_v5 = vpop.eup %7725 }
 0x823   :  { %v3065_v7 = vmul.f32 %v7726_v5, %v7724_v40  ;;  %7731 = vpow2.f32 %v6341_v8 }
 0x824   :  { %7733 = vtanh.f32 %v3657_v9 }
 0x825   :  { %3066 = vst.msk [vmem:[#allocation2 + $0x8] sm:$0xc0] %vm1766_vm5, %v3065_v7 }
 0x826   :  { %v7728_v48 = vpop.eup %7727 }
 0x827   :  { %v7730_v10 = vpop.eup %7729  ;;  %v3742_v15 = vadd.f32 1.0, %v7728_v48 }
 0x828   :  { %v3735_v13 = vadd.f32 1.0, %v7730_v10 }
 0x829   :  { %7735 = vrcp.f32 %v3742_v15 }
 0x82a   :  { %7737 = vrcp.f32 %v3735_v13 }
 0x830   :  { %v7732_v16 = vpop.eup %7731 }
 0x831   :  { %v7734_v35 = vpop.eup %7733  ;;  %v3751_v14 = vadd.f32 1.0, %v7732_v16 }
 0x833   :  { %7739 = vrcp.f32 %v3751_v14 }
 0x836   :  { %v7736_v37 = vpop.eup %7735 }
 0x837   :  { %v7738_v38 = vpop.eup %7737  ;;  %v3746_v12 = vmul.f32 %v7736_v37, %v7734_v35 }
 0x838   :  { %v3738_v41 = vmul.f32 0.0, %v7738_v38 }
 0x83a   :  { %v8739_v42 = vadd.f32 %v3746_v12, %v3738_v41 }
 0x83c   :  { %7741 = vtanh.f32 %v8739_v42  ;;  %v4064_v13 = vrot.slane %v8739_v42, 2 }
 0x840   :  { %v7740_v43 = vpop.eup %7739 }
 0x849   :  { %v7742_v44 = vpop.eup %7741 }
 0x84a   :  { %v3755_v45 = vmul.f32 %v7742_v44, %v7740_v43 }
 0x84c   :  { %3756 = vst.msk [vmem:[#allocation3 + $0x8] sm:$0xc0] %vm1766_vm5, %v3755_v45  ;;  %v3758_v23 = vrot.slane %v3755_v45, 6 }
 0x84e   :  { %7269 = vmatmul.mubr.msk.f32.vlgmr.msra.gmra.mxu0 %vm104_vm0, %v3758_v23  ;;  %7280 = vmatmul.mubr.msk.f32.vlgmr.msra.gmra.mxu1 %vm104_vm0, %v3758_v23 }
 0x84f   :  { %7283 = vmatpush3.msra.mxu0 %v8639_v58  ;;  %7294 = vmatpush3.msra.mxu1 %v8641_v51 }
 0x850   :  { %7284 = vmatprep.subr.mxu0 %v8011_v20  ;;  %7295 = vmatprep.subr.mxu1 %v8011_v20 }
 0x851   :  { %7285 = vmatpush3.msra.mxu0 %v8647_v52  ;;  %7296 = vmatpush3.msra.mxu1 %v8649_v59 }
 0x852   :  { %7286 = vmatprep.subr.mxu0 %v8011_v20  ;;  %7297 = vmatprep.subr.mxu1 %v8011_v20 }
 0x853   :  { %7287 = vmatpush3.msra.mxu0 %v8655_v18  ;;  %7298 = vmatpush3.msra.mxu1 %v8657_v19 }
 0x854   :  { %7288 = vmatprep.subr.mxu0 %v8011_v20  ;;  %7299 = vmatprep.subr.mxu1 %v8011_v20 }
 0x855   :  { %7289 = vmatpush3.msra.mxu0 %v8663_v21  ;;  %7290 = vmatprep.mubr.msk.f32.mxu0 %vm8012_vm1, %v8011_v20 }
 0x856   :  { %7300 = vmatpush3.msra.mxu1 %v8667_v22  ;;  %7301 = vmatprep.mubr.msk.f32.mxu1 %vm8012_vm1, %v8011_v20 }
 0x857   :  { %7291 = vmatmul.mubr.msk.f32.vlgmr.msra.gmra.mxu0 %vm104_vm0, %v3758_v23  ;;  %7302 = vmatmul.mubr.msk.f32.vlgmr.msra.gmra.mxu1 %vm104_vm0, %v3758_v23 }
 0x858   :  { %7304 = vmatprep.subr.mxu0 %v8011_v20  ;;  %7315 = vmatprep.subr.mxu1 %v8011_v20 }
 0x859   :  { %7305 = vmatpush3.msra.mxu0 %v8601_v46  ;;  %7316 = vmatpush3.msra.mxu1 %v8603_v49 }
 0x85a   :  { %7306 = vmatprep.subr.mxu0 %v8011_v20  ;;  %7317 = vmatprep.subr.mxu1 %v8011_v20 }
 0x85b   :  { %7307 = vmatpush3.msra.mxu0 %v8609_v50  ;;  %7318 = vmatpush3.msra.mxu1 %v8611_v53 }
 0x85c   :  { %7308 = vmatprep.subr.mxu0 %v8011_v20  ;;  %7319 = vmatprep.subr.mxu1 %v8011_v20 }
 0x85d   :  { %7309 = vmatpush3.msra.mxu0 %v8617_v54  ;;  %7320 = vmatpush3.msra.mxu1 %v8619_v55 }
 0x85e   :  { %7310 = vmatprep.subr.mxu0 %v8011_v20  ;;  %7321 = vmatprep.subr.mxu1 %v8011_v20 }
 0x85f   :  { %7311 = vmatpush3.msra.mxu0 %v8625_v56  ;;  %7322 = vmatpush3.msra.mxu1 %v8629_v57 }
 0x860   :  { %7312 = vmatprep.mubr.msk.f32.mxu0 %vm8012_vm1, %v8011_v20  ;;  %7323 = vmatprep.mubr.msk.f32.mxu1 %vm8012_vm1, %v8011_v20 }
 0x861   :  { %7326 = vmatprep.subr.mxu0 %v8011_v20  ;;  %7337 = vmatprep.subr.mxu1 %v8011_v20 }
 0x90e   :  { %v3827_v25 = vpop.f32.mrf.mxu0  ;;  %v3901_v26 = vpop.f32.mrf.mxu1 }
 0x90f   :  { %v3832_v27 = vrot.slane %v3827_v25, 4  ;;  %v3906_v29 = vrot.slane %v3901_v26, 4 }
 0x910   :  { %v7270_v30 = vpop.f32.mrf.mxu0  ;;  %v7281_v31 = vpop.f32.mrf.mxu1 }
 0x911   :  { %v3834_v32 = vadd.f32 %v3832_v27, %v8726_v24  ;;  %v3908_v33 = vadd.f32 %v3906_v29, %v8728_v28 }
 0x913   :  { %v6347_v3 = vmul.f32 -1.442695, %v3834_v32  ;;  %v6346_v34 = vmul.f32 -1.442695, %v3908_v33 }
 0x915   :  { %7743 = vpow2.f32 %v6347_v3 }
 0x916   :  { %7745 = vpow2.f32 %v6346_v34 }
 0x917   :  { %v3975_v60 = vpop.f32.mrf.mxu0  ;;  %v4049_v62 = vpop.f32.mrf.mxu1 }
 0x918   :  { %v4054_v63 = vrot.slane %v4049_v62, 4  ;;  %v3980_v4 = vrot.slane %v3975_v60, 4 }
 0x919   :  { %v7292_v1 = vpop.f32.mrf.mxu0  ;;  %v7303_v61 = vpop.f32.mrf.mxu1 }
 0x91a   :  { %v4056_v2 = vadd.f32 %v4054_v63, %v8732_v0  ;;  %v3982_v40 = vadd.f32 %v3980_v4, %v8735_v6 }
 0x91c   :  { %v6348_v39 = vmul.f32 -1.442695, %v4056_v2 }
 0x91e   :  { %7747 = vpow2.f32 %v6348_v39 }
 0x91f   :  { %7749 = vtanh.f32 %v3982_v40 }
 0x922   :  { %v7744_v5 = vpop.eup %7743 }
 0x923   :  { %v7746_v7 = vpop.eup %7745  ;;  %v4070_v8 = vadd.f32 1.0, %v7744_v5 }
 0x924   :  { %v4060_v9 = vadd.f32 1.0, %v7746_v7 }
 0x925   :  { %7751 = vrcp.f32 %v4070_v8 }
 0x926   :  { %7753 = vrcp.f32 %v4060_v9 }
 0x92b   :  { %v7748_v48 = vpop.eup %7747 }
 0x92c   :  { %v7750_v10 = vpop.eup %7749  ;;  %v4079_v37 = vadd.f32 1.0, %v7748_v48 }
 0x92e   :  { %7755 = vrcp.f32 %v4079_v37 }
 0x932   :  { %v7752_v15 = vpop.eup %7751 }
 0x933   :  { %v7754_v16 = vpop.eup %7753  ;;  %v4074_v35 = vmul.f32 %v7752_v15, %v7750_v10 }
 0x934   :  { %v4066_v38 = vmul.f32 %v7754_v16, %v4064_v13 }
 0x936   :  { %v8792_v12 = vadd.f32 %v4074_v35, %v4066_v38 }
 0x938   :  { %7757 = vtanh.f32 %v8792_v12  ;;  %v4392_v48 = vrot.slane %v8792_v12, 2 }
 0x93b   :  { %v7756_v14 = vpop.eup %7755 }
 0x945   :  { %v7758_v41 = vpop.eup %7757 }
 0x946   :  { %v4083_v43 = vmul.f32 %v7758_v41, %v7756_v14 }
 0x948   :  { %4084 = vst.msk [vmem:[#allocation3 + $0x8] sm:$0x30] %vm1437_vm4, %v4083_v43  ;;  %v4086_v44 = vrot.slane %v4083_v43, 4 }
 0x94a   :  { %7313 = vmatmul.mubr.msk.f32.vlgmr.msra.gmra.mxu0 %vm104_vm0, %v4086_v44  ;;  %7324 = vmatmul.mubr.msk.f32.vlgmr.msra.gmra.mxu1 %vm104_vm0, %v4086_v44 }
 0x94b   :  { %7327 = vmatpush3.msra.mxu0 %v8639_v58  ;;  %7338 = vmatpush3.msra.mxu1 %v8641_v51 }
 0x94c   :  { %7328 = vmatprep.subr.mxu0 %v8011_v20  ;;  %7339 = vmatprep.subr.mxu1 %v8011_v20 }
 0x94d   :  { %7329 = vmatpush3.msra.mxu0 %v8647_v52  ;;  %7340 = vmatpush3.msra.mxu1 %v8649_v59 }
 0x94e   :  { %7330 = vmatprep.subr.mxu0 %v8011_v20  ;;  %7341 = vmatprep.subr.mxu1 %v8011_v20 }
 0x94f   :  { %7331 = vmatpush3.msra.mxu0 %v8655_v18  ;;  %7342 = vmatpush3.msra.mxu1 %v8657_v19 }
 0x950   :  { %7332 = vmatprep.subr.mxu0 %v8011_v20  ;;  %7343 = vmatprep.subr.mxu1 %v8011_v20 }
 0x951   :  { %7333 = vmatpush3.msra.mxu0 %v8663_v21  ;;  %7334 = vmatprep.mubr.msk.f32.mxu0 %vm8012_vm1, %v8011_v20 }
 0x952   :  { %7344 = vmatpush3.msra.mxu1 %v8667_v22  ;;  %7345 = vmatprep.mubr.msk.f32.mxu1 %vm8012_vm1, %v8011_v20 }
 0x953   :  { %7335 = vmatmul.mubr.msk.f32.vlgmr.msra.gmra.mxu0 %vm104_vm0, %v4086_v44  ;;  %7346 = vmatmul.mubr.msk.f32.vlgmr.msra.gmra.mxu1 %vm104_vm0, %v4086_v44 }
 0x954   :  { %7348 = vmatprep.subr.mxu0 %v8011_v20  ;;  %7359 = vmatprep.subr.mxu1 %v8011_v20 }
 0x955   :  { %7349 = vmatpush3.msra.mxu0 %v8601_v46  ;;  %7360 = vmatpush3.msra.mxu1 %v8603_v49 }
 0x956   :  { %7350 = vmatprep.subr.mxu0 %v8011_v20  ;;  %7361 = vmatprep.subr.mxu1 %v8011_v20 }
 0x957   :  { %7351 = vmatpush3.msra.mxu0 %v8609_v50  ;;  %7362 = vmatpush3.msra.mxu1 %v8611_v53 }
 0x958   :  { %7352 = vmatprep.subr.mxu0 %v8011_v20  ;;  %7363 = vmatprep.subr.mxu1 %v8011_v20 }
 0x959   :  { %7353 = vmatpush3.msra.mxu0 %v8617_v54  ;;  %7364 = vmatpush3.msra.mxu1 %v8619_v55 }
 0x95a   :  { %7354 = vmatprep.subr.mxu0 %v8011_v20  ;;  %7365 = vmatprep.subr.mxu1 %v8011_v20 }
 0x95b   :  { %7355 = vmatpush3.msra.mxu0 %v8625_v56  ;;  %7366 = vmatpush3.msra.mxu1 %v8629_v57 }
 0x95c   :  { %7356 = vmatprep.mubr.msk.f32.mxu0 %vm8012_vm1, %v8011_v20  ;;  %7367 = vmatprep.mubr.msk.f32.mxu1 %vm8012_vm1, %v8011_v20 }
 0x95d   :  { %7370 = vmatprep.subr.mxu0 %v8011_v20  ;;  %7381 = vmatprep.subr.mxu1 %v8011_v20 }
 0xa0a   :  { %v4155_v42 = vpop.f32.mrf.mxu0  ;;  %v4229_v45 = vpop.f32.mrf.mxu1 }
 0xa0b   :  { %v4160_v23 = vrot.slane %v4155_v42, 6  ;;  %v4234_v25 = vrot.slane %v4229_v45, 6 }
 0xa0c   :  { %v7314_v26 = vpop.f32.mrf.mxu0  ;;  %v7325_v27 = vpop.f32.mrf.mxu1 }
 0xa0d   :  { %v4162_v29 = vadd.f32 %v4160_v23, %v8726_v24  ;;  %v4236_v30 = vadd.f32 %v4234_v25, %v8728_v28 }
 0xa0f   :  { %v6354_v31 = vmul.f32 -1.442695, %v4162_v29  ;;  %v6353_v32 = vmul.f32 -1.442695, %v4236_v30 }
 0xa11   :  { %7759 = vpow2.f32 %v6354_v31 }
 0xa12   :  { %7761 = vpow2.f32 %v6353_v32 }
 0xa13   :  { %v4303_v33 = vpop.f32.mrf.mxu0  ;;  %v4377_v3 = vpop.f32.mrf.mxu1 }
 0xa14   :  { %v4382_v34 = vrot.slane %v4377_v3, 6  ;;  %v4308_v1 = vrot.slane %v4303_v33, 6 }
 0xa15   :  { %v7336_v60 = vpop.f32.mrf.mxu0  ;;  %v7347_v62 = vpop.f32.mrf.mxu1 }
 0xa16   :  { %v4384_v63 = vadd.f32 %v4382_v34, %v8732_v0  ;;  %v4310_v2 = vadd.f32 %v4308_v1, %v8735_v6 }
 0xa18   :  { %v6355_v61 = vmul.f32 -1.442695, %v4384_v63 }
 0xa1a   :  { %7763 = vpow2.f32 %v6355_v61 }
 0xa1b   :  { %7765 = vtanh.f32 %v4310_v2 }
 0xa1e   :  { %v7760_v4 = vpop.eup %7759 }
 0xa1f   :  { %v7762_v39 = vpop.eup %7761  ;;  %v4398_v40 = vadd.f32 1.0, %v7760_v4 }
 0xa20   :  { %v4388_v5 = vadd.f32 1.0, %v7762_v39 }
 0xa21   :  { %7767 = vrcp.f32 %v4398_v40 }
 0xa22   :  { %7769 = vrcp.f32 %v4388_v5 }
 0xa27   :  { %v7764_v7 = vpop.eup %7763 }
 0xa28   :  { %v7766_v8 = vpop.eup %7765  ;;  %v4407_v13 = vadd.f32 1.0, %v7764_v7 }
 0xa2a   :  { %7771 = vrcp.f32 %v4407_v13 }
 0xa2e   :  { %v7768_v9 = vpop.eup %7767 }
 0xa2f   :  { %v7770_v10 = vpop.eup %7769  ;;  %v4402_v15 = vmul.f32 %v7768_v9, %v7766_v8 }
 0xa30   :  { %v4394_v16 = vmul.f32 %v7770_v10, %v4392_v48 }
 0xa32   :  { %v8845_v35 = vadd.f32 %v4402_v15, %v4394_v16 }
 0xa34   :  { %7773 = vtanh.f32 %v8845_v35  ;;  %v4708_v61 = vrot.slane %v8845_v35, 2 }
 0xa37   :  { %v7772_v37 = vpop.eup %7771 }
 0xa41   :  { %v7774_v38 = vpop.eup %7773 }
 0xa42   :  { %v4411_v14 = vmul.f32 %v7774_v38, %v7772_v37 }
 0xa44   :  { %4412 = vst.msk [vmem:[#allocation3 + $0x8] sm:$0xc] %vm1108_vm3, %v4411_v14  ;;  %v4414_v41 = vrot.slane %v4411_v14, 2 }
 0xa46   :  { %7357 = vmatmul.mubr.msk.f32.vlgmr.msra.gmra.mxu0 %vm104_vm0, %v4414_v41  ;;  %7368 = vmatmul.mubr.msk.f32.vlgmr.msra.gmra.mxu1 %vm104_vm0, %v4414_v41 }
 0xa47   :  { %7371 = vmatpush3.msra.mxu0 %v8639_v58  ;;  %7382 = vmatpush3.msra.mxu1 %v8641_v51 }
 0xa48   :  { %7372 = vmatprep.subr.mxu0 %v8011_v20  ;;  %7383 = vmatprep.subr.mxu1 %v8011_v20 }
 0xa49   :  { %7373 = vmatpush3.msra.mxu0 %v8647_v52  ;;  %7384 = vmatpush3.msra.mxu1 %v8649_v59 }
 0xa4a   :  { %7374 = vmatprep.subr.mxu0 %v8011_v20  ;;  %7385 = vmatprep.subr.mxu1 %v8011_v20 }
 0xa4b   :  { %7375 = vmatpush3.msra.mxu0 %v8655_v18  ;;  %7386 = vmatpush3.msra.mxu1 %v8657_v19 }
 0xa4c   :  { %7376 = vmatprep.subr.mxu0 %v8011_v20  ;;  %7387 = vmatprep.subr.mxu1 %v8011_v20 }
 0xa4d   :  { %7377 = vmatpush3.msra.mxu0 %v8663_v21  ;;  %7378 = vmatprep.mubr.msk.f32.mxu0 %vm8012_vm1, %v8011_v20 }
 0xa4e   :  { %7388 = vmatpush3.msra.mxu1 %v8667_v22  ;;  %7389 = vmatprep.mubr.msk.f32.mxu1 %vm8012_vm1, %v8011_v20 }
 0xa4f   :  { %7379 = vmatmul.mubr.msk.f32.vlgmr.msra.gmra.mxu0 %vm104_vm0, %v4414_v41  ;;  %7390 = vmatmul.mubr.msk.f32.vlgmr.msra.gmra.mxu1 %vm104_vm0, %v4414_v41 }
 0xa50   :  { %7392 = vmatprep.subr.mxu0 %v8011_v20  ;;  %7403 = vmatprep.subr.mxu1 %v8011_v20 }
 0xa51   :  { %7393 = vmatpush3.msra.mxu0 %v8601_v46  ;;  %7404 = vmatpush3.msra.mxu1 %v8603_v49 }
 0xa52   :  { %7394 = vmatprep.subr.mxu0 %v8011_v20  ;;  %7405 = vmatprep.subr.mxu1 %v8011_v20 }
 0xa53   :  { %7395 = vmatpush3.msra.mxu0 %v8609_v50  ;;  %7406 = vmatpush3.msra.mxu1 %v8611_v53 }
 0xa54   :  { %7396 = vmatprep.subr.mxu0 %v8011_v20  ;;  %7407 = vmatprep.subr.mxu1 %v8011_v20 }
 0xa55   :  { %7397 = vmatpush3.msra.mxu0 %v8617_v54  ;;  %7408 = vmatpush3.msra.mxu1 %v8619_v55 }
 0xa56   :  { %7398 = vmatprep.subr.mxu0 %v8011_v20  ;;  %7409 = vmatprep.subr.mxu1 %v8011_v20 }
 0xa57   :  { %7399 = vmatpush3.msra.mxu0 %v8625_v56  ;;  %7410 = vmatpush3.msra.mxu1 %v8629_v57 }
 0xa58   :  { %7400 = vmatprep.mubr.msk.f32.mxu0 %vm8012_vm1, %v8011_v20  ;;  %7411 = vmatprep.mubr.msk.f32.mxu1 %vm8012_vm1, %v8011_v20 }
 0xa59   :  { %7414 = vmatprep.subr.mxu0 %v8011_v20  ;;  %7425 = vmatprep.subr.mxu1 %v8011_v20 }
 0xb06   :  { %v4483_v12 = vpop.f32.mrf.mxu0  ;;  %v4554_v43 = vpop.f32.mrf.mxu1 }
 0xb07   :  { %v4487_v44 = vadd.f32 %v4483_v12, %v8726_v24  ;;  %v4558_v42 = vadd.f32 %v4554_v43, %v8728_v28 }
 0xb08   :  { %v7358_v45 = vpop.f32.mrf.mxu0  ;;  %v7369_v23 = vpop.f32.mrf.mxu1 }
 0xb09   :  { %v6361_v25 = vmul.f32 -1.442695, %v4487_v44  ;;  %v6360_v26 = vmul.f32 -1.442695, %v4558_v42 }
 0xb0b   :  { %7775 = vpow2.f32 %v6361_v25 }
 0xb0c   :  { %7777 = vpow2.f32 %v6360_v26 }
 0xb0f   :  { %v4625_v27 = vpop.f32.mrf.mxu0  ;;  %v4696_v29 = vpop.f32.mrf.mxu1 }
 0xb10   :  { %v4700_v30 = vadd.f32 %v4696_v29, %v8732_v0  ;;  %v4629_v3 = vadd.f32 %v4625_v27, %v8735_v6 }
 0xb11   :  { %v7380_v31 = vpop.f32.mrf.mxu0  ;;  %v7391_v32 = vpop.f32.mrf.mxu1 }
 0xb12   :  { %v6362_v33 = vmul.f32 -1.442695, %v4700_v30 }
 0xb14   :  { %7779 = vpow2.f32 %v6362_v33 }
 0xb15   :  { %7781 = vtanh.f32 %v4629_v3 }
 0xb18   :  { %v7776_v34 = vpop.eup %7775 }
 0xb19   :  { %v7778_v60 = vpop.eup %7777  ;;  %v4714_v24 = vadd.f32 1.0, %v7776_v34 }
 0xb1a   :  { %v4704_v28 = vadd.f32 1.0, %v7778_v60 }
 0xb1b   :  { %7783 = vrcp.f32 %v4714_v24 }
 0xb1c   :  { %7785 = vrcp.f32 %v4704_v28 }
 0xb21   :  { %v7780_v62 = vpop.eup %7779 }
 0xb22   :  { %v7782_v63 = vpop.eup %7781  ;;  %v4723_v4 = vadd.f32 1.0, %v7780_v62 }
 0xb24   :  { %7787 = vrcp.f32 %v4723_v4 }
 0xb28   :  { %v7784_v1 = vpop.eup %7783 }
 0xb29   :  { %v7786_v2 = vpop.eup %7785  ;;  %v4718_v0 = vmul.f32 %v7784_v1, %v7782_v63 }
 0xb2a   :  { %v4710_v39 = vmul.f32 %v7786_v2, %v4708_v61 }
 0xb2c   :  { %v8898_v40 = vadd.f32 %v4718_v0, %v4710_v39 }
 0xb2e   :  { %7789 = vtanh.f32 %v8898_v40  ;;  %v5035_v25 = vrot.slane %v8898_v40, 2 }
 0xb31   :  { %v7788_v6 = vpop.eup %7787 }
 0xb3b   :  { %v7790_v5 = vpop.eup %7789 }
 0xb3c   :  { %v4727_v7 = vmul.f32 %v7790_v5, %v7788_v6 }
 0xb3e   :  { %4728 = vst.msk [vmem:[#allocation3 + $0x8] sm:$0x3] %vm780_vm2, %v4727_v7  ;;  %7401 = vmatmul.mubr.msk.f32.vlgmr.msra.gmra.mxu0 %vm104_vm0, %v4727_v7  ;;  %7412 = vmatmul.mubr.msk.f32.vlgmr.msra.gmra.mxu1 %vm104_vm0, %v4727_v7 }
 0xb3f   :  { %7415 = vmatpush3.msra.mxu0 %v8639_v58  ;;  %7426 = vmatpush3.msra.mxu1 %v8641_v51 }
 0xb40   :  { %7416 = vmatprep.subr.mxu0 %v8011_v20  ;;  %7427 = vmatprep.subr.mxu1 %v8011_v20 }
 0xb41   :  { %7417 = vmatpush3.msra.mxu0 %v8647_v52  ;;  %7428 = vmatpush3.msra.mxu1 %v8649_v59 }
 0xb42   :  { %7418 = vmatprep.subr.mxu0 %v8011_v20  ;;  %7429 = vmatprep.subr.mxu1 %v8011_v20 }
 0xb43   :  { %7419 = vmatpush3.msra.mxu0 %v8655_v18  ;;  %7430 = vmatpush3.msra.mxu1 %v8657_v19 }
 0xb44   :  { %7420 = vmatprep.subr.mxu0 %v8011_v20  ;;  %7431 = vmatprep.subr.mxu1 %v8011_v20 }
 0xb45   :  { %7421 = vmatpush3.msra.mxu0 %v8663_v21  ;;  %7422 = vmatprep.mubr.msk.f32.mxu0 %vm8012_vm1, %v8011_v20 }
 0xb46   :  { %7432 = vmatpush3.msra.mxu1 %v8667_v22  ;;  %7433 = vmatprep.mubr.msk.f32.mxu1 %vm8012_vm1, %v8011_v20 }
 0xb47   :  { %7423 = vmatmul.mubr.msk.f32.vlgmr.msra.gmra.mxu0 %vm104_vm0, %v4727_v7  ;;  %7434 = vmatmul.mubr.msk.f32.vlgmr.msra.gmra.mxu1 %vm104_vm0, %v4727_v7 }
 0xb48   :  { %7436 = vmatprep.subr.mxu0 %v8011_v20  ;;  %7447 = vmatprep.subr.mxu1 %v8011_v20 }
 0xb49   :  { %7437 = vmatpush3.msra.mxu0 %v8601_v46  ;;  %7448 = vmatpush3.msra.mxu1 %v8603_v49 }
 0xb4a   :  { %7438 = vmatprep.subr.mxu0 %v8011_v20  ;;  %7449 = vmatprep.subr.mxu1 %v8011_v20 }
 0xb4b   :  { %7439 = vmatpush3.msra.mxu0 %v8609_v50  ;;  %7450 = vmatpush3.msra.mxu1 %v8611_v53 }
 0xb4c   :  { %7440 = vmatprep.subr.mxu0 %v8011_v20  ;;  %7451 = vmatprep.subr.mxu1 %v8011_v20 }
 0xb4d   :  { %7441 = vmatpush3.msra.mxu0 %v8617_v54  ;;  %7452 = vmatpush3.msra.mxu1 %v8619_v55 }
 0xb4e   :  { %7442 = vmatprep.subr.mxu0 %v8011_v20  ;;  %7453 = vmatprep.subr.mxu1 %v8011_v20 }
 0xb4f   :  { %7443 = vmatpush3.msra.mxu0 %v8625_v56  ;;  %7454 = vmatpush3.msra.mxu1 %v8629_v57 }
 0xb50   :  { %7444 = vmatprep.mubr.msk.f32.mxu0 %vm8012_vm1, %v8011_v20  ;;  %7455 = vmatprep.mubr.msk.f32.mxu1 %vm8012_vm1, %v8011_v20 }
 0xb51   :  { %7458 = vmatprep.subr.mxu0 %v8011_v20  ;;  %7469 = vmatprep.subr.mxu1 %v8011_v20 }
 0xbfe   :  { %v4798_v46 = vpop.f32.mrf.mxu0  ;;  %v4872_v49 = vpop.f32.mrf.mxu1 }
 0xbff   :  { %v4803_v50 = vrot.slane %v4798_v46, 2  ;;  %v4877_v53 = vrot.slane %v4872_v49, 2 }
 0xc00   :  { %v7402_v54 = vpop.f32.mrf.mxu0  ;;  %v7413_v55 = vpop.f32.mrf.mxu1 }
 0xc01   :  { %v4805_v56 = vadd.f32 %v4803_v50, %v8711_v11  ;;  %v4879_v57 = vadd.f32 %v4877_v53, %v8713_v47 }
 0xc03   :  { %v6368_v8 = vmul.f32 -1.442695, %v4805_v56  ;;  %v6367_v9 = vmul.f32 -1.442695, %v4879_v57 }
 0xc05   :  { %7791 = vpow2.f32 %v6368_v8 }
 0xc06   :  { %7793 = vpow2.f32 %v6367_v9 }
 0xc07   :  { %v4946_v48 = vpop.f32.mrf.mxu0  ;;  %v5020_v10 = vpop.f32.mrf.mxu1 }
 0xc08   :  { %v5025_v15 = vrot.slane %v5020_v10, 2  ;;  %v4951_v37 = vrot.slane %v4946_v48, 2 }
 0xc09   :  { %v7424_v13 = vpop.f32.mrf.mxu0  ;;  %v7435_v16 = vpop.f32.mrf.mxu1 }
 0xc0a   :  { %v5027_v35 = vadd.f32 %v5025_v15, %v8723_v36  ;;  %v4953_v14 = vadd.f32 %v4951_v37, %v8721_v17 }
 0xc0c   :  { %v6369_v38 = vmul.f32 -1.442695, %v5027_v35 }
 0xc0e   :  { %7795 = vpow2.f32 %v6369_v38 }
 0xc0f   :  { %7797 = vtanh.f32 %v4953_v14 }
 0xc12   :  { %v7792_v41 = vpop.eup %7791 }
 0xc13   :  { %v7794_v12 = vpop.eup %7793  ;;  %v5041_v43 = vadd.f32 1.0, %v7792_v41 }
 0xc14   :  { %v5031_v44 = vadd.f32 1.0, %v7794_v12 }
 0xc15   :  { %7799 = vrcp.f32 %v5041_v43  ;;  %v9026_v43 = vld [vmem:[#allocation10 + $0x58] sm:$0xff] }
 0xc16   :  { %7801 = vrcp.f32 %v5031_v44  ;;  %v9029_v44 = vld [vmem:[#allocation10 + $0x78] sm:$0xff] }
 0xc1b   :  { %v7796_v42 = vpop.eup %7795 }
 0xc1c   :  { %v7798_v45 = vpop.eup %7797  ;;  %v5050_v29 = vadd.f32 1.0, %v7796_v42  ;;  %v9034_v42 = vld [vmem:[#allocation10 + $0x50] sm:$0xff] }
 0xc1e   :  { %7803 = vrcp.f32 %v5050_v29 }
 0xc22   :  { %v7800_v23 = vpop.eup %7799 }
 0xc23   :  { %v7802_v26 = vpop.eup %7801  ;;  %v5045_v27 = vmul.f32 %v7800_v23, %v7798_v45  ;;  %v9037_v45 = vld [vmem:[#allocation10 + $0x70] sm:$0xff]  ;;  %v9042_v23 = vld [vmem:[#allocation10 + $0x48] sm:$0xff] }
 0xc24   :  { %v5037_v30 = vmul.f32 %v7802_v26, %v5035_v25  ;;  %v9045_v25 = vld [vmem:[#allocation10 + $0x68] sm:$0xff]  ;;  %v9050_v26 = vld [vmem:[#allocation10 + $0x40] sm:$0xff] }
 0xc26   :  { %v8951_v31 = vadd.f32 %v5045_v27, %v5037_v30  ;;  %v9055_v27 = vld [vmem:[#allocation10 + $0x60] sm:$0xff] }
 0xc28   :  { %7805 = vtanh.f32 %v8951_v31  ;;  %v5363_v10 = vrot.slane %v8951_v31, 2 }
 0xc2b   :  { %v7804_v32 = vpop.eup %7803 }
 0xc35   :  { %v7806_v33 = vpop.eup %7805 }
 0xc36   :  { %v5054_v3 = vmul.f32 %v7806_v33, %v7804_v32 }
 0xc38   :  { %5055 = vst.msk [vmem:[#allocation3] sm:$0xc0] %vm1766_vm5, %v5054_v3  ;;  %v5057_v34 = vrot.slane %v5054_v3, 6 }
 0xc3a   :  { %7445 = vmatmul.mubr.msk.f32.vlgmr.msra.gmra.mxu0 %vm104_vm0, %v5057_v34  ;;  %7456 = vmatmul.mubr.msk.f32.vlgmr.msra.gmra.mxu1 %vm104_vm0, %v5057_v34 }
 0xc3b   :  { %7459 = vmatpush3.msra.mxu0 %v8639_v58  ;;  %7470 = vmatpush3.msra.mxu1 %v8641_v51  ;;  %v8979_v58 = vld [vmem:[#allocation10 + $0x18] sm:$0xff] }
 0xc3c   :  { %7460 = vmatprep.subr.mxu0 %v8011_v20  ;;  %7471 = vmatprep.subr.mxu1 %v8011_v20  ;;  %v8982_v51 = vld [vmem:[#allocation10 + $0x38] sm:$0xff] }
 0xc3d   :  { %7461 = vmatpush3.msra.mxu0 %v8647_v52  ;;  %7472 = vmatpush3.msra.mxu1 %v8649_v59  ;;  %v8987_v52 = vld [vmem:[#allocation10 + $0x10] sm:$0xff] }
 0xc3e   :  { %7462 = vmatprep.subr.mxu0 %v8011_v20  ;;  %7473 = vmatprep.subr.mxu1 %v8011_v20  ;;  %v8990_v59 = vld [vmem:[#allocation10 + $0x30] sm:$0xff] }
 0xc3f   :  { %7463 = vmatpush3.msra.mxu0 %v8655_v18  ;;  %7474 = vmatpush3.msra.mxu1 %v8657_v19  ;;  %v8995_v18 = vld [vmem:[#allocation10 + $0x8] sm:$0xff] }
 0xc40   :  { %7464 = vmatprep.subr.mxu0 %v8011_v20  ;;  %7475 = vmatprep.subr.mxu1 %v8011_v20  ;;  %v8998_v19 = vld [vmem:[#allocation10 + $0x28] sm:$0xff] }
 0xc41   :  { %7465 = vmatpush3.msra.mxu0 %v8663_v21  ;;  %7466 = vmatprep.mubr.msk.f32.mxu0 %vm8012_vm1, %v8011_v20  ;;  %v9003_v21 = vld [vmem:[#allocation10] sm:$0xff] }
 0xc42   :  { %7476 = vmatpush3.msra.mxu1 %v8667_v22  ;;  %7477 = vmatprep.mubr.msk.f32.mxu1 %vm8012_vm1, %v8011_v20  ;;  %v9006_v22 = vld [vmem:[#allocation10 + $0x20] sm:$0xff] }
 0xc43   :  { %7467 = vmatmul.mubr.msk.f32.vlgmr.msra.gmra.mxu0 %vm104_vm0, %v5057_v34  ;;  %7478 = vmatmul.mubr.msk.f32.vlgmr.msra.gmra.mxu1 %vm104_vm0, %v5057_v34 }
 0xc44   :  { %7480 = vmatprep.subr.mxu0 %v8011_v20  ;;  %7491 = vmatprep.subr.mxu1 %v8011_v20 }
 0xc45   :  { %7481 = vmatpush3.msra.mxu0 %v8979_v58  ;;  %7492 = vmatpush3.msra.mxu1 %v8982_v51 }
 0xc46   :  { %7482 = vmatprep.subr.mxu0 %v8011_v20  ;;  %7493 = vmatprep.subr.mxu1 %v8011_v20 }
 0xc47   :  { %7483 = vmatpush3.msra.mxu0 %v8987_v52  ;;  %7494 = vmatpush3.msra.mxu1 %v8990_v59 }
 0xc48   :  { %7484 = vmatprep.subr.mxu0 %v8011_v20  ;;  %7495 = vmatprep.subr.mxu1 %v8011_v20 }
 0xc49   :  { %7485 = vmatpush3.msra.mxu0 %v8995_v18  ;;  %7496 = vmatpush3.msra.mxu1 %v8998_v19 }
 0xc4a   :  { %7486 = vmatprep.subr.mxu0 %v8011_v20  ;;  %7497 = vmatprep.subr.mxu1 %v8011_v20 }
 0xc4b   :  { %7487 = vmatpush3.msra.mxu0 %v9003_v21  ;;  %7498 = vmatpush3.msra.mxu1 %v9006_v22 }
 0xc4c   :  { %7488 = vmatprep.mubr.msk.f32.mxu0 %vm8012_vm1, %v8011_v20  ;;  %7499 = vmatprep.mubr.msk.f32.mxu1 %vm8012_vm1, %v8011_v20 }
 0xc4d   :  { %7502 = vmatprep.subr.mxu0 %v8011_v20  ;;  %7513 = vmatprep.subr.mxu1 %v8011_v20 }
 0xcfa   :  { %v5126_v60 = vpop.f32.mrf.mxu0  ;;  %v5200_v24 = vpop.f32.mrf.mxu1 }
 0xcfb   :  { %v5131_v28 = vrot.slane %v5126_v60, 4  ;;  %v5205_v62 = vrot.slane %v5200_v24, 4 }
 0xcfc   :  { %v7446_v63 = vpop.f32.mrf.mxu0  ;;  %v7457_v1 = vpop.f32.mrf.mxu1 }
 0xcfd   :  { %v5133_v61 = vadd.f32 %v5131_v28, %v8711_v11  ;;  %v5207_v2 = vadd.f32 %v5205_v62, %v8713_v47 }
 0xcff   :  { %v6375_v0 = vmul.f32 -1.442695, %v5133_v61  ;;  %v6374_v4 = vmul.f32 -1.442695, %v5207_v2 }
 0xd01   :  { %7807 = vpow2.f32 %v6375_v0 }
 0xd02   :  { %7809 = vpow2.f32 %v6374_v4 }
 0xd03   :  { %v5274_v39 = vpop.f32.mrf.mxu0  ;;  %v5348_v40 = vpop.f32.mrf.mxu1 }
 0xd04   :  { %v5353_v6 = vrot.slane %v5348_v40, 4  ;;  %v5279_v49 = vrot.slane %v5274_v39, 4 }
 0xd05   :  { %v7468_v5 = vpop.f32.mrf.mxu0  ;;  %v7479_v7 = vpop.f32.mrf.mxu1 }
 0xd06   :  { %v5355_v46 = vadd.f32 %v5353_v6, %v8723_v36  ;;  %v5281_v53 = vadd.f32 %v5279_v49, %v8721_v17 }
 0xd08   :  { %v6376_v50 = vmul.f32 -1.442695, %v5355_v46 }
 0xd0a   :  { %7811 = vpow2.f32 %v6376_v50 }
 0xd0b   :  { %7813 = vtanh.f32 %v5281_v53 }
 0xd0e   :  { %v7808_v54 = vpop.eup %7807 }
 0xd0f   :  { %v7810_v55 = vpop.eup %7809  ;;  %v5369_v56 = vadd.f32 1.0, %v7808_v54 }
 0xd10   :  { %v5359_v57 = vadd.f32 1.0, %v7810_v55 }
 0xd11   :  { %7815 = vrcp.f32 %v5369_v56  ;;  %v6033_v56 = vld [vmem:[%s9171_s7 + $0x18] sm:$0xff] }
 0xd12   :  { %7817 = vrcp.f32 %v5359_v57  ;;  %v6028_v57 = vld [vmem:[#allocation2] sm:$0xff] }
 0xd17   :  { %v7812_v8 = vpop.eup %7811 }
 0xd18   :  { %v7814_v9 = vpop.eup %7813  ;;  %v5378_v16 = vadd.f32 1.0, %v7812_v8  ;;  %v6032_v8 = vld [vmem:[%s9171_s7 + $0x10] sm:$0xff] }
 0xd1a   :  { %7819 = vrcp.f32 %v5378_v16  ;;  %v6036_v16 = vld [vmem:[%s9172_s8] sm:$0xff] }
 0xd1e   :  { %v7816_v48 = vpop.eup %7815 }
 0xd1f   :  { %v7818_v15 = vpop.eup %7817  ;;  %v5373_v13 = vmul.f32 %v7816_v48, %v7814_v9  ;;  %v6031_v9 = vld [vmem:[%s9171_s7 + $0x8] sm:$0xff] }
 0xd20   :  { %v5365_v35 = vmul.f32 %v7818_v15, %v5363_v10  ;;  %v6029_v48 = vld [vmem:[#allocation2 + $0x8] sm:$0xff]  ;;  %v6039_v10 = vld [vmem:[%s9172_s8 + $0x18] sm:$0xff]  ;;  %v6038_v15 = vld [vmem:[%s9172_s8 + $0x10] sm:$0xff] }
 0xd22   :  { %v9020_v37 = vadd.f32 %v5373_v13, %v5365_v35  ;;  %v6037_v13 = vld [vmem:[%s9172_s8 + $0x8] sm:$0xff] }
 0xd24   :  { %7821 = vtanh.f32 %v9020_v37  ;;  %v5691_v40 = vrot.slane %v9020_v37, 2 }
 0xd27   :  { %v7820_v38 = vpop.eup %7819 }
 0xd31   :  { %v7822_v14 = vpop.eup %7821 }
 0xd32   :  { %v5382_v41 = vmul.f32 %v7822_v14, %v7820_v38 }
 0xd34   :  { %5383 = vst.msk [vmem:[#allocation3] sm:$0x30] %vm1437_vm4, %v5382_v41  ;;  %v5385_v12 = vrot.slane %v5382_v41, 4 }
 0xd36   :  { %7489 = vmatmul.mubr.msk.f32.vlgmr.msra.gmra.mxu0 %vm104_vm0, %v5385_v12  ;;  %7500 = vmatmul.mubr.msk.f32.vlgmr.msra.gmra.mxu1 %vm104_vm0, %v5385_v12 }
 0xd37   :  { %7503 = vmatpush3.msra.mxu0 %v9026_v43  ;;  %7514 = vmatpush3.msra.mxu1 %v9029_v44 }
 0xd38   :  { %7504 = vmatprep.subr.mxu0 %v8011_v20  ;;  %7515 = vmatprep.subr.mxu1 %v8011_v20 }
 0xd39   :  { %7505 = vmatpush3.msra.mxu0 %v9034_v42  ;;  %7516 = vmatpush3.msra.mxu1 %v9037_v45 }
 0xd3a   :  { %7506 = vmatprep.subr.mxu0 %v8011_v20  ;;  %7517 = vmatprep.subr.mxu1 %v8011_v20 }
 0xd3b   :  { %7507 = vmatpush3.msra.mxu0 %v9042_v23  ;;  %7518 = vmatpush3.msra.mxu1 %v9045_v25 }
 0xd3c   :  { %7508 = vmatprep.subr.mxu0 %v8011_v20  ;;  %7519 = vmatprep.subr.mxu1 %v8011_v20 }
 0xd3d   :  { %7509 = vmatpush3.msra.mxu0 %v9050_v26  ;;  %7510 = vmatprep.mubr.msk.f32.mxu0 %vm8012_vm1, %v8011_v20 }
 0xd3e   :  { %7520 = vmatpush3.msra.mxu1 %v9055_v27  ;;  %7521 = vmatprep.mubr.msk.f32.mxu1 %vm8012_vm1, %v8011_v20 }
 0xd3f   :  { %7511 = vmatmul.mubr.msk.f32.vlgmr.msra.gmra.mxu0 %vm104_vm0, %v5385_v12  ;;  %7522 = vmatmul.mubr.msk.f32.vlgmr.msra.gmra.mxu1 %vm104_vm0, %v5385_v12 }
 0xd40   :  { %7524 = vmatprep.subr.mxu0 %v8011_v20  ;;  %7535 = vmatprep.subr.mxu1 %v8011_v20 }
 0xd41   :  { %7525 = vmatpush3.msra.mxu0 %v8979_v58  ;;  %7536 = vmatpush3.msra.mxu1 %v8982_v51 }
 0xd42   :  { %7526 = vmatprep.subr.mxu0 %v8011_v20  ;;  %7537 = vmatprep.subr.mxu1 %v8011_v20 }
 0xd43   :  { %7527 = vmatpush3.msra.mxu0 %v8987_v52  ;;  %7538 = vmatpush3.msra.mxu1 %v8990_v59 }
 0xd44   :  { %7528 = vmatprep.subr.mxu0 %v8011_v20  ;;  %7539 = vmatprep.subr.mxu1 %v8011_v20 }
 0xd45   :  { %7529 = vmatpush3.msra.mxu0 %v8995_v18  ;;  %7540 = vmatpush3.msra.mxu1 %v8998_v19 }
 0xd46   :  { %7530 = vmatprep.subr.mxu0 %v8011_v20  ;;  %7541 = vmatprep.subr.mxu1 %v8011_v20 }
 0xd47   :  { %7531 = vmatpush3.msra.mxu0 %v9003_v21  ;;  %7542 = vmatpush3.msra.mxu1 %v9006_v22 }
 0xd48   :  { %7532 = vmatprep.mubr.msk.f32.mxu0 %vm8012_vm1, %v8011_v20  ;;  %7543 = vmatprep.mubr.msk.f32.mxu1 %vm8012_vm1, %v8011_v20 }
 0xd49   :  { %7546 = vmatprep.subr.mxu0 %v8011_v20  ;;  %7557 = vmatprep.subr.mxu1 %v8011_v20 }
 0xdf6   :  { %v5454_v29 = vpop.f32.mrf.mxu0  ;;  %v5528_v30 = vpop.f32.mrf.mxu1 }
 0xdf7   :  { %v5459_v31 = vrot.slane %v5454_v29, 6  ;;  %v5533_v32 = vrot.slane %v5528_v30, 6 }
 0xdf8   :  { %v7490_v33 = vpop.f32.mrf.mxu0  ;;  %v7501_v3 = vpop.f32.mrf.mxu1 }
 0xdf9   :  { %v5461_v34 = vadd.f32 %v5459_v31, %v8711_v11  ;;  %v5535_v58 = vadd.f32 %v5533_v32, %v8713_v47 }
 0xdfb   :  { %v6382_v51 = vmul.f32 -1.442695, %v5461_v34  ;;  %v6381_v52 = vmul.f32 -1.442695, %v5535_v58 }
 0xdfd   :  { %7823 = vpow2.f32 %v6382_v51 }
 0xdfe   :  { %7825 = vpow2.f32 %v6381_v52 }
 0xdff   :  { %v5602_v59 = vpop.f32.mrf.mxu0  ;;  %v5676_v18 = vpop.f32.mrf.mxu1 }
 0xe00   :  { %v5681_v19 = vrot.slane %v5676_v18, 6  ;;  %v5607_v24 = vrot.slane %v5602_v59, 6 }
 0xe01   :  { %v7512_v21 = vpop.f32.mrf.mxu0  ;;  %v7523_v22 = vpop.f32.mrf.mxu1 }
 0xe02   :  { %v5683_v60 = vadd.f32 %v5681_v19, %v8723_v36  ;;  %v5609_v62 = vadd.f32 %v5607_v24, %v8721_v17  ;;  %v6035_v22 = vld [vmem:[#allocation3 + $0x8] sm:$0xff] }
 0xe04   :  { %v6383_v28 = vmul.f32 -1.442695, %v5683_v60 }
 0xe06   :  { %7827 = vpow2.f32 %v6383_v28 }
 0xe07   :  { %7829 = vtanh.f32 %v5609_v62 }
 0xe0a   :  { %v7824_v63 = vpop.eup %7823 }
 0xe0b   :  { %v7826_v1 = vpop.eup %7825  ;;  %v5697_v61 = vadd.f32 1.0, %v7824_v63 }
 0xe0c   :  { %v5687_v2 = vadd.f32 1.0, %v7826_v1 }
 0xe0d   :  { %7831 = vrcp.f32 %v5697_v61  ;;  %v6395_v61 = vld [vmem:[%s9173_s9] ss:$0 sm:$0xff]  ;;  %s8013_s9 = smov [#allocation12]  }
 0xe0e   :  { %7833 = vrcp.f32 %v5687_v2  ;;  %s6243_s27 = sshll.u32 %s8013_s9, 4  ;;  %s6244_s27 = int_to_ptr.vmem [resolvable:$true] %s6243_s27 }
 0xe0f   :  { %s7977_s0 = scalar_lea.vmem %s6244_s27, 256  ;;  %p7982_p7 = scmp.lt.s32.totalorder %s6244_s27, %s6244_s27 }
 0xe10   :  { %p7978_p6 = scmp.ne.s32.totalorder %s6244_s27, %s7977_s0  ;;  %p7983_p8 = scmp.lt.s32.totalorder %s7977_s0, %s7977_s0 }
 0xe12   :  { %p7984_p9 = por %p7983_p8, %p7982_p7 }
 0xe13   :  { %v7828_v0 = vpop.eup %7827 }
 0xe14   :  { %v7830_v4 = vpop.eup %7829  ;;  %v5706_v7 = vadd.f32 1.0, %v7828_v0  ;;  %p7985_p10 = pnand %p7984_p9, %p7978_p6 }
 0xe16   :  { %7835 = vrcp.f32 %v5706_v7 }
 0xe1a   :  { %v7832_v39 = vpop.eup %7831 }
 0xe1b   :  { %v7834_v6 = vpop.eup %7833  ;;  %v5701_v5 = vmul.f32 %v7832_v39, %v7830_v4 }
 0xe1c   :  { %v5693_v46 = vmul.f32 %v7834_v6, %v5691_v40 }
 0xe1e   :  { %v9089_v49 = vadd.f32 %v5701_v5, %v5693_v46 }
 0xe20   :  { %7837 = vtanh.f32 %v9089_v49  ;;  %v6007_v34 = vrot.slane %v9089_v49, 2 }
 0xe23   :  { %v7836_v50 = vpop.eup %7835 }
 0xe2d   :  { %v7838_v53 = vpop.eup %7837 }
 0xe2e   :  { %v5710_v54 = vmul.f32 %v7838_v53, %v7836_v50 }
 0xe30   :  { %5711 = vst.msk [vmem:[#allocation3] sm:$0xc] %vm1108_vm3, %v5710_v54  ;;  %v5713_v55 = vrot.slane %v5710_v54, 2 }
 0xe32   :  { %7533 = vmatmul.mubr.msk.f32.vlgmr.msra.gmra.mxu0 %vm104_vm0, %v5713_v55  ;;  %7544 = vmatmul.mubr.msk.f32.vlgmr.msra.gmra.mxu1 %vm104_vm0, %v5713_v55 }
 0xe33   :  { %7547 = vmatpush3.msra.mxu0 %v9026_v43  ;;  %7558 = vmatpush3.msra.mxu1 %v9029_v44 }
 0xe34   :  { %7548 = vmatprep.subr.mxu0 %v8011_v20  ;;  %7559 = vmatprep.subr.mxu1 %v8011_v20 }
 0xe35   :  { %7549 = vmatpush3.msra.mxu0 %v9034_v42  ;;  %7560 = vmatpush3.msra.mxu1 %v9037_v45 }
 0xe36   :  { %7550 = vmatprep.subr.mxu0 %v8011_v20  ;;  %7561 = vmatprep.subr.mxu1 %v8011_v20 }
 0xe37   :  { %7551 = vmatpush3.msra.mxu0 %v9042_v23  ;;  %7562 = vmatpush3.msra.mxu1 %v9045_v25 }
 0xe38   :  { %7552 = vmatprep.subr.mxu0 %v8011_v20  ;;  %7563 = vmatprep.subr.mxu1 %v8011_v20 }
 0xe39   :  { %7553 = vmatpush3.msra.mxu0 %v9050_v26  ;;  %7554 = vmatprep.mubr.msk.f32.mxu0 %vm8012_vm1, %v8011_v20 }
 0xe3a   :  { %7564 = vmatpush3.msra.mxu1 %v9055_v27  ;;  %7565 = vmatprep.mubr.msk.f32.mxu1 %vm8012_vm1, %v8011_v20  ;;  %v6030_v20 = vld [vmem:[%s9171_s7] sm:$0xff] }
 0xe3b   :  { %7555 = vmatmul.mubr.msk.f32.vlgmr.msra.gmra.mxu0 %vm104_vm0, %v5713_v55  ;;  %7566 = vmatmul.mubr.msk.f32.vlgmr.msra.gmra.mxu1 %vm104_vm0, %v5713_v55 }
 0xe3c   :  { %7579 = vmatprep.subr.mxu1 %v6033_v56  ;;  %7587 = vmatprep.mubr.msk.f32.mxu1 %vm104_vm0, %v6028_v57 }
 0xe3d   :  { %7580 = vmatpush3.msra.mxu1 %v6033_v56  ;;  %7568 = vmatprep.subr.mxu0 %v6039_v10 }
 0xe3e   :  { %7581 = vmatprep.subr.mxu1 %v6032_v8  ;;  %7569 = vmatpush3.msra.mxu0 %v6039_v10 }
 0xe3f   :  { %7582 = vmatpush3.msra.mxu1 %v6032_v8  ;;  %7570 = vmatprep.subr.mxu0 %v6038_v15 }
 0xe40   :  { %7583 = vmatprep.subr.mxu1 %v6031_v9  ;;  %7571 = vmatpush3.msra.mxu0 %v6038_v15 }
 0xe41   :  { %7584 = vmatpush3.msra.mxu1 %v6031_v9  ;;  %7572 = vmatprep.subr.mxu0 %v6037_v13 }
 0xe42   :  { %7585 = vmatprep.subr.mxu1 %v6030_v20  ;;  %7573 = vmatpush3.msra.mxu0 %v6037_v13 }
 0xe43   :  { %7586 = vmatpush3.msra.mxu1 %v6030_v20  ;;  %7574 = vmatprep.subr.mxu0 %v6036_v16 }
 0xe44   :  { %7588 = vmatmul.mubr.msk.f32.vlgmr.msra.gmra.mxu1 %vm104_vm0, %v6029_v48  ;;  %7575 = vmatpush3.msra.mxu0 %v6036_v16 }
 0xef2   :  { %v5782_v35 = vpop.f32.mrf.mxu0  ;;  %v5853_v37 = vpop.f32.mrf.mxu1 }
 0xef3   :  { %v5786_v38 = vadd.f32 %v5782_v35, %v8711_v11  ;;  %v5857_v14 = vadd.f32 %v5853_v37, %v8713_v47 }
 0xef4   :  { %v7534_v41 = vpop.f32.mrf.mxu0  ;;  %v7545_v12 = vpop.f32.mrf.mxu1 }
 0xef5   :  { %v6389_v43 = vmul.f32 -1.442695, %v5786_v38  ;;  %v6388_v44 = vmul.f32 -1.442695, %v5857_v14 }
 0xef7   :  { %7839 = vpow2.f32 %v6389_v43 }
 0xef8   :  { %7841 = vpow2.f32 %v6388_v44 }
 0xefb   :  { %v5924_v42 = vpop.f32.mrf.mxu0  ;;  %v5995_v45 = vpop.f32.mrf.mxu1 }
 0xefc   :  { %v5999_v23 = vadd.f32 %v5995_v45, %v8723_v36  ;;  %v5928_v29 = vadd.f32 %v5924_v42, %v8721_v17 }
 0xefd   :  { %v7556_v25 = vpop.f32.mrf.mxu0  ;;  %v7567_v26 = vpop.f32.mrf.mxu1 }
 0xefe   :  { %v6390_v27 = vmul.f32 -1.442695, %v5999_v23 }
 0xf00   :  { %7843 = vpow2.f32 %v6390_v27 }
 0xf01   :  { %7845 = vtanh.f32 %v5928_v29 }
 0xf04   :  { %v7840_v30 = vpop.eup %7839  ;;  %v7589_v60 = vpop.f32.mrf.mxu1 }
 0xf05   :  { %v7842_v31 = vpop.eup %7841  ;;  %v6013_v11 = vadd.f32 1.0, %v7840_v30 }
 0xf06   :  { %v6003_v47 = vadd.f32 1.0, %v7842_v31  ;;  %v6193_v28 = vpop.f32.mrf.mxu1 }
 0xf07   :  { %7847 = vrcp.f32 %v6013_v11 }
 0xf08   :  { %7849 = vrcp.f32 %v6003_v47 }
 0xf0d   :  { %v7844_v32 = vpop.eup %7843 }
 0xf0e   :  { %v7846_v33 = vpop.eup %7845  ;;  %v6022_v51 = vadd.f32 1.0, %v7844_v32 }
 0xf10   :  { %7851 = vrcp.f32 %v6022_v51 }
 0xf14   :  { %v7848_v3 = vpop.eup %7847 }
 0xf15   :  { %v7850_v58 = vpop.eup %7849  ;;  %v6017_v36 = vmul.f32 %v7848_v3, %v7846_v33 }
 0xf16   :  { %v6009_v52 = vmul.f32 %v7850_v58, %v6007_v34 }
 0xf18   :  { %v6018_v59 = vadd.f32 %v6017_v36, %v6009_v52 }
 0xf1a   :  { %7853 = vtanh.f32 %v6018_v59 }
 0xf1d   :  { %v7852_v17 = vpop.eup %7851 }
 0xf27   :  { %v7854_v18 = vpop.eup %7853 }
 0xf28   :  { %v6026_v19 = vmul.f32 %v7854_v18, %v7852_v17 }
 0xf2a   :  { %6027 = vst.msk [vmem:[#allocation3] sm:$0x3] %vm780_vm2, %v6026_v19 }
 0xf31   :  { %v6034_v21 = vld [vmem:[#allocation3] sm:$0xff] }
 0xf32   :  { %7576 = vmatprep.mubr.msk.f32.mxu0 %vm104_vm0, %v6034_v21 }
 0xf33   :  { %7577 = vmatmul.mubr.msk.f32.vlgmr.msra.gmra.mxu0 %vm104_vm0, %v6035_v22 }
 0xff3   :  { %v7578_v24 = vpop.f32.mrf.mxu0 }
 0xff4   :  { %v6199_v63 = vadd.f32 %v7589_v60, %v7578_v24 }
 0xff5   :  { %v6112_v62 = vpop.f32.mrf.mxu0 }
 0xff6   :  { %v6194_v1 = vadd.f32 %v6193_v28, %v6112_v62  ;;  %v6210_v4 = vadd.f32 %v6395_v61, %v6199_v63 }
 0xff8   :  { %v6209_v2 = vadd.f32 %v6395_v61, %v6194_v1  ;;  %v6215_v39 = vsel %vm6211_vm6, %v6210_v4, -inf }
 0xffa   :  { %v6212_v0 = vsel %vm6211_vm6, %v6209_v2, -inf }
 0xffb   :  { %6213 = vmax.xlane.f32.xlu0 %v6212_v0 }
 0xfff   :  { %6216 = vmax.xlane.f32.xlu0 %v6215_v39 }
0x1084   :  { %v6214_v40 = vpop.xlane.xlu0 %6213 }
0x1085   :  { %v6218_v6 = vsub.f32 %v6209_v2, %v6214_v40 }
0x1087   :  { %v6220_v5 = vmul.f32 1.442695, %v6218_v6 }
0x1088   :  { %v6217_v7 = vpop.xlane.xlu0 %6216 }
0x1089   :  { %7855 = vpow2.f32 %v6220_v5  ;;  %v6219_v46 = vsub.f32 %v6210_v4, %v6217_v7 }
0x108b   :  { %v6222_v49 = vmul.f32 1.442695, %v6219_v46 }
0x108d   :  { %7857 = vpow2.f32 %v6222_v49 }
0x1096   :  { %v7856_v50 = vpop.eup %7855 }
0x1097   :  { %v6224_v53 = vsel %vm6211_vm6, %v7856_v50, 0.0 }
0x1098   :  { %6225 = vadd.xlane.f32.xlu1 %v6224_v53 }
0x109a   :  { %v7858_v54 = vpop.eup %7857 }
0x109b   :  { %v6227_v55 = vsel %vm6211_vm6, %v7858_v54, 0.0 }
0x109c   :  { %6228 = vadd.xlane.f32.xlu1 %v6227_v55 }
0x1121   :  { %v6226_v56 = vpop.xlane.xlu1 %6225 }
0x1122   :  { %7859 = vlog2.f32 %v6226_v56 }
0x1125   :  { %v6229_v57 = vpop.xlane.xlu1 %6228 }
0x1126   :  { %7861 = vlog2.f32 %v6229_v57 }
0x112f   :  { %v7860_v8 = vpop.eup %7859 }
0x1130   :  { %v6231_v9 = vmul.f32 0.6931472, %v7860_v8 }
0x1132   :  { %v6234_v20 = vsub.f32 %v6218_v6, %v6231_v9 }
0x1133   :  { %v7862_v48 = vpop.eup %7861 }
0x1134   :  { %6236 = vst.msk [vmem:[#allocation12] sm:$0xff] %vm6211_vm6, %v6234_v20  ;;  %v6233_v10 = vmul.f32 0.6931472, %v7862_v48 }
0x1136   :  { %v6235_v15 = vsub.f32 %v6219_v46, %v6233_v10 }
0x1138   :  { %6237 = vst.msk [vmem:[#allocation12 + $0x8] sm:$0xff] %vm6211_vm6, %v6235_v15 }
0x1139   :  { %7988 = shalt.err (!%p7985_p10)
}
0x113a   :  { %6249 = dma.vmem_to_hbm [thread:$0]  %s6244_s27, 256, %s9174_s10, [#allocation6], %s8007_s18, %s8007_s18, %s8008_s19  }
0x113b   :  { %8003 = dma.done.wait [#allocation6], 256  }
0x113c   :  { %8004 = vsyncadd [#allocation6], 4294967040 }
0x113d   :  { %6253 = vsyncpa [#allocation5], 1 }
0x113e   :  { %6254 = vsyncpa [#allocation8], 1 }
0x113f   :  { %6255 = vsyncpa [#allocation11], 1 }
0x1140   :  { %6256 = vsyncpa [#allocation6], 1 }

</bundles_post_ra>
